<compile_context>
chip_gen: v7x
topology: tpu7x:2x2x1
jax: 0.10.0
libtpu: 0.0.40
codegen_flags: <defaults>
</compile_context>

<pallas_src>
import functools
import math

import jax
import jax.numpy as jnp
from jax.experimental import pallas as pl
from jax.experimental.pallas import tpu as pltpu


# --------------------------------------------------------------------------
# elementwise helpers (traced inside the kernels)
# --------------------------------------------------------------------------
def _erf(x):
    # Abramowitz & Stegun 7.1.26 (|err| < 1.5e-7). exp -> EUP, 1/(1+p|x|)
    # via approximate EUP reciprocal (off the VALU critical path).
    a1, a2, a3, a4, a5 = 0.254829592, -0.284496736, 1.421413741, -1.453152027, 1.061405429
    p = 0.3275911
    s = jnp.where(x >= 0.0, 1.0, -1.0)
    ax = jnp.abs(x)
    t = pl.reciprocal(1.0 + p * ax, approx=True)
    poly = ((((a5 * t + a4) * t + a3) * t + a2) * t + a1) * t
    return s * (1.0 - poly * jnp.exp(-ax * ax))


def _gauss_auc(mu, lo, hi, scale):
    # Integral of N(mu, stddev) over [lo, hi]; scale = inv_stddev / sqrt(2).
    return 0.5 * (_erf((hi - mu) * scale) - _erf((lo - mu) * scale))


def _window_weights(centers, nb, stddev, inv_stddev, ext_bin, inv_sqrt2):
    """Factored truncated-Gaussian bin weights.

    centers: (1, TF) flop centers along one axis.
    Returns (nb, TF): weight of every 1-D bin for every flop, normalized over
    the clamped window [binLo, binHi] (mirrors compute_demand_function).
    """
    tf = centers.shape[-1]
    scale = inv_stddev * inv_sqrt2
    bin_idx = jax.lax.broadcasted_iota(jnp.int32, (nb, tf), 0).astype(jnp.float32)

    bc = jnp.clip(jnp.floor(centers * inv_stddev), 0.0, nb - 1.0)      # (1, TF)
    lo = jnp.maximum(bc - ext_bin, 0.0)
    hi = jnp.minimum(bc + ext_bin, nb - 1.0)

    raw = _gauss_auc(centers, bin_idx * stddev, (bin_idx + 1.0) * stddev, scale)  # (nb, TF)
    tot = _gauss_auc(centers, lo * stddev, (hi + 1.0) * stddev, scale)            # (1, TF)
    inv_tot = pl.reciprocal(jnp.maximum(tot, 1e-20), approx=True)

    ok = jnp.logical_and(jnp.logical_and(bin_idx >= lo, bin_idx <= hi),
                         tot > 1e-20)
    return jnp.where(ok, raw * inv_tot, 0.0)


# --------------------------------------------------------------------------
# pass 1: demand accumulation over flop tiles + per-bin slice area
# --------------------------------------------------------------------------
def _ff_demand_kernel(nx_ref, ny_ref, cc_ref,           # inputs  (per flop tile)
                      apd_ref, wx_ref, wy_ref,          # outputs
                      dem_acc,                          # scratch (XY, C) f32
                      *, num_bins_x, num_bins_y, num_bins_ck, num_bins_ce,
                      stddev_x, stddev_y, inv_stddev_x, inv_stddev_y,
                      ext_bin, bin_area, inv_sqrt2, slice_capacity):
    i = pl.program_id(0)
    nbxy = num_bins_x * num_bins_y
    nc = num_bins_ck * num_bins_ce
    tf = nx_ref.shape[1]

    @pl.when(i == 0)
    def _init():
        dem_acc[...] = jnp.zeros_like(dem_acc)
        apd_ref[...] = jnp.zeros_like(apd_ref)

    # Factored truncated-Gaussian weights for this flop tile; also written out
    # so pass 2 does not recompute the erf work.
    wx = _window_weights(nx_ref[...], num_bins_x, stddev_x, inv_stddev_x, ext_bin, inv_sqrt2)
    wy = _window_weights(ny_ref[...], num_bins_y, stddev_y, inv_stddev_y, ext_bin, inv_sqrt2)
    wx_ref[...] = wx
    wy_ref[...] = wy

    # Scatter-add of each flop's separable window into its (cksr, ce) slot ==
    # one-hot matmul on the MXU (bf16 operands, f32 accumulation).
    w_xy = (wx[:, None, :] * wy[None, :, :]).reshape(nbxy, tf)         # (XY, TF)
    ci = jax.lax.broadcasted_iota(jnp.int32, (tf, nc), 1)
    oh = (ci == cc_ref[...]).astype(jnp.bfloat16)                      # (TF, C); padded cc=-1 -> all-zero row
    dem_acc[...] += jnp.dot(w_xy.astype(jnp.bfloat16), oh,
                            preferred_element_type=jnp.float32)        # (XY, C)

    @pl.when(i == pl.num_programs(0) - 1)
    def _finalize():
        dem = dem_acc[...]
        # elfPlace-style FF slice packing: 4 FFs per CE group, 2 CE groups per
        # CK-SR half-slice, 2 half-slices per SLICE.
        ce_grp = jnp.ceil(dem * 0.25)                                  # (XY, C)
        half_slices = jnp.zeros((nbxy, 1), jnp.float32)
        for k in range(num_bins_ck):                                   # static, small
            grp = jnp.sum(ce_grp[:, k * num_bins_ce:(k + 1) * num_bins_ce],
                          axis=-1, keepdims=True)
            half_slices = half_slices + jnp.ceil(grp * 0.5)
        slices = jnp.ceil(half_slices * 0.5)                           # (XY, 1)
        total = jnp.sum(dem, axis=-1, keepdims=True)                   # (XY, 1)
        inv_total = pl.reciprocal(jnp.maximum(total, 1e-20), approx=True)
        apd_ref[...] = jnp.where(total > 0.0,
                                 (bin_area * slice_capacity) * slices * inv_total,
                                 0.0)                                  # area per unit FF demand


# --------------------------------------------------------------------------
# pass 2: per-flop area gather (parallel over flop tiles)
# --------------------------------------------------------------------------
def _ff_gather_kernel(apd_ref, wx_ref, wy_ref, area_ref):
    # areas[f] = sum_x wx[x,f] * sum_y apd[x,y] * wy[y,f]
    t = jnp.dot(apd_ref[...], wy_ref[...], preferred_element_type=jnp.float32)  # (NBX, TF)
    area_ref[...] = jnp.sum(wx_ref[...] * t, axis=0, keepdims=True)             # (1, TF) lane-dense


# --------------------------------------------------------------------------
# wrapper
# --------------------------------------------------------------------------
class FFCompatibility:
    """JAX/Pallas re-implementation of dreamplacefpga FFCompatibility.forward."""

    FLOP_TILE = 128  # lane-dense flop tile (multiple of 128)

    def __init__(self, flop_indices, flop_ctrlSets, node_size_x, node_size_y,
                 num_bins_x, num_bins_y, num_bins_ck, num_bins_ce,
                 xl, yl, xh, yh, inst_stddev_x, inst_stddev_y,
                 inst_stddev_trunc, deterministic_flag, num_threads):
        self.flop_indices = flop_indices
        self.flop_ctrlSets = flop_ctrlSets
        self.node_size_x = node_size_x
        self.node_size_y = node_size_y
        self.num_bins_x = int(num_bins_x)
        self.num_bins_y = int(num_bins_y)
        self.num_bins_ck = int(num_bins_ck)
        self.num_bins_ce = int(num_bins_ce)
        self.xl, self.yl, self.xh, self.yh = float(xl), float(yl), float(xh), float(yh)
        self.inst_stddev_x = float(inst_stddev_x)
        self.inst_stddev_y = float(inst_stddev_y)
        self.inst_stddev_trunc = float(inst_stddev_trunc)
        self.deterministic_flag = deterministic_flag   # TPU path is deterministic anyway
        self.num_threads = num_threads                 # unused on TPU

    def __call__(self, pos):
        num_nodes = self.node_size_x.shape[0]
        num_flops = int(self.flop_indices.shape[0])
        ext_bin = max(round(self.inst_stddev_trunc - 0.5), 0)
        idx = self.flop_indices

        nbx, nby = self.num_bins_x, self.num_bins_y
        nbxy = nbx * nby
        nck, nce = self.num_bins_ck, self.num_bins_ce

        # Glue: per-flop centers and flattened control-set id.
        nx = (pos[idx] - self.xl + 0.5 * self.node_size_x[idx]).astype(jnp.float32)
        ny = (pos[idx + num_nodes] - self.yl + 0.5 * self.node_size_y[idx]).astype(jnp.float32)
        cc = (self.flop_ctrlSets[:, 1] * nce + self.flop_ctrlSets[:, 2]).astype(jnp.int32)

        # Pad flop count to a multiple of the lane-dense tile; padded entries
        # get cc=-1 (no one-hot match -> zero demand) and are sliced off below.
        tf = self.FLOP_TILE
        fp = ((num_flops + tf - 1) // tf) * tf
        pad = fp - num_flops
        nx_p = jnp.pad(nx, (0, pad)).reshape(1, fp)
        ny_p = jnp.pad(ny, (0, pad)).reshape(1, fp)
        cc_p = jnp.pad(cc, (0, pad), constant_values=-1).reshape(fp, 1)
        n_tiles = fp // tf

        cparams = dict(vmem_limit_bytes=48 * 1024 * 1024)  # headroom for v7x's 64 MiB VMEM

        dem_kernel = functools.partial(
            _ff_demand_kernel,
            num_bins_x=nbx, num_bins_y=nby, num_bins_ck=nck, num_bins_ce=nce,
            stddev_x=self.inst_stddev_x, stddev_y=self.inst_stddev_y,
            inv_stddev_x=1.0 / self.inst_stddev_x, inv_stddev_y=1.0 / self.inst_stddev_y,
            ext_bin=float(ext_bin),
            bin_area=self.inst_stddev_x * self.inst_stddev_y,
            inv_sqrt2=1.0 / math.sqrt(2.0),
            slice_capacity=16.0)

        # ---- pass 1: accumulate demand map over flop tiles, emit per-bin area
        #      (area-per-demand) and the factored Gaussian weights ----
        apd_col, wx_all, wy_all = pl.pallas_call(
            dem_kernel,
            out_shape=(jax.ShapeDtypeStruct((nbxy, 1), jnp.float32),
                       jax.ShapeDtypeStruct((nbx, fp), jnp.float32),
                       jax.ShapeDtypeStruct((nby, fp), jnp.float32)),
            grid_spec=pltpu.PrefetchScalarGridSpec(
                num_scalar_prefetch=0,
                grid=(n_tiles,),
                in_specs=[pl.BlockSpec((1, tf), lambda i: (0, i)),
                          pl.BlockSpec((1, tf), lambda i: (0, i)),
                          pl.BlockSpec((tf, 1), lambda i: (i, 0))],
                out_specs=[pl.BlockSpec((nbxy, 1), lambda i: (0, 0)),
                           pl.BlockSpec((nbx, tf), lambda i: (0, i)),
                           pl.BlockSpec((nby, tf), lambda i: (0, i))],
                scratch_shapes=[pltpu.VMEM((nbxy, nck * nce), jnp.float32)]),
            compiler_params=pltpu.CompilerParams(
                dimension_semantics=("arbitrary",), **cparams),
        )(nx_p, ny_p, cc_p)

        apd2d = apd_col.reshape(nbx, nby)

        # ---- pass 2: per-flop Gaussian-weighted area gather (parallel) ----
        areas = pl.pallas_call(
            _ff_gather_kernel,
            out_shape=jax.ShapeDtypeStruct((1, fp), jnp.float32),
            grid_spec=pltpu.PrefetchScalarGridSpec(
                num_scalar_prefetch=0,
                grid=(n_tiles,),
                in_specs=[pl.BlockSpec((nbx, nby), lambda i: (0, 0)),
                          pl.BlockSpec((nbx, tf), lambda i: (0, i)),
                          pl.BlockSpec((nby, tf), lambda i: (0, i))],
                out_specs=pl.BlockSpec((1, tf), lambda i: (0, i))),
            compiler_params=pltpu.CompilerParams(
                dimension_semantics=("parallel",), **cparams),
        )(apd2d, wx_all, wy_all)

        flop_areas = areas[0, :num_flops]
        resource_areas = jnp.zeros(num_nodes, dtype=pos.dtype)
        resource_areas = resource_areas.at[idx].set(flop_areas.astype(pos.dtype))
        return resource_areas / 16.0


if __name__ == "__main__":
    key = jax.random.PRNGKey(0)
    num_nodes = 512
    num_flops = 200          # -> 2 flop tiles of 128 (exercises accumulation + padding)
    num_bins_x = num_bins_y = 16
    num_bins_ck = 4
    num_bins_ce = 32
    xl, yl, xh, yh = 0.0, 0.0, 16.0, 16.0
    inst_stddev_x = (xh - xl) / num_bins_x
    inst_stddev_y = (yh - yl) / num_bins_y

    k1, k2, k3, k4, k5 = jax.random.split(key, 5)
    node_size_x = jax.random.uniform(k1, (num_nodes,), minval=0.1, maxval=0.5)
    node_size_y = jax.random.uniform(k2, (num_nodes,), minval=0.1, maxval=0.5)
    # pos is the DREAMPlace flat layout: [x_0..x_{N-1}, y_0..y_{N-1}]
    pos = jax.random.uniform(k3, (2 * num_nodes,), minval=0.5, maxval=15.0)
    flop_indices = jnp.arange(0, 2 * num_flops, 2, dtype=jnp.int32)   # even nodes are flops
    cksr = jax.random.randint(k4, (num_flops,), 0, num_bins_ck, dtype=jnp.int32)
    ce = jax.random.randint(k5, (num_flops,), 0, num_bins_ce, dtype=jnp.int32)
    clk = jnp.zeros((num_flops,), jnp.int32)
    flop_ctrlSets = jnp.stack([clk, cksr, ce], axis=1)                # (F, 3): [clk, cksr, ce]

    op = FFCompatibility(flop_indices, flop_ctrlSets, node_size_x, node_size_y,
                         num_bins_x, num_bins_y, num_bins_ck, num_bins_ce,
                         xl, yl, xh, yh, inst_stddev_x, inst_stddev_y,
                         inst_stddev_trunc=2.5, deterministic_flag=1, num_threads=8)

    resource_areas = op(pos)
    jax.block_until_ready(resource_areas)

    flop_mask = jnp.zeros((num_nodes,), bool).at[flop_indices].set(True)
    assert resource_areas.shape == (num_nodes,)
    assert resource_areas.dtype == pos.dtype
    assert bool(jnp.all(jnp.isfinite(resource_areas)))
    # non-flop nodes stay zero, flops get positive area
    assert bool(jnp.all(jnp.where(flop_mask, resource_areas > 0.0, resource_areas == 0.0)))
    print("KERNEL_OK")
</pallas_src>

<mosaic_0001>
module attributes {stable_mosaic.version = 11 : i64} {
  func.func @_ff_demand_kernel(%arg0: i32, %arg1: memref<1x128xf32, #tpu.memory_space<vmem>>, %arg2: memref<1x128xf32, #tpu.memory_space<vmem>>, %arg3: memref<128x1xi32, #tpu.memory_space<vmem>>, %arg4: memref<256x1xf32, #tpu.memory_space<vmem>>, %arg5: memref<16x128xf32, #tpu.memory_space<vmem>>, %arg6: memref<16x128xf32, #tpu.memory_space<vmem>>, %arg7: memref<256x128xf32, #tpu.memory_space<vmem>>) attributes {dimension_semantics = [#tpu.dimension_semantics<arbitrary>], iteration_bounds = array<i64: 2>, scalar_prefetch = 0 : i64, scratch_operands = 1 : i64, tpu.core_type = #tpu.core_type<tc>, window_params = [{transform_indices = @transform_0, window_bounds = array<i64: 1, 128>}, {transform_indices = @transform_1, window_bounds = array<i64: 1, 128>}, {transform_indices = @transform_2, window_bounds = array<i64: 128, 1>}, {pipeline_mode = #tpu.pipeline_mode<synchronous>, transform_indices = @transform_3, window_bounds = array<i64: 256, 1>}, {transform_indices = @transform_4, window_bounds = array<i64: 16, 128>}, {transform_indices = @transform_5, window_bounds = array<i64: 16, 128>}]} {
    %c0_i32 = arith.constant 0 : i32
    %0 = arith.cmpi eq, %arg0, %c0_i32 : i32
    %1 = arith.extui %0 : i1 to i32
    %c0_i32_0 = arith.constant 0 : i32
    %2 = arith.cmpi ne, %1, %c0_i32_0 : i32
    scf.if %2 {
      %cst_155 = arith.constant 0.000000e+00 : f32
      %422 = vector.broadcast %cst_155 : f32 to vector<256x128xf32>
      %c0_156 = arith.constant 0 : index
      %c0_157 = arith.constant 0 : index
      %423 = vector.load %arg7[%c0_156, %c0_157] : memref<256x128xf32, #tpu.memory_space<vmem>>, vector<256x128xf32>
      tpu.vector_store %arg7[%c0_156, %c0_157], %422 {strides = array<i32>} : memref<256x128xf32, #tpu.memory_space<vmem>>, vector<256x128xf32>,
      %cst_158 = arith.constant 0.000000e+00 : f32
      %424 = vector.broadcast %cst_158 : f32 to vector<256x1xf32>
      %c0_159 = arith.constant 0 : index
      %c0_160 = arith.constant 0 : index
      %425 = vector.load %arg4[%c0_159, %c0_160] : memref<256x1xf32, #tpu.memory_space<vmem>>, vector<256x1xf32>
      tpu.vector_store %arg4[%c0_159, %c0_160], %424 {strides = array<i32>} : memref<256x1xf32, #tpu.memory_space<vmem>>, vector<256x1xf32>,
    } else {
    }
    %c0 = arith.constant 0 : index
    %c0_1 = arith.constant 0 : index
    %3 = vector.load %arg1[%c0, %c0_1] : memref<1x128xf32, #tpu.memory_space<vmem>>, vector<1x128xf32>
    %4 = tpu.iota {dimensions = array<i32: 0>} : vector<16x128xi32>
    %5 = arith.sitofp %4 : vector<16x128xi32> to vector<16x128xf32>
    %cst = arith.constant 1.000000e+00 : f32
    %6 = vector.broadcast %cst : f32 to vector<1x128xf32>
    %7 = arith.mulf %3, %6 : vector<1x128xf32>
    %8 = math.floor %7 : vector<1x128xf32>
    %cst_2 = arith.constant 0.000000e+00 : f32
    %cst_3 = arith.constant 1.500000e+01 : f32
    %9 = vector.broadcast %cst_2 : f32 to vector<1x128xf32>
    %10 = arith.maximumf %9, %8 : vector<1x128xf32>
    %11 = vector.broadcast %cst_3 : f32 to vector<1x128xf32>
    %12 = arith.minimumf %11, %10 : vector<1x128xf32>
    %cst_4 = arith.constant 2.000000e+00 : f32
    %13 = vector.broadcast %cst_4 : f32 to vector<1x128xf32>
    %14 = arith.subf %12, %13 : vector<1x128xf32>
    %cst_5 = arith.constant 0.000000e+00 : f32
    %15 = vector.broadcast %cst_5 : f32 to vector<1x128xf32>
    %16 = arith.maximumf %14, %15 : vector<1x128xf32>
    %cst_6 = arith.constant 2.000000e+00 : f32
    %17 = vector.broadcast %cst_6 : f32 to vector<1x128xf32>
    %18 = arith.addf %12, %17 : vector<1x128xf32>
    %cst_7 = arith.constant 1.500000e+01 : f32
    %19 = vector.broadcast %cst_7 : f32 to vector<1x128xf32>
    %20 = arith.minimumf %18, %19 : vector<1x128xf32>
    %cst_8 = arith.constant 1.000000e+00 : f32
    %21 = vector.broadcast %cst_8 : f32 to vector<16x128xf32>
    %22 = arith.mulf %5, %21 : vector<16x128xf32>
    %cst_9 = arith.constant 1.000000e+00 : f32
    %23 = vector.broadcast %cst_9 : f32 to vector<16x128xf32>
    %24 = arith.addf %5, %23 : vector<16x128xf32>
    %cst_10 = arith.constant 1.000000e+00 : f32
    %25 = vector.broadcast %cst_10 : f32 to vector<16x128xf32>
    %26 = arith.mulf %24, %25 : vector<16x128xf32>
    %27 = vector.broadcast %3 : vector<1x128xf32> to vector<16x128xf32>
    %28 = arith.subf %26, %27 : vector<16x128xf32>
    %cst_11 = arith.constant 0.707106769 : f32
    %29 = vector.broadcast %cst_11 : f32 to vector<16x128xf32>
    %30 = arith.mulf %28, %29 : vector<16x128xf32>
    %cst_12 = arith.constant 0.000000e+00 : f32
    %31 = vector.broadcast %cst_12 : f32 to vector<16x128xf32>
    %32 = arith.cmpf oge, %30, %31 : vector<16x128xf32>
    %cst_13 = arith.constant 1.000000e+00 : f32
    %cst_14 = arith.constant -1.000000e+00 : f32
    %33 = vector.broadcast %cst_13 : f32 to vector<16x128xf32>
    %34 = vector.broadcast %cst_14 : f32 to vector<16x128xf32>
    %35 = arith.select %32, %33, %34 : vector<16x128xi1>, vector<16x128xf32>
    %36 = math.absf %30 : vector<16x128xf32>
    %cst_15 = arith.constant 0.327591091 : f32
    %37 = vector.broadcast %cst_15 : f32 to vector<16x128xf32>
    %38 = arith.mulf %37, %36 : vector<16x128xf32>
    %cst_16 = arith.constant 1.000000e+00 : f32
    %39 = vector.broadcast %cst_16 : f32 to vector<16x128xf32>
    %40 = arith.addf %39, %38 : vector<16x128xf32>
    %41 = tpu.reciprocal %40 {approx = true} : vector<16x128xf32> -> vector<16x128xf32>
    %cst_17 = arith.constant 1.06140542 : f32
    %42 = vector.broadcast %cst_17 : f32 to vector<16x128xf32>
    %43 = arith.mulf %42, %41 : vector<16x128xf32>
    %cst_18 = arith.constant -1.45315206 : f32
    %44 = vector.broadcast %cst_18 : f32 to vector<16x128xf32>
    %45 = arith.addf %43, %44 : vector<16x128xf32>
    %46 = arith.mulf %45, %41 : vector<16x128xf32>
    %cst_19 = arith.constant 1.42141378 : f32
    %47 = vector.broadcast %cst_19 : f32 to vector<16x128xf32>
    %48 = arith.addf %46, %47 : vector<16x128xf32>
    %49 = arith.mulf %48, %41 : vector<16x128xf32>
    %cst_20 = arith.constant -0.284496725 : f32
    %50 = vector.broadcast %cst_20 : f32 to vector<16x128xf32>
    %51 = arith.addf %49, %50 : vector<16x128xf32>
    %52 = arith.mulf %51, %41 : vector<16x128xf32>
    %cst_21 = arith.constant 0.254829586 : f32
    %53 = vector.broadcast %cst_21 : f32 to vector<16x128xf32>
    %54 = arith.addf %52, %53 : vector<16x128xf32>
    %55 = arith.mulf %54, %41 : vector<16x128xf32>
    %cst_22 = arith.constant 0.000000e+00 : f32
    %56 = vector.broadcast %cst_22 : f32 to vector<16x128xf32>
    %57 = arith.subf %56, %36 : vector<16x128xf32>
    %58 = arith.mulf %57, %36 : vector<16x128xf32>
    %59 = math.exp %58 : vector<16x128xf32>
    %60 = arith.mulf %55, %59 : vector<16x128xf32>
    %cst_23 = arith.constant 1.000000e+00 : f32
    %61 = vector.broadcast %cst_23 : f32 to vector<16x128xf32>
    %62 = arith.subf %61, %60 : vector<16x128xf32>
    %63 = arith.mulf %35, %62 : vector<16x128xf32>
    %64 = vector.broadcast %3 : vector<1x128xf32> to vector<16x128xf32>
    %65 = arith.subf %22, %64 : vector<16x128xf32>
    %cst_24 = arith.constant 0.707106769 : f32
    %66 = vector.broadcast %cst_24 : f32 to vector<16x128xf32>
    %67 = arith.mulf %65, %66 : vector<16x128xf32>
    %cst_25 = arith.constant 0.000000e+00 : f32
    %68 = vector.broadcast %cst_25 : f32 to vector<16x128xf32>
    %69 = arith.cmpf oge, %67, %68 : vector<16x128xf32>
    %cst_26 = arith.constant 1.000000e+00 : f32
    %cst_27 = arith.constant -1.000000e+00 : f32
    %70 = vector.broadcast %cst_26 : f32 to vector<16x128xf32>
    %71 = vector.broadcast %cst_27 : f32 to vector<16x128xf32>
    %72 = arith.select %69, %70, %71 : vector<16x128xi1>, vector<16x128xf32>
    %73 = math.absf %67 : vector<16x128xf32>
    %cst_28 = arith.constant 0.327591091 : f32
    %74 = vector.broadcast %cst_28 : f32 to vector<16x128xf32>
    %75 = arith.mulf %74, %73 : vector<16x128xf32>
    %cst_29 = arith.constant 1.000000e+00 : f32
    %76 = vector.broadcast %cst_29 : f32 to vector<16x128xf32>
    %77 = arith.addf %76, %75 : vector<16x128xf32>
    %78 = tpu.reciprocal %77 {approx = true} : vector<16x128xf32> -> vector<16x128xf32>
    %cst_30 = arith.constant 1.06140542 : f32
    %79 = vector.broadcast %cst_30 : f32 to vector<16x128xf32>
    %80 = arith.mulf %79, %78 : vector<16x128xf32>
    %cst_31 = arith.constant -1.45315206 : f32
    %81 = vector.broadcast %cst_31 : f32 to vector<16x128xf32>
    %82 = arith.addf %80, %81 : vector<16x128xf32>
    %83 = arith.mulf %82, %78 : vector<16x128xf32>
    %cst_32 = arith.constant 1.42141378 : f32
    %84 = vector.broadcast %cst_32 : f32 to vector<16x128xf32>
    %85 = arith.addf %83, %84 : vector<16x128xf32>
    %86 = arith.mulf %85, %78 : vector<16x128xf32>
    %cst_33 = arith.constant -0.284496725 : f32
    %87 = vector.broadcast %cst_33 : f32 to vector<16x128xf32>
    %88 = arith.addf %86, %87 : vector<16x128xf32>
    %89 = arith.mulf %88, %78 : vector<16x128xf32>
    %cst_34 = arith.constant 0.254829586 : f32
    %90 = vector.broadcast %cst_34 : f32 to vector<16x128xf32>
    %91 = arith.addf %89, %90 : vector<16x128xf32>
    %92 = arith.mulf %91, %78 : vector<16x128xf32>
    %cst_35 = arith.constant 0.000000e+00 : f32
    %93 = vector.broadcast %cst_35 : f32 to vector<16x128xf32>
    %94 = arith.subf %93, %73 : vector<16x128xf32>
    %95 = arith.mulf %94, %73 : vector<16x128xf32>
    %96 = math.exp %95 : vector<16x128xf32>
    %97 = arith.mulf %92, %96 : vector<16x128xf32>
    %cst_36 = arith.constant 1.000000e+00 : f32
    %98 = vector.broadcast %cst_36 : f32 to vector<16x128xf32>
    %99 = arith.subf %98, %97 : vector<16x128xf32>
    %100 = arith.mulf %72, %99 : vector<16x128xf32>
    %101 = arith.subf %63, %100 : vector<16x128xf32>
    %cst_37 = arith.constant 5.000000e-01 : f32
    %102 = vector.broadcast %cst_37 : f32 to vector<16x128xf32>
    %103 = arith.mulf %102, %101 : vector<16x128xf32>
    %cst_38 = arith.constant 1.000000e+00 : f32
    %104 = vector.broadcast %cst_38 : f32 to vector<1x128xf32>
    %105 = arith.mulf %16, %104 : vector<1x128xf32>
    %cst_39 = arith.constant 1.000000e+00 : f32
    %106 = vector.broadcast %cst_39 : f32 to vector<1x128xf32>
    %107 = arith.addf %20, %106 : vector<1x128xf32>
    %cst_40 = arith.constant 1.000000e+00 : f32
    %108 = vector.broadcast %cst_40 : f32 to vector<1x128xf32>
    %109 = arith.mulf %107, %108 : vector<1x128xf32>
    %110 = arith.subf %109, %3 : vector<1x128xf32>
    %cst_41 = arith.constant 0.707106769 : f32
    %111 = vector.broadcast %cst_41 : f32 to vector<1x128xf32>
    %112 = arith.mulf %110, %111 : vector<1x128xf32>
    %cst_42 = arith.constant 0.000000e+00 : f32
    %113 = vector.broadcast %cst_42 : f32 to vector<1x128xf32>
    %114 = arith.cmpf oge, %112, %113 : vector<1x128xf32>
    %cst_43 = arith.constant 1.000000e+00 : f32
    %cst_44 = arith.constant -1.000000e+00 : f32
    %115 = vector.broadcast %cst_43 : f32 to vector<1x128xf32>
    %116 = vector.broadcast %cst_44 : f32 to vector<1x128xf32>
    %117 = arith.select %114, %115, %116 : vector<1x128xi1>, vector<1x128xf32>
    %118 = math.absf %112 : vector<1x128xf32>
    %cst_45 = arith.constant 0.327591091 : f32
    %119 = vector.broadcast %cst_45 : f32 to vector<1x128xf32>
    %120 = arith.mulf %119, %118 : vector<1x128xf32>
    %cst_46 = arith.constant 1.000000e+00 : f32
    %121 = vector.broadcast %cst_46 : f32 to vector<1x128xf32>
    %122 = arith.addf %121, %120 : vector<1x128xf32>
    %123 = tpu.reciprocal %122 {approx = true} : vector<1x128xf32> -> vector<1x128xf32>
    %cst_47 = arith.constant 1.06140542 : f32
    %124 = vector.broadcast %cst_47 : f32 to vector<1x128xf32>
    %125 = arith.mulf %124, %123 : vector<1x128xf32>
    %cst_48 = arith.constant -1.45315206 : f32
    %126 = vector.broadcast %cst_48 : f32 to vector<1x128xf32>
    %127 = arith.addf %125, %126 : vector<1x128xf32>
    %128 = arith.mulf %127, %123 : vector<1x128xf32>
    %cst_49 = arith.constant 1.42141378 : f32
    %129 = vector.broadcast %cst_49 : f32 to vector<1x128xf32>
    %130 = arith.addf %128, %129 : vector<1x128xf32>
    %131 = arith.mulf %130, %123 : vector<1x128xf32>
    %cst_50 = arith.constant -0.284496725 : f32
    %132 = vector.broadcast %cst_50 : f32 to vector<1x128xf32>
    %133 = arith.addf %131, %132 : vector<1x128xf32>
    %134 = arith.mulf %133, %123 : vector<1x128xf32>
    %cst_51 = arith.constant 0.254829586 : f32
    %135 = vector.broadcast %cst_51 : f32 to vector<1x128xf32>
    %136 = arith.addf %134, %135 : vector<1x128xf32>
    %137 = arith.mulf %136, %123 : vector<1x128xf32>
    %cst_52 = arith.constant 0.000000e+00 : f32
    %138 = vector.broadcast %cst_52 : f32 to vector<1x128xf32>
    %139 = arith.subf %138, %118 : vector<1x128xf32>
    %140 = arith.mulf %139, %118 : vector<1x128xf32>
    %141 = math.exp %140 : vector<1x128xf32>
    %142 = arith.mulf %137, %141 : vector<1x128xf32>
    %cst_53 = arith.constant 1.000000e+00 : f32
    %143 = vector.broadcast %cst_53 : f32 to vector<1x128xf32>
    %144 = arith.subf %143, %142 : vector<1x128xf32>
    %145 = arith.mulf %117, %144 : vector<1x128xf32>
    %146 = arith.subf %105, %3 : vector<1x128xf32>
    %cst_54 = arith.constant 0.707106769 : f32
    %147 = vector.broadcast %cst_54 : f32 to vector<1x128xf32>
    %148 = arith.mulf %146, %147 : vector<1x128xf32>
    %cst_55 = arith.constant 0.000000e+00 : f32
    %149 = vector.broadcast %cst_55 : f32 to vector<1x128xf32>
    %150 = arith.cmpf oge, %148, %149 : vector<1x128xf32>
    %cst_56 = arith.constant 1.000000e+00 : f32
    %cst_57 = arith.constant -1.000000e+00 : f32
    %151 = vector.broadcast %cst_56 : f32 to vector<1x128xf32>
    %152 = vector.broadcast %cst_57 : f32 to vector<1x128xf32>
    %153 = arith.select %150, %151, %152 : vector<1x128xi1>, vector<1x128xf32>
    %154 = math.absf %148 : vector<1x128xf32>
    %cst_58 = arith.constant 0.327591091 : f32
    %155 = vector.broadcast %cst_58 : f32 to vector<1x128xf32>
    %156 = arith.mulf %155, %154 : vector<1x128xf32>
    %cst_59 = arith.constant 1.000000e+00 : f32
    %157 = vector.broadcast %cst_59 : f32 to vector<1x128xf32>
    %158 = arith.addf %157, %156 : vector<1x128xf32>
    %159 = tpu.reciprocal %158 {approx = true} : vector<1x128xf32> -> vector<1x128xf32>
    %cst_60 = arith.constant 1.06140542 : f32
    %160 = vector.broadcast %cst_60 : f32 to vector<1x128xf32>
    %161 = arith.mulf %160, %159 : vector<1x128xf32>
    %cst_61 = arith.constant -1.45315206 : f32
    %162 = vector.broadcast %cst_61 : f32 to vector<1x128xf32>
    %163 = arith.addf %161, %162 : vector<1x128xf32>
    %164 = arith.mulf %163, %159 : vector<1x128xf32>
    %cst_62 = arith.constant 1.42141378 : f32
    %165 = vector.broadcast %cst_62 : f32 to vector<1x128xf32>
    %166 = arith.addf %164, %165 : vector<1x128xf32>
    %167 = arith.mulf %166, %159 : vector<1x128xf32>
    %cst_63 = arith.constant -0.284496725 : f32
    %168 = vector.broadcast %cst_63 : f32 to vector<1x128xf32>
    %169 = arith.addf %167, %168 : vector<1x128xf32>
    %170 = arith.mulf %169, %159 : vector<1x128xf32>
    %cst_64 = arith.constant 0.254829586 : f32
    %171 = vector.broadcast %cst_64 : f32 to vector<1x128xf32>
    %172 = arith.addf %170, %171 : vector<1x128xf32>
    %173 = arith.mulf %172, %159 : vector<1x128xf32>
    %cst_65 = arith.constant 0.000000e+00 : f32
    %174 = vector.broadcast %cst_65 : f32 to vector<1x128xf32>
    %175 = arith.subf %174, %154 : vector<1x128xf32>
    %176 = arith.mulf %175, %154 : vector<1x128xf32>
    %177 = math.exp %176 : vector<1x128xf32>
    %178 = arith.mulf %173, %177 : vector<1x128xf32>
    %cst_66 = arith.constant 1.000000e+00 : f32
    %179 = vector.broadcast %cst_66 : f32 to vector<1x128xf32>
    %180 = arith.subf %179, %178 : vector<1x128xf32>
    %181 = arith.mulf %153, %180 : vector<1x128xf32>
    %182 = arith.subf %145, %181 : vector<1x128xf32>
    %cst_67 = arith.constant 5.000000e-01 : f32
    %183 = vector.broadcast %cst_67 : f32 to vector<1x128xf32>
    %184 = arith.mulf %183, %182 : vector<1x128xf32>
    %cst_68 = arith.constant 9.99999968E-21 : f32
    %185 = vector.broadcast %cst_68 : f32 to vector<1x128xf32>
    %186 = arith.maximumf %184, %185 : vector<1x128xf32>
    %187 = tpu.reciprocal %186 {approx = true} : vector<1x128xf32> -> vector<1x128xf32>
    %188 = vector.broadcast %16 : vector<1x128xf32> to vector<16x128xf32>
    %189 = arith.cmpf oge, %5, %188 : vector<16x128xf32>
    %190 = vector.broadcast %20 : vector<1x128xf32> to vector<16x128xf32>
    %191 = arith.cmpf ole, %5, %190 : vector<16x128xf32>
    %192 = arith.andi %189, %191 : vector<16x128xi1>
    %cst_69 = arith.constant 9.99999968E-21 : f32
    %193 = vector.broadcast %cst_69 : f32 to vector<1x128xf32>
    %194 = arith.cmpf ogt, %184, %193 : vector<1x128xf32>
    %195 = vector.broadcast %194 : vector<1x128xi1> to vector<16x128xi1>
    %196 = arith.andi %192, %195 : vector<16x128xi1>
    %197 = vector.broadcast %187 : vector<1x128xf32> to vector<16x128xf32>
    %198 = arith.mulf %103, %197 : vector<16x128xf32>
    %cst_70 = arith.constant 0.000000e+00 : f32
    %199 = vector.broadcast %cst_70 : f32 to vector<16x128xf32>
    %200 = arith.select %196, %198, %199 : vector<16x128xi1>, vector<16x128xf32>
    %c0_71 = arith.constant 0 : index
    %c0_72 = arith.constant 0 : index
    %201 = vector.load %arg2[%c0_71, %c0_72] : memref<1x128xf32, #tpu.memory_space<vmem>>, vector<1x128xf32>
    %202 = tpu.iota {dimensions = array<i32: 0>} : vector<16x128xi32>
    %203 = arith.sitofp %202 : vector<16x128xi32> to vector<16x128xf32>
    %cst_73 = arith.constant 1.000000e+00 : f32
    %204 = vector.broadcast %cst_73 : f32 to vector<1x128xf32>
    %205 = arith.mulf %201, %204 : vector<1x128xf32>
    %206 = math.floor %205 : vector<1x128xf32>
    %cst_74 = arith.constant 0.000000e+00 : f32
    %cst_75 = arith.constant 1.500000e+01 : f32
    %207 = vector.broadcast %cst_74 : f32 to vector<1x128xf32>
    %208 = arith.maximumf %207, %206 : vector<1x128xf32>
    %209 = vector.broadcast %cst_75 : f32 to vector<1x128xf32>
    %210 = arith.minimumf %209, %208 : vector<1x128xf32>
    %cst_76 = arith.constant 2.000000e+00 : f32
    %211 = vector.broadcast %cst_76 : f32 to vector<1x128xf32>
    %212 = arith.subf %210, %211 : vector<1x128xf32>
    %cst_77 = arith.constant 0.000000e+00 : f32
    %213 = vector.broadcast %cst_77 : f32 to vector<1x128xf32>
    %214 = arith.maximumf %212, %213 : vector<1x128xf32>
    %cst_78 = arith.constant 2.000000e+00 : f32
    %215 = vector.broadcast %cst_78 : f32 to vector<1x128xf32>
    %216 = arith.addf %210, %215 : vector<1x128xf32>
    %cst_79 = arith.constant 1.500000e+01 : f32
    %217 = vector.broadcast %cst_79 : f32 to vector<1x128xf32>
    %218 = arith.minimumf %216, %217 : vector<1x128xf32>
    %cst_80 = arith.constant 1.000000e+00 : f32
    %219 = vector.broadcast %cst_80 : f32 to vector<16x128xf32>
    %220 = arith.mulf %203, %219 : vector<16x128xf32>
    %cst_81 = arith.constant 1.000000e+00 : f32
    %221 = vector.broadcast %cst_81 : f32 to vector<16x128xf32>
    %222 = arith.addf %203, %221 : vector<16x128xf32>
    %cst_82 = arith.constant 1.000000e+00 : f32
    %223 = vector.broadcast %cst_82 : f32 to vector<16x128xf32>
    %224 = arith.mulf %222, %223 : vector<16x128xf32>
    %225 = vector.broadcast %201 : vector<1x128xf32> to vector<16x128xf32>
    %226 = arith.subf %224, %225 : vector<16x128xf32>
    %cst_83 = arith.constant 0.707106769 : f32
    %227 = vector.broadcast %cst_83 : f32 to vector<16x128xf32>
    %228 = arith.mulf %226, %227 : vector<16x128xf32>
    %cst_84 = arith.constant 0.000000e+00 : f32
    %229 = vector.broadcast %cst_84 : f32 to vector<16x128xf32>
    %230 = arith.cmpf oge, %228, %229 : vector<16x128xf32>
    %cst_85 = arith.constant 1.000000e+00 : f32
    %cst_86 = arith.constant -1.000000e+00 : f32
    %231 = vector.broadcast %cst_85 : f32 to vector<16x128xf32>
    %232 = vector.broadcast %cst_86 : f32 to vector<16x128xf32>
    %233 = arith.select %230, %231, %232 : vector<16x128xi1>, vector<16x128xf32>
    %234 = math.absf %228 : vector<16x128xf32>
    %cst_87 = arith.constant 0.327591091 : f32
    %235 = vector.broadcast %cst_87 : f32 to vector<16x128xf32>
    %236 = arith.mulf %235, %234 : vector<16x128xf32>
    %cst_88 = arith.constant 1.000000e+00 : f32
    %237 = vector.broadcast %cst_88 : f32 to vector<16x128xf32>
    %238 = arith.addf %237, %236 : vector<16x128xf32>
    %239 = tpu.reciprocal %238 {approx = true} : vector<16x128xf32> -> vector<16x128xf32>
    %cst_89 = arith.constant 1.06140542 : f32
    %240 = vector.broadcast %cst_89 : f32 to vector<16x128xf32>
    %241 = arith.mulf %240, %239 : vector<16x128xf32>
    %cst_90 = arith.constant -1.45315206 : f32
    %242 = vector.broadcast %cst_90 : f32 to vector<16x128xf32>
    %243 = arith.addf %241, %242 : vector<16x128xf32>
    %244 = arith.mulf %243, %239 : vector<16x128xf32>
    %cst_91 = arith.constant 1.42141378 : f32
    %245 = vector.broadcast %cst_91 : f32 to vector<16x128xf32>
    %246 = arith.addf %244, %245 : vector<16x128xf32>
    %247 = arith.mulf %246, %239 : vector<16x128xf32>
    %cst_92 = arith.constant -0.284496725 : f32
    %248 = vector.broadcast %cst_92 : f32 to vector<16x128xf32>
    %249 = arith.addf %247, %248 : vector<16x128xf32>
    %250 = arith.mulf %249, %239 : vector<16x128xf32>
    %cst_93 = arith.constant 0.254829586 : f32
    %251 = vector.broadcast %cst_93 : f32 to vector<16x128xf32>
    %252 = arith.addf %250, %251 : vector<16x128xf32>
    %253 = arith.mulf %252, %239 : vector<16x128xf32>
    %cst_94 = arith.constant 0.000000e+00 : f32
    %254 = vector.broadcast %cst_94 : f32 to vector<16x128xf32>
    %255 = arith.subf %254, %234 : vector<16x128xf32>
    %256 = arith.mulf %255, %234 : vector<16x128xf32>
    %257 = math.exp %256 : vector<16x128xf32>
    %258 = arith.mulf %253, %257 : vector<16x128xf32>
    %cst_95 = arith.constant 1.000000e+00 : f32
    %259 = vector.broadcast %cst_95 : f32 to vector<16x128xf32>
    %260 = arith.subf %259, %258 : vector<16x128xf32>
    %261 = arith.mulf %233, %260 : vector<16x128xf32>
    %262 = vector.broadcast %201 : vector<1x128xf32> to vector<16x128xf32>
    %263 = arith.subf %220, %262 : vector<16x128xf32>
    %cst_96 = arith.constant 0.707106769 : f32
    %264 = vector.broadcast %cst_96 : f32 to vector<16x128xf32>
    %265 = arith.mulf %263, %264 : vector<16x128xf32>
    %cst_97 = arith.constant 0.000000e+00 : f32
    %266 = vector.broadcast %cst_97 : f32 to vector<16x128xf32>
    %267 = arith.cmpf oge, %265, %266 : vector<16x128xf32>
    %cst_98 = arith.constant 1.000000e+00 : f32
    %cst_99 = arith.constant -1.000000e+00 : f32
    %268 = vector.broadcast %cst_98 : f32 to vector<16x128xf32>
    %269 = vector.broadcast %cst_99 : f32 to vector<16x128xf32>
    %270 = arith.select %267, %268, %269 : vector<16x128xi1>, vector<16x128xf32>
    %271 = math.absf %265 : vector<16x128xf32>
    %cst_100 = arith.constant 0.327591091 : f32
    %272 = vector.broadcast %cst_100 : f32 to vector<16x128xf32>
    %273 = arith.mulf %272, %271 : vector<16x128xf32>
    %cst_101 = arith.constant 1.000000e+00 : f32
    %274 = vector.broadcast %cst_101 : f32 to vector<16x128xf32>
    %275 = arith.addf %274, %273 : vector<16x128xf32>
    %276 = tpu.reciprocal %275 {approx = true} : vector<16x128xf32> -> vector<16x128xf32>
    %cst_102 = arith.constant 1.06140542 : f32
    %277 = vector.broadcast %cst_102 : f32 to vector<16x128xf32>
    %278 = arith.mulf %277, %276 : vector<16x128xf32>
    %cst_103 = arith.constant -1.45315206 : f32
    %279 = vector.broadcast %cst_103 : f32 to vector<16x128xf32>
    %280 = arith.addf %278, %279 : vector<16x128xf32>
    %281 = arith.mulf %280, %276 : vector<16x128xf32>
    %cst_104 = arith.constant 1.42141378 : f32
    %282 = vector.broadcast %cst_104 : f32 to vector<16x128xf32>
    %283 = arith.addf %281, %282 : vector<16x128xf32>
    %284 = arith.mulf %283, %276 : vector<16x128xf32>
    %cst_105 = arith.constant -0.284496725 : f32
    %285 = vector.broadcast %cst_105 : f32 to vector<16x128xf32>
    %286 = arith.addf %284, %285 : vector<16x128xf32>
    %287 = arith.mulf %286, %276 : vector<16x128xf32>
    %cst_106 = arith.constant 0.254829586 : f32
    %288 = vector.broadcast %cst_106 : f32 to vector<16x128xf32>
    %289 = arith.addf %287, %288 : vector<16x128xf32>
    %290 = arith.mulf %289, %276 : vector<16x128xf32>
    %cst_107 = arith.constant 0.000000e+00 : f32
    %291 = vector.broadcast %cst_107 : f32 to vector<16x128xf32>
    %292 = arith.subf %291, %271 : vector<16x128xf32>
    %293 = arith.mulf %292, %271 : vector<16x128xf32>
    %294 = math.exp %293 : vector<16x128xf32>
    %295 = arith.mulf %290, %294 : vector<16x128xf32>
    %cst_108 = arith.constant 1.000000e+00 : f32
    %296 = vector.broadcast %cst_108 : f32 to vector<16x128xf32>
    %297 = arith.subf %296, %295 : vector<16x128xf32>
    %298 = arith.mulf %270, %297 : vector<16x128xf32>
    %299 = arith.subf %261, %298 : vector<16x128xf32>
    %cst_109 = arith.constant 5.000000e-01 : f32
    %300 = vector.broadcast %cst_109 : f32 to vector<16x128xf32>
    %301 = arith.mulf %300, %299 : vector<16x128xf32>
    %cst_110 = arith.constant 1.000000e+00 : f32
    %302 = vector.broadcast %cst_110 : f32 to vector<1x128xf32>
    %303 = arith.mulf %214, %302 : vector<1x128xf32>
    %cst_111 = arith.constant 1.000000e+00 : f32
    %304 = vector.broadcast %cst_111 : f32 to vector<1x128xf32>
    %305 = arith.addf %218, %304 : vector<1x128xf32>
    %cst_112 = arith.constant 1.000000e+00 : f32
    %306 = vector.broadcast %cst_112 : f32 to vector<1x128xf32>
    %307 = arith.mulf %305, %306 : vector<1x128xf32>
    %308 = arith.subf %307, %201 : vector<1x128xf32>
    %cst_113 = arith.constant 0.707106769 : f32
    %309 = vector.broadcast %cst_113 : f32 to vector<1x128xf32>
    %310 = arith.mulf %308, %309 : vector<1x128xf32>
    %cst_114 = arith.constant 0.000000e+00 : f32
    %311 = vector.broadcast %cst_114 : f32 to vector<1x128xf32>
    %312 = arith.cmpf oge, %310, %311 : vector<1x128xf32>
    %cst_115 = arith.constant 1.000000e+00 : f32
    %cst_116 = arith.constant -1.000000e+00 : f32
    %313 = vector.broadcast %cst_115 : f32 to vector<1x128xf32>
    %314 = vector.broadcast %cst_116 : f32 to vector<1x128xf32>
    %315 = arith.select %312, %313, %314 : vector<1x128xi1>, vector<1x128xf32>
    %316 = math.absf %310 : vector<1x128xf32>
    %cst_117 = arith.constant 0.327591091 : f32
    %317 = vector.broadcast %cst_117 : f32 to vector<1x128xf32>
    %318 = arith.mulf %317, %316 : vector<1x128xf32>
    %cst_118 = arith.constant 1.000000e+00 : f32
    %319 = vector.broadcast %cst_118 : f32 to vector<1x128xf32>
    %320 = arith.addf %319, %318 : vector<1x128xf32>
    %321 = tpu.reciprocal %320 {approx = true} : vector<1x128xf32> -> vector<1x128xf32>
    %cst_119 = arith.constant 1.06140542 : f32
    %322 = vector.broadcast %cst_119 : f32 to vector<1x128xf32>
    %323 = arith.mulf %322, %321 : vector<1x128xf32>
    %cst_120 = arith.constant -1.45315206 : f32
    %324 = vector.broadcast %cst_120 : f32 to vector<1x128xf32>
    %325 = arith.addf %323, %324 : vector<1x128xf32>
    %326 = arith.mulf %325, %321 : vector<1x128xf32>
    %cst_121 = arith.constant 1.42141378 : f32
    %327 = vector.broadcast %cst_121 : f32 to vector<1x128xf32>
    %328 = arith.addf %326, %327 : vector<1x128xf32>
    %329 = arith.mulf %328, %321 : vector<1x128xf32>
    %cst_122 = arith.constant -0.284496725 : f32
    %330 = vector.broadcast %cst_122 : f32 to vector<1x128xf32>
    %331 = arith.addf %329, %330 : vector<1x128xf32>
    %332 = arith.mulf %331, %321 : vector<1x128xf32>
    %cst_123 = arith.constant 0.254829586 : f32
    %333 = vector.broadcast %cst_123 : f32 to vector<1x128xf32>
    %334 = arith.addf %332, %333 : vector<1x128xf32>
    %335 = arith.mulf %334, %321 : vector<1x128xf32>
    %cst_124 = arith.constant 0.000000e+00 : f32
    %336 = vector.broadcast %cst_124 : f32 to vector<1x128xf32>
    %337 = arith.subf %336, %316 : vector<1x128xf32>
    %338 = arith.mulf %337, %316 : vector<1x128xf32>
    %339 = math.exp %338 : vector<1x128xf32>
    %340 = arith.mulf %335, %339 : vector<1x128xf32>
    %cst_125 = arith.constant 1.000000e+00 : f32
    %341 = vector.broadcast %cst_125 : f32 to vector<1x128xf32>
    %342 = arith.subf %341, %340 : vector<1x128xf32>
    %343 = arith.mulf %315, %342 : vector<1x128xf32>
    %344 = arith.subf %303, %201 : vector<1x128xf32>
    %cst_126 = arith.constant 0.707106769 : f32
    %345 = vector.broadcast %cst_126 : f32 to vector<1x128xf32>
    %346 = arith.mulf %344, %345 : vector<1x128xf32>
    %cst_127 = arith.constant 0.000000e+00 : f32
    %347 = vector.broadcast %cst_127 : f32 to vector<1x128xf32>
    %348 = arith.cmpf oge, %346, %347 : vector<1x128xf32>
    %cst_128 = arith.constant 1.000000e+00 : f32
    %cst_129 = arith.constant -1.000000e+00 : f32
    %349 = vector.broadcast %cst_128 : f32 to vector<1x128xf32>
    %350 = vector.broadcast %cst_129 : f32 to vector<1x128xf32>
    %351 = arith.select %348, %349, %350 : vector<1x128xi1>, vector<1x128xf32>
    %352 = math.absf %346 : vector<1x128xf32>
    %cst_130 = arith.constant 0.327591091 : f32
    %353 = vector.broadcast %cst_130 : f32 to vector<1x128xf32>
    %354 = arith.mulf %353, %352 : vector<1x128xf32>
    %cst_131 = arith.constant 1.000000e+00 : f32
    %355 = vector.broadcast %cst_131 : f32 to vector<1x128xf32>
    %356 = arith.addf %355, %354 : vector<1x128xf32>
    %357 = tpu.reciprocal %356 {approx = true} : vector<1x128xf32> -> vector<1x128xf32>
    %cst_132 = arith.constant 1.06140542 : f32
    %358 = vector.broadcast %cst_132 : f32 to vector<1x128xf32>
    %359 = arith.mulf %358, %357 : vector<1x128xf32>
    %cst_133 = arith.constant -1.45315206 : f32
    %360 = vector.broadcast %cst_133 : f32 to vector<1x128xf32>
    %361 = arith.addf %359, %360 : vector<1x128xf32>
    %362 = arith.mulf %361, %357 : vector<1x128xf32>
    %cst_134 = arith.constant 1.42141378 : f32
    %363 = vector.broadcast %cst_134 : f32 to vector<1x128xf32>
    %364 = arith.addf %362, %363 : vector<1x128xf32>
    %365 = arith.mulf %364, %357 : vector<1x128xf32>
    %cst_135 = arith.constant -0.284496725 : f32
    %366 = vector.broadcast %cst_135 : f32 to vector<1x128xf32>
    %367 = arith.addf %365, %366 : vector<1x128xf32>
    %368 = arith.mulf %367, %357 : vector<1x128xf32>
    %cst_136 = arith.constant 0.254829586 : f32
    %369 = vector.broadcast %cst_136 : f32 to vector<1x128xf32>
    %370 = arith.addf %368, %369 : vector<1x128xf32>
    %371 = arith.mulf %370, %357 : vector<1x128xf32>
    %cst_137 = arith.constant 0.000000e+00 : f32
    %372 = vector.broadcast %cst_137 : f32 to vector<1x128xf32>
    %373 = arith.subf %372, %352 : vector<1x128xf32>
    %374 = arith.mulf %373, %352 : vector<1x128xf32>
    %375 = math.exp %374 : vector<1x128xf32>
    %376 = arith.mulf %371, %375 : vector<1x128xf32>
    %cst_138 = arith.constant 1.000000e+00 : f32
    %377 = vector.broadcast %cst_138 : f32 to vector<1x128xf32>
    %378 = arith.subf %377, %376 : vector<1x128xf32>
    %379 = arith.mulf %351, %378 : vector<1x128xf32>
    %380 = arith.subf %343, %379 : vector<1x128xf32>
    %cst_139 = arith.constant 5.000000e-01 : f32
    %381 = vector.broadcast %cst_139 : f32 to vector<1x128xf32>
    %382 = arith.mulf %381, %380 : vector<1x128xf32>
    %cst_140 = arith.constant 9.99999968E-21 : f32
    %383 = vector.broadcast %cst_140 : f32 to vector<1x128xf32>
    %384 = arith.maximumf %382, %383 : vector<1x128xf32>
    %385 = tpu.reciprocal %384 {approx = true} : vector<1x128xf32> -> vector<1x128xf32>
    %386 = vector.broadcast %214 : vector<1x128xf32> to vector<16x128xf32>
    %387 = arith.cmpf oge, %203, %386 : vector<16x128xf32>
    %388 = vector.broadcast %218 : vector<1x128xf32> to vector<16x128xf32>
    %389 = arith.cmpf ole, %203, %388 : vector<16x128xf32>
    %390 = arith.andi %387, %389 : vector<16x128xi1>
    %cst_141 = arith.constant 9.99999968E-21 : f32
    %391 = vector.broadcast %cst_141 : f32 to vector<1x128xf32>
    %392 = arith.cmpf ogt, %382, %391 : vector<1x128xf32>
    %393 = vector.broadcast %392 : vector<1x128xi1> to vector<16x128xi1>
    %394 = arith.andi %390, %393 : vector<16x128xi1>
    %395 = vector.broadcast %385 : vector<1x128xf32> to vector<16x128xf32>
    %396 = arith.mulf %301, %395 : vector<16x128xf32>
    %cst_142 = arith.constant 0.000000e+00 : f32
    %397 = vector.broadcast %cst_142 : f32 to vector<16x128xf32>
    %398 = arith.select %394, %396, %397 : vector<16x128xi1>, vector<16x128xf32>
    %c0_143 = arith.constant 0 : index
    %c0_144 = arith.constant 0 : index
    %399 = vector.load %arg5[%c0_143, %c0_144] : memref<16x128xf32, #tpu.memory_space<vmem>>, vector<16x128xf32>
    tpu.vector_store %arg5[%c0_143, %c0_144], %200 {strides = array<i32>} : memref<16x128xf32, #tpu.memory_space<vmem>>, vector<16x128xf32>,
    %c0_145 = arith.constant 0 : index
    %c0_146 = arith.constant 0 : index
    %400 = vector.load %arg6[%c0_145, %c0_146] : memref<16x128xf32, #tpu.memory_space<vmem>>, vector<16x128xf32>
    tpu.vector_store %arg6[%c0_145, %c0_146], %398 {strides = array<i32>} : memref<16x128xf32, #tpu.memory_space<vmem>>, vector<16x128xf32>,
    %401 = vector.shape_cast %200 : vector<16x128xf32> to vector<16x1x128xf32>
    %402 = vector.shape_cast %398 : vector<16x128xf32> to vector<1x16x128xf32>
    %403 = vector.broadcast %401 : vector<16x1x128xf32> to vector<16x16x128xf32>
    %404 = vector.broadcast %402 : vector<1x16x128xf32> to vector<16x16x128xf32>
    %405 = arith.mulf %403, %404 : vector<16x16x128xf32>
    %406 = vector.shape_cast %405 : vector<16x16x128xf32> to vector<256x128xf32>
    %407 = tpu.iota {dimensions = array<i32: 1>} : vector<128x128xi32>
    %c0_147 = arith.constant 0 : index
    %c0_148 = arith.constant 0 : index
    %408 = vector.load %arg3[%c0_147, %c0_148] : memref<128x1xi32, #tpu.memory_space<vmem>>, vector<128x1xi32>
    %409 = vector.broadcast %408 : vector<128x1xi32> to vector<128x128xi32>
    %410 = arith.cmpi eq, %407, %409 : vector<128x128xi32>
    %411 = arith.extui %410 : vector<128x128xi1> to vector<128x128xi32>
    %412 = arith.sitofp %411 : vector<128x128xi32> to vector<128x128xf32>
    %413 = arith.truncf %412 : vector<128x128xf32> to vector<128x128xbf16>
    %c0_149 = arith.constant 0 : index
    %c0_150 = arith.constant 0 : index
    %414 = vector.load %arg7[%c0_149, %c0_150] : memref<256x128xf32, #tpu.memory_space<vmem>>, vector<256x128xf32>
    %415 = arith.truncf %406 : vector<256x128xf32> to vector<256x128xbf16>
    %cst_151 = arith.constant dense<0.000000e+00> : vector<256x128xf32>
    %416 = tpu.matmul %415, %413, %cst_151 {dimension_numbers = #tpu.dot_dimension_numbers<[1], [0], [0], [1], [0, 0, 1, 1], [], []>} : vector<256x128xbf16>, vector<128x128xbf16>, vector<256x128xf32> -> vector<256x128xf32>
    %417 = arith.addf %414, %416 : vector<256x128xf32>
    %c0_152 = arith.constant 0 : index
    %c0_153 = arith.constant 0 : index
    %418 = vector.load %arg7[%c0_152, %c0_153] : memref<256x128xf32, #tpu.memory_space<vmem>>, vector<256x128xf32>
    tpu.vector_store %arg7[%c0_152, %c0_153], %417 {strides = array<i32>} : memref<256x128xf32, #tpu.memory_space<vmem>>, vector<256x128xf32>,
    %c1_i32 = arith.constant 1 : i32
    %419 = arith.cmpi eq, %arg0, %c1_i32 : i32
    %420 = arith.extui %419 : i1 to i32
    %c0_i32_154 = arith.constant 0 : i32
    %421 = arith.cmpi ne, %420, %c0_i32_154 : i32
    scf.if %421 {
      %c0_155 = arith.constant 0 : index
      %c0_156 = arith.constant 0 : index
      %422 = vector.load %arg7[%c0_155, %c0_156] : memref<256x128xf32, #tpu.memory_space<vmem>>, vector<256x128xf32>
      %cst_157 = arith.constant 2.500000e-01 : f32
      %423 = vector.broadcast %cst_157 : f32 to vector<256x128xf32>
      %424 = arith.mulf %422, %423 : vector<256x128xf32>
      %425 = math.ceil %424 : vector<256x128xf32>
      %cst_158 = arith.constant 0.000000e+00 : f32
      %426 = vector.broadcast %cst_158 : f32 to vector<256x1xf32>
      %427 = vector.extract_strided_slice %425 {offsets = [0, 0], sizes = [256, 32], strides = [1, 1]} : vector<256x128xf32> to vector<256x32xf32>
      %cst_159 = arith.constant dense<0.000000e+00> : vector<256xf32>
      %428 = vector.multi_reduction <add>, %427, %cst_159 [1] : vector<256x32xf32> to vector<256xf32>
      %429 = vector.shape_cast %428 : vector<256xf32> to vector<256x1xf32>
      %cst_160 = arith.constant 5.000000e-01 : f32
      %430 = vector.broadcast %cst_160 : f32 to vector<256x1xf32>
      %431 = arith.mulf %429, %430 : vector<256x1xf32>
      %432 = math.ceil %431 : vector<256x1xf32>
      %433 = arith.addf %426, %432 : vector<256x1xf32>
      %434 = vector.extract_strided_slice %425 {offsets = [0, 32], sizes = [256, 32], strides = [1, 1]} : vector<256x128xf32> to vector<256x32xf32>
      %cst_161 = arith.constant dense<0.000000e+00> : vector<256xf32>
      %435 = vector.multi_reduction <add>, %434, %cst_161 [1] : vector<256x32xf32> to vector<256xf32>
      %436 = vector.shape_cast %435 : vector<256xf32> to vector<256x1xf32>
      %cst_162 = arith.constant 5.000000e-01 : f32
      %437 = vector.broadcast %cst_162 : f32 to vector<256x1xf32>
      %438 = arith.mulf %436, %437 : vector<256x1xf32>
      %439 = math.ceil %438 : vector<256x1xf32>
      %440 = arith.addf %433, %439 : vector<256x1xf32>
      %441 = vector.extract_strided_slice %425 {offsets = [0, 64], sizes = [256, 32], strides = [1, 1]} : vector<256x128xf32> to vector<256x32xf32>
      %cst_163 = arith.constant dense<0.000000e+00> : vector<256xf32>
      %442 = vector.multi_reduction <add>, %441, %cst_163 [1] : vector<256x32xf32> to vector<256xf32>
      %443 = vector.shape_cast %442 : vector<256xf32> to vector<256x1xf32>
      %cst_164 = arith.constant 5.000000e-01 : f32
      %444 = vector.broadcast %cst_164 : f32 to vector<256x1xf32>
      %445 = arith.mulf %443, %444 : vector<256x1xf32>
      %446 = math.ceil %445 : vector<256x1xf32>
      %447 = arith.addf %440, %446 : vector<256x1xf32>
      %448 = vector.extract_strided_slice %425 {offsets = [0, 96], sizes = [256, 32], strides = [1, 1]} : vector<256x128xf32> to vector<256x32xf32>
      %cst_165 = arith.constant dense<0.000000e+00> : vector<256xf32>
      %449 = vector.multi_reduction <add>, %448, %cst_165 [1] : vector<256x32xf32> to vector<256xf32>
      %450 = vector.shape_cast %449 : vector<256xf32> to vector<256x1xf32>
      %cst_166 = arith.constant 5.000000e-01 : f32
      %451 = vector.broadcast %cst_166 : f32 to vector<256x1xf32>
      %452 = arith.mulf %450, %451 : vector<256x1xf32>
      %453 = math.ceil %452 : vector<256x1xf32>
      %454 = arith.addf %447, %453 : vector<256x1xf32>
      %cst_167 = arith.constant 5.000000e-01 : f32
      %455 = vector.broadcast %cst_167 : f32 to vector<256x1xf32>
      %456 = arith.mulf %454, %455 : vector<256x1xf32>
      %457 = math.ceil %456 : vector<256x1xf32>
      %cst_168 = arith.constant dense<0.000000e+00> : vector<256xf32>
      %458 = vector.multi_reduction <add>, %422, %cst_168 [1] : vector<256x128xf32> to vector<256xf32>
      %459 = vector.shape_cast %458 : vector<256xf32> to vector<256x1xf32>
      %cst_169 = arith.constant 9.99999968E-21 : f32
      %460 = vector.broadcast %cst_169 : f32 to vector<256x1xf32>
      %461 = arith.maximumf %459, %460 : vector<256x1xf32>
      %462 = tpu.reciprocal %461 {approx = true} : vector<256x1xf32> -> vector<256x1xf32>
      %cst_170 = arith.constant 0.000000e+00 : f32
      %463 = vector.broadcast %cst_170 : f32 to vector<256x1xf32>
      %464 = arith.cmpf ogt, %459, %463 : vector<256x1xf32>
      %cst_171 = arith.constant 1.600000e+01 : f32
      %465 = vector.broadcast %cst_171 : f32 to vector<256x1xf32>
      %466 = arith.mulf %465, %457 : vector<256x1xf32>
      %467 = arith.mulf %466, %462 : vector<256x1xf32>
      %cst_172 = arith.constant 0.000000e+00 : f32
      %468 = vector.broadcast %cst_172 : f32 to vector<256x1xf32>
      %469 = arith.select %464, %467, %468 : vector<256x1xi1>, vector<256x1xf32>
      %c0_173 = arith.constant 0 : index
      %c0_174 = arith.constant 0 : index
      %470 = vector.load %arg4[%c0_173, %c0_174] : memref<256x1xf32, #tpu.memory_space<vmem>>, vector<256x1xf32>
      tpu.vector_store %arg4[%c0_173, %c0_174], %469 {strides = array<i32>} : memref<256x1xf32, #tpu.memory_space<vmem>>, vector<256x1xf32>,
    } else {
    }
    return
  }
  func.func @transform_0(%arg0: i32) -> (i32, i32) {
    %c0_i32 = arith.constant 0 : i32
    %c0_i32_0 = arith.constant 0 : i32
    return %c0_i32, %arg0 : i32, i32
  }
  func.func @transform_1(%arg0: i32) -> (i32, i32) {
    %c0_i32 = arith.constant 0 : i32
    %c0_i32_0 = arith.constant 0 : i32
    return %c0_i32, %arg0 : i32, i32
  }
  func.func @transform_2(%arg0: i32) -> (i32, i32) {
    %c0_i32 = arith.constant 0 : i32
    %c0_i32_0 = arith.constant 0 : i32
    return %arg0, %c0_i32 : i32, i32
  }
  func.func @transform_3(%arg0: i32) -> (i32, i32) {
    %c0_i32 = arith.constant 0 : i32
    %c0_i32_0 = arith.constant 0 : i32
    %c0_i32_1 = arith.constant 0 : i32
    return %c0_i32, %c0_i32_0 : i32, i32
  }
  func.func @transform_4(%arg0: i32) -> (i32, i32) {
    %c0_i32 = arith.constant 0 : i32
    %c0_i32_0 = arith.constant 0 : i32
    return %c0_i32, %arg0 : i32, i32
  }
  func.func @transform_5(%arg0: i32) -> (i32, i32) {
    %c0_i32 = arith.constant 0 : i32
    %c0_i32_0 = arith.constant 0 : i32
    return %c0_i32, %arg0 : i32, i32
  }
}

</mosaic_0001>

<bundles_post_ra>
// kernel: tpu_custom_call.1
= control target key start
LH: loop header
LB: loop body
LE: loop exit
PB: predicated region body
PF: predicated region fallthrough
CT: control target
= control target key end

     0   :  { %11 = vsyncpa [#allocation4], 0  ;;  %s5739_s0 = inlined_call_operand.vmem [shape: f32[1,256], index: 0, kind: input, shape index: {}]   ;;  %s5740_s1 = inlined_call_operand.vmem [shape: f32[1,256], index: 1, kind: input, shape index: {}]   ;;  %s5741_s2 = inlined_call_operand.vmem [shape: s32[256,1], index: 2, kind: input, shape index: {}]   ;;  %s5742_s3 = inlined_call_operand.vmem [shape: f32[256,1], index: 3, kind: output, shape index: {0}]   ;;  %s5743_s4 = inlined_call_operand.hbm [shape: f32[16,256], index: 4, kind: output, shape index: {1}]   ;;  %s5744_s5 = inlined_call_operand.hbm [shape: f32[16,256], index: 5, kind: output, shape index: {2}]  }
   0x1   :  { %13 = vsyncpa [#allocation4 + $0x1], 0 }
   0x2   :  { %14 = vsyncpa [#allocation6], 0 }
   0x3   :  { %16 = vsyncpa [#allocation6 + $0x1], 0  ;;  %s3528_s18 = smov 0   ;;  %s3530_s19 = smov 0  }
   0x4   :  { %s3532_s20 = smov 0   ;;  %s3534_s21 = smov 0  }
   0x5 LB: > { %s3549_s22 = sadd.s32 4294967295, %s3483_s21   ;;  %s3050_s23 = sadd.s32 4294967294, %s3483_s21   ;;  %s3483_s21 = sphi %s3534_s21, %s5978_s21   ;;  %s3479_s20 = sphi %s3532_s20, %s5977_s20   ;;  %s3475_s19 = sphi %s3530_s19, %s5976_s19   ;;  %s3471_s18 = sphi %s3528_s18, %s5975_s18  }
   0x6   : > { %s3553_s24 = sadd.s32 1, %s3483_s21   ;;  %s128_s25 = sadd.s32 1, %s3479_s20 }
   0x7   : > { %s125_s26 = ssub.s32 %s3483_s21, %s3553_s24  ;;  %p138_p0 = scmp.ne.s32.totalorder %s3479_s20, %s3475_s19 }
   0x8   : > { %p126_p1 = scmp.eq.s32.totalorder %s125_s26, 0  ;;  %p139_p2 = scmp.eq.s32.totalorder %s3549_s22, 1 }
   0x9   : > { %p144_p3 = scmp.ne.s32.totalorder %s3475_s19, %s3471_s18  ;;  %p145_p4 = scmp.eq.s32.totalorder %s3050_s23, 1 }
   0xa   : > { %s3564_s27 = scalar_select %p126_p1, %s3479_s20, %s128_s25  }
   0xb   : > { %p3566_p5 = por %p139_p2, %p138_p0  ;;  %p3570_p6 = por %p145_p4, %p144_p3 }
   0xc   : > { %p3053_p7 = scmp.ge.s32.totalorder %s3483_s21, 1  ;;  %p210_p8 = scmp.lt.s32.totalorder %s3483_s21, 3 }
   0xe   : > { %p211_p9 = pnand %p3053_p7, %p210_p8 }
   0xf   : > { %s3577_s30 = sand.u32 (!%p211_p9), 1, %s3475_s19   ;;  %p249_p10 = scmp.lt.s32.totalorder (!%p211_p9), %s3549_s22, 1 }
  0x10   : > { %214 = sbr.rel (%p211_p9) target bundleno = 1439 (0x59f), region = 32  ;;  %s3054_s6 = sshll.u32 (!%p211_p9), %s3577_s30, 4 }
  0x11   : > { %s3056_s7 = sshll.u32 (!%p211_p9), %s3549_s22, 4  ;;  %s3598_s25 = scalar_lea.vmem (!%p211_p9), [#allocation3], %s3054_s6 }
  0x12   : > { %p256_p11 = scmp.lt.s32.totalorder (!%p211_p9), %s3056_s7, 31  ;;  %s3600_s26 = scalar_lea.vmem (!%p211_p9), [#allocation5], %s3054_s6 }
  0x13   : > { %p3058_p12 = scmp.ne.s32.totalorder (!%p211_p9), %s3549_s22, 0 }
  0x17   : > { %s3583_s8 = scalar_select %p249_p10, %s3549_s22, 1 }
  0x18   : > { %s5980_s7 = smov (!%p256_p11, %s3056_s7), 31  ;;  %265 = sbr.rel (%p3058_p12) target bundleno = 58 (0x3a), region = 36 }
  0x19   : > { %s251_s11 = scalar_lea.vmem %s5739_s0, %s3583_s8  ;;  %s254_s14 = scalar_lea.vmem %s5740_s1, %s3583_s8  ;;  %vm298_vm0 = vcmask (!%p3058_p12), 7168   ;;  %v3485_v0 = vmov (!%p3058_p12), 0.0  }
  0x1a   : > { %s3057_s15 = sshll.u32 %s5980_s7, 3  ;;  %266 = vst [vmem:[#allocation2] sm:$0xff] (!%p3058_p12), %v3485_v0  ;;  %267 = vst [vmem:[#allocation2 + $0x8] sm:$0xff] (!%p3058_p12), %v3485_v0 }
  0x1b   : > { %s3596_s23 = scalar_lea.vmem %s5741_s2, %s3057_s15  ;;  %268 = vst [vmem:[#allocation2 + $0x10] sm:$0xff] (!%p3058_p12), %v3485_v0  ;;  %269 = vst [vmem:[#allocation2 + $0x18] sm:$0xff] (!%p3058_p12), %v3485_v0 }
  0x1c   : > { %270 = vst [vmem:[#allocation2 + $0x20] sm:$0xff] (!%p3058_p12), %v3485_v0  ;;  %271 = vst [vmem:[#allocation2 + $0x28] sm:$0xff] (!%p3058_p12), %v3485_v0 }
  0x1d   : > { %272 = vst [vmem:[#allocation2 + $0x30] sm:$0xff] (!%p3058_p12), %v3485_v0  ;;  %273 = vst [vmem:[#allocation2 + $0x38] sm:$0xff] (!%p3058_p12), %v3485_v0 }
  0x1e   : > { %274 = vst [vmem:[#allocation2 + $0x40] sm:$0xff] (!%p3058_p12), %v3485_v0  ;;  %275 = vst [vmem:[#allocation2 + $0x48] sm:$0xff] (!%p3058_p12), %v3485_v0 }
  0x1f   : > { %276 = vst [vmem:[#allocation2 + $0x50] sm:$0xff] %v3485_v0  ;;  %277 = vst [vmem:[#allocation2 + $0x58] sm:$0xff] %v3485_v0 }
  0x20   : > { %278 = vst [vmem:[#allocation2 + $0x60] sm:$0xff] %v3485_v0  ;;  %279 = vst [vmem:[#allocation2 + $0x68] sm:$0xff] %v3485_v0 }
  0x21   : > { %280 = vst [vmem:[#allocation2 + $0x70] sm:$0xff] %v3485_v0  ;;  %281 = vst [vmem:[#allocation2 + $0x78] sm:$0xff] %v3485_v0 }
  0x22   : > { %282 = vst [vmem:[#allocation2 + $0x80] sm:$0xff] %v3485_v0  ;;  %283 = vst [vmem:[#allocation2 + $0x88] sm:$0xff] %v3485_v0 }
  0x23   : > { %284 = vst [vmem:[#allocation2 + $0x90] sm:$0xff] %v3485_v0  ;;  %285 = vst [vmem:[#allocation2 + $0x98] sm:$0xff] %v3485_v0 }
  0x24   : > { %286 = vst [vmem:[#allocation2 + $0xa0] sm:$0xff] %v3485_v0  ;;  %287 = vst [vmem:[#allocation2 + $0xa8] sm:$0xff] %v3485_v0 }
  0x25   : > { %288 = vst [vmem:[#allocation2 + $0xb0] sm:$0xff] %v3485_v0  ;;  %289 = vst [vmem:[#allocation2 + $0xb8] sm:$0xff] %v3485_v0 }
  0x26   : > { %290 = vst [vmem:[#allocation2 + $0xc0] sm:$0xff] %v3485_v0  ;;  %291 = vst [vmem:[#allocation2 + $0xc8] sm:$0xff] %v3485_v0 }
  0x27   : > { %292 = vst [vmem:[#allocation2 + $0xd0] sm:$0xff] %v3485_v0  ;;  %293 = vst [vmem:[#allocation2 + $0xd8] sm:$0xff] %v3485_v0 }
  0x28   : > { %294 = vst [vmem:[#allocation2 + $0xe0] sm:$0xff] %v3485_v0  ;;  %295 = vst [vmem:[#allocation2 + $0xe8] sm:$0xff] %v3485_v0 }
  0x29   : > { %296 = vst [vmem:[#allocation2 + $0xf0] sm:$0xff] %v3485_v0  ;;  %297 = vst [vmem:[#allocation2 + $0xf8] sm:$0xff] %v3485_v0 }
  0x2a   : > { %299 = vst.msk [vmem:[%s5742_s3] sm:$0xff] %vm298_vm0, %v3485_v0  ;;  %300 = vst.msk [vmem:[%s5742_s3 + $0x8] sm:$0xff] %vm298_vm0, %v3485_v0 }
  0x2b   : > { %301 = vst.msk [vmem:[%s5742_s3 + $0x10] sm:$0xff] %vm298_vm0, %v3485_v0  ;;  %302 = vst.msk [vmem:[%s5742_s3 + $0x18] sm:$0xff] %vm298_vm0, %v3485_v0 }
  0x2c   : > { %303 = vst.msk [vmem:[%s5742_s3 + $0x20] sm:$0xff] %vm298_vm0, %v3485_v0  ;;  %304 = vst.msk [vmem:[%s5742_s3 + $0x28] sm:$0xff] %vm298_vm0, %v3485_v0 }
  0x2d   : > { %305 = vst.msk [vmem:[%s5742_s3 + $0x30] sm:$0xff] %vm298_vm0, %v3485_v0  ;;  %306 = vst.msk [vmem:[%s5742_s3 + $0x38] sm:$0xff] %vm298_vm0, %v3485_v0 }
  0x2e   : > { %307 = vst.msk [vmem:[%s5742_s3 + $0x40] sm:$0xff] %vm298_vm0, %v3485_v0  ;;  %308 = vst.msk [vmem:[%s5742_s3 + $0x48] sm:$0xff] %vm298_vm0, %v3485_v0 }
  0x2f   : > { %309 = vst.msk [vmem:[%s5742_s3 + $0x50] sm:$0xff] %vm298_vm0, %v3485_v0  ;;  %310 = vst.msk [vmem:[%s5742_s3 + $0x58] sm:$0xff] %vm298_vm0, %v3485_v0 }
  0x30   : > { %311 = vst.msk [vmem:[%s5742_s3 + $0x60] sm:$0xff] %vm298_vm0, %v3485_v0  ;;  %312 = vst.msk [vmem:[%s5742_s3 + $0x68] sm:$0xff] %vm298_vm0, %v3485_v0 }
  0x31   : > { %313 = vst.msk [vmem:[%s5742_s3 + $0x70] sm:$0xff] %vm298_vm0, %v3485_v0  ;;  %314 = vst.msk [vmem:[%s5742_s3 + $0x78] sm:$0xff] %vm298_vm0, %v3485_v0 }
  0x32   : > { %315 = vst.msk [vmem:[%s5742_s3 + $0x80] sm:$0xff] %vm298_vm0, %v3485_v0  ;;  %316 = vst.msk [vmem:[%s5742_s3 + $0x88] sm:$0xff] %vm298_vm0, %v3485_v0 }
  0x33   : > { %317 = vst.msk [vmem:[%s5742_s3 + $0x90] sm:$0xff] %vm298_vm0, %v3485_v0  ;;  %318 = vst.msk [vmem:[%s5742_s3 + $0x98] sm:$0xff] %vm298_vm0, %v3485_v0 }
  0x34   : > { %319 = vst.msk [vmem:[%s5742_s3 + $0xa0] sm:$0xff] %vm298_vm0, %v3485_v0  ;;  %320 = vst.msk [vmem:[%s5742_s3 + $0xa8] sm:$0xff] %vm298_vm0, %v3485_v0 }
  0x35   : > { %321 = vst.msk [vmem:[%s5742_s3 + $0xb0] sm:$0xff] %vm298_vm0, %v3485_v0  ;;  %322 = vst.msk [vmem:[%s5742_s3 + $0xb8] sm:$0xff] %vm298_vm0, %v3485_v0 }
  0x36   : > { %323 = vst.msk [vmem:[%s5742_s3 + $0xc0] sm:$0xff] %vm298_vm0, %v3485_v0  ;;  %324 = vst.msk [vmem:[%s5742_s3 + $0xc8] sm:$0xff] %vm298_vm0, %v3485_v0 }
  0x37   : > { %325 = vst.msk [vmem:[%s5742_s3 + $0xd0] sm:$0xff] %vm298_vm0, %v3485_v0  ;;  %326 = vst.msk [vmem:[%s5742_s3 + $0xd8] sm:$0xff] %vm298_vm0, %v3485_v0 }
  0x38   : > { %327 = vst.msk [vmem:[%s5742_s3 + $0xe0] sm:$0xff] %vm298_vm0, %v3485_v0  ;;  %328 = vst.msk [vmem:[%s5742_s3 + $0xe8] sm:$0xff] %vm298_vm0, %v3485_v0 }
  0x39   : > { %329 = vst.msk [vmem:[%s5742_s3 + $0xf0] sm:$0xff] %vm298_vm0, %v3485_v0  ;;  %330 = vst.msk [vmem:[%s5742_s3 + $0xf8] sm:$0xff] %vm298_vm0, %v3485_v0 }
  0x3a PF: > { %v542_v1 = vld [vmem:[%s254_s14] sm:$0x1]  ;;  %v332_v2 = vlaneseq  ;;  %v3486_v4 = vmov 0   ;;  %v966_v6 = vld [vmem:[%s3596_s23 + $0x10] sm:$0xff]  ;;  %v967_v11 = vld [vmem:[%s3596_s23 + $0x18] sm:$0xff]  ;;  %p3093_p13 = scmp.ne.s32.totalorder %s3549_s22, 1 }
  0x3b   : > { %v543_v3 = vfloor.f32 %v542_v1  ;;  %3244 = vset.pattern.permute.xlu1 %v3486_v4  ;;  %v3806_v5 = vld [vmem:[%s251_s11] sm:$0x1]  ;;  %3243 = vset.pattern.permute.xlu0 %v3486_v4  ;;  %v965_v12 = vld [vmem:[%s3596_s23 + $0x8] sm:$0xff]  ;;  %v971_v32 = vld [vmem:[%s3596_s23 + $0x38] sm:$0xff] }
  0x3c   : > { %v964_v7 = vld [vmem:[%s3596_s23] sm:$0xff]  ;;  %v337_v8 = vfloor.f32 %v3806_v5  ;;  %987 = vperm.xlu1 %3244, %v966_v6   ;;  %v3813_v10 = vshrl.u32 %v332_v2, 7  ;;  %v969_v19 = vld [vmem:[%s3596_s23 + $0x28] sm:$0xff]  ;;  %v970_v33 = vld [vmem:[%s3596_s23 + $0x30] sm:$0xff] }
  0x3d   : > { %981 = vperm.xlu0 %3243, %v964_v7   ;;  %v544_v9 = vmax.f32 %v543_v3, 0.0  ;;  %v968_v20 = vld [vmem:[%s3596_s23 + $0x20] sm:$0xff]  ;;  %v973_v44 = vld [vmem:[%s3596_s23 + $0x48] sm:$0xff]  ;;  %v975_v62 = vld [vmem:[%s3596_s23 + $0x58] sm:$0xff] }
  0x3e   : > { %v338_v13 = vmax.f32 %v337_v8, 0.0  ;;  %v334_v18 = vadd.s32 8, %v3813_v10  ;;  %v3827_v25 = vcvt.s32.f32 %v3813_v10  ;;  %v3830_v28 = vsub.s32 0, %v3813_v10  ;;  %v972_v48 = vld [vmem:[%s3596_s23 + $0x40] sm:$0xff]  ;;  %v974_v63 = vld [vmem:[%s3596_s23 + $0x50] sm:$0xff] }
  0x3f   : > { %v545_v14 = vmin.f32 %v544_v9, 15.0 }
  0x40   : > { %v339_v15 = vmin.f32 %v338_v13, 15.0  ;;  %990 = vperm.xlu1 %3244, %v967_v11   ;;  %v3836_v31 = vcvt.s32.f32 %v334_v18  ;;  %v3846_v40 = vadd.f32 1.0, %v3827_v25  ;;  %v554_v41 = vrot.slane %v542_v1, %v3830_v28  ;;  %v976_v13 = vld [vmem:[%s3596_s23 + $0x60] sm:$0xff] }
  0x41   : > { %984 = vperm.xlu0 %3243, %v965_v12   ;;  %v3817_v16 = vadd.f32 -2.0, %v545_v14  ;;  %v3819_v17 = vadd.f32 2.0, %v545_v14  ;;  %v977_v12 = vld [vmem:[%s3596_s23 + $0x68] sm:$0xff] }
  0x42   : > { %v3059_v21 = vadd.f32 -2.0, %v339_v15  ;;  %v342_v22 = vadd.f32 2.0, %v339_v15  ;;  %v3859_v47 = vadd.f32 1.0, %v3836_v31  ;;  %v556_v55 = vsub.f32 %v3846_v40, %v554_v41 }
  0x43   : > { %v547_v23 = vmax.f32 %v3817_v16, 0.0  ;;  %v549_v24 = vmin.f32 %v3819_v17, 15.0  ;;  %v604_v59 = vsub.f32 %v3827_v25, %v554_v41  ;;  %v605_v9 = vsub.f32 %v3836_v31, %v554_v41 }
  0x44   : > { %v341_v26 = vmax.f32 %v3059_v21, 0.0  ;;  %v343_v27 = vmin.f32 %v342_v22, 15.0  ;;  %996 = vperm.xlu1 %3244, %v969_v19   ;;  %v557_v56 = vsub.f32 %v3859_v47, %v554_v41  ;;  %v3887_v6 = vmul.f32 0.70710677, %v556_v55  ;;  %v979_v21 = vld [vmem:[%s3596_s23 + $0x78] sm:$0xff] }
  0x45   : > { %993 = vperm.xlu0 %3243, %v968_v20   ;;  %v656_v29 = vadd.f32 1.0, %v549_v24  ;;  %v681_v30 = vsub.f32 %v547_v23, %v542_v1  ;;  %v3892_v11 = vmul.f32 0.70710677, %v604_v59  ;;  %v3898_v19 = vmul.f32 0.70710677, %v605_v9 }
  0x46   : > { %v452_v34 = vadd.f32 1.0, %v343_v27  ;;  %v477_v35 = vsub.f32 %v341_v26, %v3806_v5  ;;  %v509_v36 = vrot.slane %v341_v26, %v3830_v28  ;;  %v517_v37 = vrot.slane %v343_v27, %v3830_v28 }
  0x47   : > { %v657_v38 = vsub.f32 %v656_v29, %v542_v1  ;;  %v3843_v39 = vmul.f32 0.70710677, %v681_v30  ;;  %v3889_v7 = vmul.f32 0.70710677, %v557_v56  ;;  %v564_v15 = vand.u32 2147483647, %v3887_v6 }
  0x48   : > { %v453_v42 = vsub.f32 %v452_v34, %v3806_v5  ;;  %v3850_v43 = vmul.f32 0.70710677, %v477_v35  ;;  %vm511_vm1 = vcmp.ge.f32.partialorder %v3827_v25, %v509_v36  ;;  %vm512_vm2 = vcmp.ge.f32.partialorder %v3836_v31, %v509_v36  ;;  %1002 = vperm.xlu1 %3244, %v971_v32   ;;  %v978_v29 = vld [vmem:[%s3596_s23 + $0x70] sm:$0xff] }
  0x49   : > { %999 = vperm.xlu0 %3243, %v970_v33   ;;  %v3855_v45 = vmul.f32 0.70710677, %v657_v38  ;;  %v685_v46 = vand.u32 2147483647, %v3843_v39  ;;  %vm519_vm3 = vcmp.le.f32.partialorder %v3827_v25, %v517_v37  ;;  %vm520_vm4 = vcmp.le.f32.partialorder %v3836_v31, %v517_v37 }
  0x4a   : > { %v3863_v49 = vmul.f32 0.70710677, %v453_v42  ;;  %v3866_v50 = vand.u32 2147483647, %v3850_v43  ;;  %vm3869_vm5 = vmand %vm511_vm1, %vm519_vm3  ;;  %v565_v18 = vand.u32 2147483647, %v3889_v7  ;;  %v3905_v35 = vrot.slane %v3806_v5, %v3830_v28 }
  0x4b   : > { %v661_v52 = vand.u32 2147483647, %v3855_v45  ;;  %v686_v53 = vmul.f32 0.3275911, %v685_v46  ;;  %vm3876_vm6 = vmand %vm512_vm2, %vm520_vm4  ;;  %v698_v14 = vsub.f32 0.0, %v685_v46  ;;  %vm560_vm7 = vcmp.ge.f32.partialorder %v3887_v6, 0.0 }
  0x4c   : > { %v457_v57 = vand.u32 2147483647, %v3863_v49  ;;  %v482_v58 = vmul.f32 0.3275911, %v3866_v50  ;;  %1008 = vperm.xlu1 %3244, %v973_v44   ;;  %v612_v20 = vand.u32 2147483647, %v3892_v11  ;;  %v721_v16 = vrot.slane %v549_v24, %v3830_v28 }
  0x4d   : > { %1005 = vperm.xlu0 %3243, %v972_v48   ;;  %v662_v60 = vmul.f32 0.3275911, %v661_v52  ;;  %v687_v61 = vadd.f32 1.0, %v686_v53  ;;  %v674_v22 = vsub.f32 0.0, %v661_v52  ;;  %v566_v26 = vmul.f32 0.3275911, %v564_v15 }
  0x4e   : > { %v458_v0 = vmul.f32 0.3275911, %v457_v57  ;;  %v483_v1 = vadd.f32 1.0, %v482_v58  ;;  %v567_v27 = vmul.f32 0.3275911, %v565_v18  ;;  %v699_v30 = vmul.f32 %v698_v14, %v685_v46 }
  0x4f   : > { %v663_v3 = vadd.f32 1.0, %v662_v60  ;;  %3245 = vrcp.f32 %v687_v61  ;;  %v470_v32 = vsub.f32 0.0, %v457_v57  ;;  %v568_v33 = vadd.f32 1.0, %v566_v26 }
  0x50   : > { %v459_v8 = vadd.f32 1.0, %v458_v0  ;;  %3247 = vrcp.f32 %v483_v1  ;;  %1014 = vperm.xlu1 %3244, %v975_v62   ;;  %v569_v34 = vadd.f32 1.0, %v567_v27  ;;  %v613_v36 = vand.u32 2147483647, %v3898_v19 }
  0x51   : > { %1011 = vperm.xlu0 %3243, %v974_v63   ;;  %3249 = vrcp.f32 %v663_v3  ;;  %v614_v37 = vmul.f32 0.3275911, %v612_v20  ;;  %v675_v41 = vmul.f32 %v674_v22, %v661_v52  ;;  %v590_v42 = vsub.f32 0.0, %v564_v15 }
  0x52   : > { %3251 = vrcp.f32 %v459_v8  ;;  %vm683_vm8 = vcmp.ge.f32.partialorder %v3843_v39, 0.0  ;;  %v591_v5 = vsub.f32 0.0, %v565_v18  ;;  %v615_v48 = vmul.f32 0.3275911, %v613_v36 }
  0x53   : > { %3253 = vrcp.f32 %v568_v33  ;;  %v700_v55 = vmul.f32 1.442695, %v699_v30  ;;  %v471_v56 = vmul.f32 %v470_v32, %v457_v57  ;;  %v616_v52 = vadd.f32 1.0, %v614_v37 }
  0x54   : > { %1020 = vperm.xlu1 %3244, %v977_v12   ;;  %3255 = vrcp.f32 %v569_v34  ;;  %v494_v61 = vsub.f32 0.0, %v3866_v50  ;;  %v617_v62 = vadd.f32 1.0, %v615_v48  ;;  %v676_v63 = vmul.f32 1.442695, %v675_v41 }
  0x55   : > { %1017 = vperm.xlu0 %3243, %v976_v13   ;;  %v592_v0 = vmul.f32 %v590_v42, %v564_v15  ;;  %3257 = vrcp.f32 %v616_v52  ;;  %v638_v1 = vsub.f32 0.0, %v612_v20  ;;  %v593_v12 = vmul.f32 %v591_v5, %v565_v18 }
  0x56   : > { %3259 = vrcp.f32 %v617_v62  ;;  %v639_v14 = vsub.f32 0.0, %v613_v36  ;;  %v495_v26 = vmul.f32 %v494_v61, %v3866_v50  ;;  %vm561_vm9 = vcmp.ge.f32.partialorder %v3889_v7, 0.0 }
  0x57   : > { %3261 = vpow2.f32 %v700_v55  ;;  %v3487_v15 = vmov -1.0   ;;  %v594_v18 = vmul.f32 1.442695, %v592_v0  ;;  %v3933_v33 = vmul.f32 1.442695, %v471_v56 }
  0x58   : > { %1026 = vperm.xlu1 %3244, %v979_v21   ;;  %3263 = vpow2.f32 %v676_v63  ;;  %v3930_v27 = vsel %vm560_vm7, 1.0, %v3487_v15  ;;  %v596_v34 = vmul.f32 1.442695, %v593_v12  ;;  %v3939_v41 = vsel %vm561_vm9, 1.0, %v3487_v15 }
  0x59   : > { %1023 = vperm.xlu0 %3243, %v978_v29   ;;  %v3908_v38 = vpop.eup %3245  ;;  %v640_v29 = vmul.f32 %v638_v1, %v612_v20  ;;  %v641_v42 = vmul.f32 %v639_v14, %v613_v36  ;;  %vm659_vm10 = vcmp.ge.f32.partialorder %v3855_v45, 0.0  ;;  %v3945_v5 = vmul.f32 1.442695, %v495_v26 }
  0x5a   : > { %v3911_v44 = vpop.eup %3247  ;;  %v689_v46 = vmul.f32 1.0614054, %v3908_v38  ;;  %3265 = vpow2.f32 %v594_v18  ;;  %vm608_vm11 = vcmp.ge.f32.partialorder %v3892_v11, 0.0  ;;  %vm609_vm12 = vcmp.ge.f32.partialorder %v3898_v19, 0.0 }
  0x5b   : > { %v3915_v53 = vpop.eup %3249  ;;  %v485_v58 = vmul.f32 1.0614054, %v3911_v44  ;;  %v642_v56 = vmul.f32 1.442695, %v640_v29  ;;  %3267 = vpow2.f32 %v596_v34  ;;  %v644_v0 = vmul.f32 1.442695, %v641_v42 }
  0x5c   : > { %v665_v59 = vmul.f32 1.0614054, %v3915_v53  ;;  %v690_v60 = vadd.f32 -1.4531521, %v689_v46  ;;  %v3920_v3 = vpop.eup %3251  ;;  %v401_v17 = vsub.f32 %v3836_v31, %v3905_v35  ;;  %vm723_vm0 = vcmp.le.f32.partialorder %v3827_v25, %v721_v16 }
  0x5d   : > { %v461_v57 = vmul.f32 1.0614054, %v3920_v3  ;;  %v486_v13 = vadd.f32 -1.4531521, %v485_v58  ;;  %v3935_v37 = vpop.eup %3253  ;;  %v684_v58 = vsel %vm683_vm8, 1.0, %v3487_v15  ;;  %3269 = vpow2.f32 %v642_v56 }
  0x5e   : > { %v666_v8 = vadd.f32 -1.4531521, %v665_v59  ;;  %v691_v9 = vmul.f32 %v3908_v38, %v690_v60  ;;  %v3941_v6 = vpop.eup %3255  ;;  %v572_v48 = vmul.f32 1.0614054, %v3935_v37  ;;  %3271 = vpow2.f32 %v644_v0 }
  0x5f   : > { %v462_v50 = vadd.f32 -1.4531521, %v461_v57  ;;  %v487_v7 = vmul.f32 %v3911_v44, %v486_v13  ;;  %v573_v55 = vmul.f32 1.0614054, %v3941_v6  ;;  %v3953_v60 = vpop.eup %3257  ;;  %3273 = vpow2.f32 %v3933_v33 }
  0x60   : > { %v667_v21 = vmul.f32 %v3915_v53, %v666_v8  ;;  %v692_v22 = vadd.f32 1.4214138, %v691_v9  ;;  %v574_v59 = vadd.f32 -1.4531521, %v572_v48  ;;  %v3956_v1 = vpop.eup %3259  ;;  %v620_v12 = vmul.f32 1.0614054, %v3953_v60 }
  0x61   : > { %v463_v61 = vmul.f32 %v3920_v3, %v462_v50  ;;  %v488_v62 = vadd.f32 1.4214138, %v487_v7  ;;  %v575_v63 = vadd.f32 -1.4531521, %v573_v55  ;;  %v3262_v57 = vpop.eup %3261  ;;  %v621_v14 = vmul.f32 1.0614054, %v3956_v1 }
  0x62   : > { %v668_v30 = vadd.f32 1.4214138, %v667_v21  ;;  %v693_v32 = vmul.f32 %v3908_v38, %v692_v22  ;;  %v576_v39 = vmul.f32 %v3935_v37, %v574_v59  ;;  %v352_v21 = vsub.f32 %v3846_v40, %v3905_v35 }
  0x63   : > { %v577_v13 = vmul.f32 %v3941_v6, %v575_v63  ;;  %v622_v29 = vadd.f32 -1.4531521, %v620_v12  ;;  %v623_v50 = vadd.f32 -1.4531521, %v621_v14  ;;  %v489_v40 = vmul.f32 %v3911_v44, %v488_v62 }
  0x64   : > { %v669_v20 = vmul.f32 %v3915_v53, %v668_v30  ;;  %v694_v46 = vadd.f32 -0.28449672, %v693_v32  ;;  %v578_v18 = vadd.f32 1.4214138, %v576_v39  ;;  %v3264_v30 = vpop.eup %3263  ;;  %v464_v32 = vadd.f32 1.4214138, %v463_v61 }
  0x65   : > { %v579_v34 = vadd.f32 1.4214138, %v577_v13  ;;  %v625_v48 = vmul.f32 %v3956_v1, %v623_v50  ;;  %v3973_v55 = vmul.f32 0.70710677, %v352_v21  ;;  %v3266_v61 = vpop.eup %3265  ;;  %v490_v13 = vadd.f32 -0.28449672, %v489_v40 }
  0x66   : > { %v670_v36 = vadd.f32 -0.28449672, %v669_v20  ;;  %v695_v52 = vmul.f32 %v3908_v38, %v694_v46  ;;  %v580_v20 = vmul.f32 %v3935_v37, %v578_v18  ;;  %v624_v46 = vmul.f32 %v3953_v60, %v622_v29  ;;  %v3268_v62 = vpop.eup %3267 }
  0x67   : > { %v627_v0 = vadd.f32 1.4214138, %v625_v48  ;;  %v3985_v45 = vand.u32 2147483647, %v3973_v55  ;;  %v3270_v29 = vpop.eup %3269  ;;  %3275 = vpow2.f32 %v3945_v5  ;;  %v491_v40 = vmul.f32 %v3911_v44, %v490_v13 }
  0x68   : > { %v671_v8 = vmul.f32 %v3915_v53, %v670_v36  ;;  %v696_v9 = vadd.f32 0.2548296, %v695_v52  ;;  %v582_v52 = vadd.f32 -0.28449672, %v580_v20  ;;  %v626_v59 = vadd.f32 1.4214138, %v624_v46 }
  0x69   : > { %v629_v21 = vmul.f32 %v3956_v1, %v627_v0  ;;  %v610_v46 = vsel %vm608_vm11, 1.0, %v3487_v15  ;;  %vm724_vm1 = vcmp.le.f32.partialorder %v3836_v31, %v721_v16  ;;  %vm479_vm2 = vcmp.ge.f32.partialorder %v3850_v43, 0.0 }
  0x6a   : > { %v672_v22 = vadd.f32 0.2548296, %v671_v8  ;;  %v697_v26 = vmul.f32 %v3908_v38, %v696_v9  ;;  %v581_v38 = vmul.f32 %v3941_v6, %v579_v34  ;;  %v660_v8 = vsel %vm659_vm10, 1.0, %v3487_v15 }
  0x6b   : > { %v584_v39 = vmul.f32 %v3935_v37, %v582_v52  ;;  %v628_v12 = vmul.f32 %v3953_v60, %v626_v59  ;;  %v631_v34 = vadd.f32 -0.28449672, %v629_v21  ;;  %vm455_vm9 = vcmp.ge.f32.partialorder %v3863_v49, 0.0 }
  0x6c   : > { %v673_v7 = vmul.f32 %v3915_v53, %v672_v22  ;;  %v702_v42 = vmul.f32 %v3262_v57, %v697_v26  ;;  %v465_v53 = vmul.f32 %v3920_v3, %v464_v32  ;;  %v583_v63 = vadd.f32 -0.28449672, %v581_v38 }
  0x6d   : > { %v586_v22 = vadd.f32 0.2548296, %v584_v39  ;;  %v630_v26 = vadd.f32 -0.28449672, %v628_v12  ;;  %v633_v5 = vmul.f32 %v3956_v1, %v631_v34  ;;  %v353_v39 = vsub.f32 %v3859_v47, %v3905_v35 }
  0x6e   : > { %v678_v56 = vmul.f32 %v3264_v30, %v673_v7  ;;  %v703_v36 = vsub.f32 1.0, %v702_v42  ;;  %v585_v14 = vmul.f32 %v3941_v6, %v583_v63  ;;  %v466_v30 = vadd.f32 -0.28449672, %v465_v53  ;;  %v3272_v42 = vpop.eup %3271 }
  0x6f   : > { %v632_v33 = vmul.f32 %v3953_v60, %v630_v26  ;;  %v362_v7 = vmul.f32 0.3275911, %v3985_v45  ;;  %v635_v52 = vadd.f32 0.2548296, %v633_v5  ;;  %v492_v12 = vadd.f32 0.2548296, %v491_v40 }
  0x70   : > { %v679_v9 = vsub.f32 1.0, %v678_v56  ;;  %v704_v57 = vmul.f32 %v703_v36, %v684_v58  ;;  %v587_v32 = vadd.f32 0.2548296, %v585_v14  ;;  %v588_v58 = vmul.f32 %v3935_v37, %v586_v22 }
  0x71   : > { %v634_v37 = vadd.f32 0.2548296, %v632_v33  ;;  %v467_v56 = vmul.f32 %v3920_v3, %v466_v30  ;;  %v364_v59 = vadd.f32 1.0, %v362_v7  ;;  %v637_v11 = vmul.f32 %v3956_v1, %v635_v52 }
  0x72   : > { %v680_v18 = vmul.f32 %v679_v9, %v660_v8  ;;  %v589_v20 = vmul.f32 %v3941_v6, %v587_v32  ;;  %v598_v38 = vmul.f32 %v3266_v61, %v588_v58  ;;  %v713_v8 = vrot.slane %v547_v23, %v3830_v28 }
  0x73   : > { %v636_v6 = vmul.f32 %v3953_v60, %v634_v37  ;;  %v400_v61 = vsub.f32 %v3827_v25, %v3905_v35  ;;  %v3274_v60 = vpop.eup %3273  ;;  %v611_v1 = vsel %vm609_vm12, 1.0, %v3487_v15  ;;  %v468_v23 = vadd.f32 0.2548296, %v467_v56 }
  0x74   : > { %v705_v50 = vsub.f32 %v680_v18, %v704_v57  ;;  %v599_v36 = vmul.f32 %v3268_v62, %v589_v20  ;;  %v600_v53 = vsub.f32 1.0, %v598_v38  ;;  %v647_v57 = vmul.f32 %v3272_v42, %v637_v11  ;;  %v3276_v21 = vpop.eup %3275 }
  0x75   : > { %v646_v9 = vmul.f32 %v3270_v29, %v636_v6  ;;  %vm715_vm14 = vcmp.ge.f32.partialorder %v3827_v25, %v713_v8  ;;  %v4019_v18 = vmul.f32 0.70710677, %v400_v61  ;;  %v4021_v29 = vmul.f32 0.70710677, %v353_v39 }
  0x76   : > { %v706_v48 = vmul.f32 0.5, %v705_v50  ;;  %v601_v0 = vsub.f32 1.0, %v599_v36  ;;  %v602_v13 = vmul.f32 %v600_v53, %v3930_v27  ;;  %v649_v47 = vsub.f32 1.0, %v647_v57  ;;  %vm4035_vm3 = vmand %vm715_vm14, %vm723_vm0 }
  0x77   : > { %v648_v14 = vsub.f32 1.0, %v646_v9  ;;  %v493_v24 = vmul.f32 %v3911_v44, %v492_v12  ;;  %vm716_vm15 = vcmp.ge.f32.partialorder %v3836_v31, %v713_v8  ;;  %v408_v32 = vand.u32 2147483647, %v4019_v18 }
  0x78   : > { %v707_v63 = vmax.f32 %v706_v48, 1e-20  ;;  %vm727_vm13 = vcmp.gt.f32.partialorder %v706_v48, 1e-20  ;;  %v603_v22 = vmul.f32 %v601_v0, %v3939_v41  ;;  %v651_v27 = vmul.f32 %v649_v47, %v611_v1  ;;  %vm4047_vm7 = vmand %vm716_vm15, %vm724_vm1 }
  0x79   : > { %v728_v62 = vsel %vm727_vm13, 1, %v3486_v4  ;;  %v650_v19 = vmul.f32 %v648_v14, %v610_v46  ;;  %v469_v41 = vmul.f32 %v3920_v3, %v468_v23  ;;  %v361_v58 = vand.u32 2147483647, %v4021_v29 }
  0x7a   : > { %3277 = vrcp.f32 %v707_v63  ;;  %v732_v26 = vrot.slane %v728_v62, %v3830_v28  ;;  %v653_v34 = vsub.f32 %v603_v22, %v651_v27  ;;  %v410_v3 = vmul.f32 0.3275911, %v408_v32 }
  0x7b   : > { %3279 = vrcp.f32 %v364_v59  ;;  %v652_v30 = vsub.f32 %v602_v13, %v650_v19  ;;  %v4043_v33 = vmul.f32 0.70710677, %v401_v17  ;;  %v498_v50 = vmul.f32 %v3276_v21, %v493_v24 }
  0x7c   : > { %vm4039_vm4 = vcmp.eq.s32.totalorder %v732_v26, 1  ;;  %v655_v42 = vmul.f32 0.5, %v653_v34  ;;  %v363_v25 = vmul.f32 0.3275911, %v361_v58  ;;  %v474_v5 = vmul.f32 %v3274_v60, %v469_v41 }
  0x7d   : > { %v654_v7 = vmul.f32 0.5, %v652_v30  ;;  %v386_v40 = vsub.f32 0.0, %v3985_v45  ;;  %v412_v38 = vadd.f32 1.0, %v410_v3  ;;  %v409_v37 = vand.u32 2147483647, %v4043_v33  ;;  %vm734_vm8 = vmand %vm4035_vm3, %vm4039_vm4 }
  0x7e   : > { %v365_v31 = vadd.f32 1.0, %v363_v25  ;;  %v480_v36 = vsel %vm479_vm2, 1.0, %v3487_v15  ;;  %vm735_vm10 = vmand %vm4047_vm7, %vm4039_vm4  ;;  %v475_v63 = vsub.f32 1.0, %v474_v5  ;;  %v499_v0 = vsub.f32 1.0, %v498_v50 }
  0x7f   : > { %3281 = vrcp.f32 %v412_v38  ;;  %v411_v52 = vmul.f32 0.3275911, %v409_v37  ;;  %v388_v49 = vmul.f32 %v386_v40, %v3985_v45  ;;  %v456_v43 = vsel %vm455_vm9, 1.0, %v3487_v15 }
  0x80   : > { %3283 = vrcp.f32 %v365_v31  ;;  %v434_v62 = vsub.f32 0.0, %v408_v32  ;;  %v387_v45 = vsub.f32 0.0, %v361_v58  ;;  %v476_v60 = vmul.f32 %v475_v63, %v456_v43 }
  0x81   : > { %v413_v11 = vadd.f32 1.0, %v411_v52  ;;  %v500_v12 = vmul.f32 %v499_v0, %v480_v36  ;;  %v390_v1 = vmul.f32 1.442695, %v388_v49  ;;  %v435_v14 = vsub.f32 0.0, %v409_v37 }
  0x82   : > { %v436_v16 = vmul.f32 %v434_v62, %v408_v32  ;;  %v389_v13 = vmul.f32 %v387_v45, %v361_v58  ;;  %vm356_vm12 = vcmp.ge.f32.partialorder %v3973_v55, 0.0  ;;  %vm404_vm13 = vcmp.ge.f32.partialorder %v4019_v18, 0.0 }
  0x83   : > { %3285 = vrcp.f32 %v413_v11  ;;  %v501_v22 = vsub.f32 %v476_v60, %v500_v12  ;;  %v437_v34 = vmul.f32 %v435_v14, %v409_v37  ;;  %v358_v60 = vsel %vm356_vm12, 1.0, %v3487_v15 }
  0x84   : > { %v3278_v46 = vpop.eup %3277  ;;  %3287 = vpow2.f32 %v390_v1  ;;  %v438_v17 = vmul.f32 1.442695, %v436_v16  ;;  %v392_v30 = vmul.f32 1.442695, %v389_v13  ;;  %v406_v55 = vsel %vm404_vm13, 1.0, %v3487_v15 }
  0x85   : > { %v740_v48 = vrot.slane %v3278_v46, %v3830_v28  ;;  %v3280_v56 = vpop.eup %3279  ;;  %v502_v35 = vmul.f32 0.5, %v501_v22  ;;  %v440_v20 = vmul.f32 1.442695, %v437_v34  ;;  %vm357_vm14 = vcmp.ge.f32.partialorder %v4021_v29, 0.0 }
  0x86   : > { %v368_v6 = vmul.f32 1.0614054, %v3280_v56  ;;  %3289 = vpow2.f32 %v438_v17  ;;  %vm405_vm15 = vcmp.ge.f32.partialorder %v4043_v33, 0.0 }
  0x87   : > { %v742_v59 = vmul.f32 %v740_v48, %v654_v7  ;;  %v743_v53 = vmul.f32 %v740_v48, %v655_v42  ;;  %3291 = vpow2.f32 %v392_v30  ;;  %v503_v25 = vmax.f32 %v502_v35, 1e-20 }
  0x88   : > { %v370_v9 = vadd.f32 -1.4531521, %v368_v6  ;;  %3293 = vpow2.f32 %v440_v20  ;;  %vm523_vm11 = vcmp.gt.f32.partialorder %v502_v35, 1e-20  ;;  %v407_v35 = vsel %vm405_vm15, 1.0, %v3487_v15 }
  0x89   : > { %v4073_v8 = vsel %vm734_vm8, %v742_v59, 0.0  ;;  %v4075_v61 = vsel %vm735_vm10, %v743_v53, 0.0  ;;  %v3282_v21 = vpop.eup %3281  ;;  %3295 = vrcp.f32 %v503_v25  ;;  %v524_v45 = vsel %vm523_vm11, 1, %v3486_v4 }
  0x8a   : > { %748 = vst [vmem:[%s3600_s26] sm:$0xff] %v4073_v8  ;;  %749 = vst [vmem:[%s3600_s26 + $0x8] sm:$0xff] %v4075_v61  ;;  %v372_v39 = vmul.f32 %v3280_v56, %v370_v9  ;;  %v3284_v47 = vpop.eup %3283  ;;  %v416_v19 = vmul.f32 1.0614054, %v3282_v21 }
  0x8b   : > { %v369_v24 = vmul.f32 1.0614054, %v3284_v47 }
  0x8c   : > { %v374_v57 = vadd.f32 1.4214138, %v372_v39  ;;  %v418_v41 = vadd.f32 -1.4531521, %v416_v19 }
  0x8d   : > { %v371_v44 = vadd.f32 -1.4531521, %v369_v24  ;;  %v3286_v3 = vpop.eup %3285  ;;  %v359_v24 = vsel %vm357_vm14, 1.0, %v3487_v15 }
  0x8e   : > { %v376_v23 = vmul.f32 %v3280_v56, %v374_v57  ;;  %v420_v32 = vmul.f32 %v3282_v21, %v418_v41  ;;  %v417_v7 = vmul.f32 1.0614054, %v3286_v3  ;;  %v3288_v48 = vpop.eup %3287  ;;  %v3488_v57 = vmov 1966171168  }
  0x8f   : > { %v373_v58 = vmul.f32 %v3284_v47, %v371_v44  ;;  %v754_v16 = vunpack.c.l.s4 %v3488_v57 }
  0x90   : > { %v378_v26 = vadd.f32 -0.28449672, %v376_v23  ;;  %v422_v42 = vadd.f32 1.4214138, %v420_v32  ;;  %v419_v5 = vadd.f32 -1.4531521, %v417_v7  ;;  %v3290_v11 = vpop.eup %3289 }
  0x91   : > { %v375_v46 = vadd.f32 1.4214138, %v373_v58  ;;  %v3292_v9 = vpop.eup %3291 }
  0x92   : > { %v380_v27 = vmul.f32 %v3280_v56, %v378_v26  ;;  %v424_v38 = vmul.f32 %v3282_v21, %v422_v42  ;;  %v421_v36 = vmul.f32 %v3286_v3, %v419_v5  ;;  %v3294_v22 = vpop.eup %3293  ;;  %v528_v26 = vrot.slane %v524_v45, %v3830_v28 }
  0x93   : > { %v377_v31 = vmul.f32 %v3284_v47, %v375_v46  ;;  %v3296_v19 = vpop.eup %3295 }
  0x94   : > { %v382_v50 = vadd.f32 0.2548296, %v380_v27  ;;  %v426_v37 = vadd.f32 -0.28449672, %v424_v38  ;;  %v423_v59 = vadd.f32 1.4214138, %v421_v36  ;;  %v755_v27 = vunpack.c.0.s8 %v754_v16 }
  0x95   : > { %v379_v52 = vadd.f32 -0.28449672, %v377_v31  ;;  %vm4090_vm0 = vcmp.eq.s32.totalorder %v528_v26, 1  ;;  %v536_v34 = vrot.slane %v3296_v19, %v3830_v28  ;;  %v3489_v16 = vmov 1.0|1.0  }
  0x96   : > { %v384_v40 = vmul.f32 %v3280_v56, %v382_v50  ;;  %v428_v6 = vmul.f32 %v3282_v21, %v426_v37  ;;  %v425_v0 = vmul.f32 %v3286_v3, %v423_v59  ;;  %vm530_vm1 = vmand %vm3869_vm5, %vm4090_vm0  ;;  %v758_v33 = vsub.s32 %v755_v27, %v3813_v10 }
  0x97   : > { %v381_v63 = vmul.f32 %v3284_v47, %v379_v52  ;;  %vm531_vm2 = vmand %vm3876_vm6, %vm4090_vm0 }
  0x98   : > { %v394_v53 = vmul.f32 %v3288_v48, %v384_v40  ;;  %v430_v49 = vadd.f32 0.2548296, %v428_v6  ;;  %v427_v56 = vadd.f32 -0.28449672, %v425_v0 }
  0x99   : > { %v383_v43 = vadd.f32 0.2548296, %v381_v63 }
  0x9a   : > { %v396_v62 = vsub.f32 1.0, %v394_v53  ;;  %v432_v39 = vmul.f32 %v3282_v21, %v430_v49  ;;  %v429_v1 = vmul.f32 %v3286_v3, %v427_v56 }
  0x9b   : > { %v385_v12 = vmul.f32 %v3284_v47, %v383_v43 }
  0x9c   : > { %v442_v23 = vmul.f32 %v3290_v11, %v432_v39  ;;  %v431_v14 = vadd.f32 0.2548296, %v429_v1  ;;  %v398_v18 = vmul.f32 %v396_v62, %v358_v60  ;;  %v4126_v62 = vand.u32 127, %v332_v2 }
  0x9d   : > { %v395_v13 = vmul.f32 %v3292_v9, %v385_v12 }
  0x9e   : > { %v444_v21 = vsub.f32 1.0, %v442_v23  ;;  %v433_v47 = vmul.f32 %v3286_v3, %v431_v14 }
  0x9f   : > { %v397_v4 = vsub.f32 1.0, %v395_v13 }
  0xa0   : > { %v446_v17 = vmul.f32 %v444_v21, %v406_v55  ;;  %v443_v41 = vmul.f32 %v3294_v22, %v433_v47 }
  0xa1   : > { %v399_v44 = vmul.f32 %v397_v4, %v359_v24 }
  0xa2   : > { %v448_v30 = vsub.f32 %v398_v18, %v446_v17  ;;  %v445_v50 = vsub.f32 1.0, %v443_v41 }
  0xa4   : > { %v450_v32 = vmul.f32 0.5, %v448_v30  ;;  %v447_v3 = vmul.f32 %v445_v50, %v407_v35  ;;  %v1084_v35 = vld [vmem:[#allocation2] sm:$0xff] }
  0xa6   : > { %v538_v58 = vmul.f32 %v536_v34, %v450_v32  ;;  %v449_v7 = vsub.f32 %v399_v44, %v447_v3 }
  0xa8   : > { %v540_v42 = vsel %vm530_vm1, %v538_v58, 0.0  ;;  %v451_v46 = vmul.f32 0.5, %v449_v7 }
  0xa9   : > { %746 = vst [vmem:[%s3598_s25] sm:$0xff] %v540_v42  ;;  %v752_v20 = vcombine.high %v540_v42, %v540_v42  ;;  %v759_v25 = vrot.slane %v540_v42, %v758_v33 }
  0xaa   : > { %v539_v51 = vmul.f32 %v536_v34, %v451_v46 }
  0xab   : > { %v767_v15 = vcombine.high %v759_v25, %v759_v25  ;;  %v4106_v5 = vrot.slane %v759_v25, %v758_v33  ;;  %v766_v40 = vrot.slane %v752_v20, %v758_v33 }
  0xac   : > { %v541_v38 = vsel %vm531_vm2, %v539_v51, 0.0 }
  0xad   : > { %v853_v10 = vrot.slane %v4106_v5, %v3830_v28  ;;  %v4110_v48 = vrot.slane %v767_v15, %v758_v33  ;;  %747 = vst [vmem:[%s3598_s25 + $0x8] sm:$0xff] %v541_v38  ;;  %v808_v31 = vrot.slane %v541_v38, %v758_v33  ;;  %v4113_v36 = vrot.slane %v766_v40, %v758_v33 }
  0xae   : > { %v801_v11 = vcombine.high %v541_v38, %v541_v38  ;;  %v768_v9 = vcombine.high %v766_v40, %v766_v40  ;;  %v797_v17 = vcombine.high %v4106_v5, %v4106_v5 }
  0xaf   : > { %v930_v37 = vmul.f32 %v853_v10, %v4073_v8  ;;  %v931_v54 = vmul.f32 %v853_v10, %v4075_v61  ;;  %v816_v52 = vcombine.high %v808_v31, %v808_v31  ;;  %v4117_v59 = vrot.slane %v808_v31, %v758_v33 }
  0xb0   : > { %v815_v12 = vrot.slane %v801_v11, %v758_v33  ;;  %v4128_v1 = vrot.slane %v768_v9, %v758_v33  ;;  %v857_v27 = vrot.slane %v4110_v48, %v3830_v28  ;;  %v861_v34 = vrot.slane %v797_v17, %v3830_v28 }
  0xb1   : > { %v1116_v53 = vpack.c.bf16 %v931_v54, %v930_v37  ;;  %v885_v6 = vrot.slane %v4117_v59, %v3830_v28  ;;  %v4121_v63 = vrot.slane %v816_v52, %v758_v33  ;;  %v846_v24 = vcombine.high %v4117_v59, %v4117_v59 }
  0xb2   : > { %v4134_v57 = vrot.slane %v815_v12, %v758_v33  ;;  %v817_v2 = vcombine.high %v815_v12, %v815_v12  ;;  %v932_v50 = vmul.f32 %v857_v27, %v4073_v8  ;;  %v933_v32 = vmul.f32 %v857_v27, %v4075_v61 }
  0xb3   : > { %3140 = vmatprep.mubr.bf16.mxu0 %v1116_v53  ;;  %v946_v43 = vmul.f32 %v885_v6, %v4073_v8  ;;  %v947_v56 = vmul.f32 %v885_v6, %v4075_v61  ;;  %v889_v30 = vrot.slane %v4121_v63, %v3830_v28  ;;  %v893_v44 = vrot.slane %v846_v24, %v3830_v28 }
  0xb4   : > { %v4144_v13 = vrot.slane %v817_v2, %v758_v33  ;;  %v799_v33 = vcombine.high %v4110_v48, %v4110_v48  ;;  %v934_v7 = vmul.f32 %v861_v34, %v4073_v8  ;;  %v848_v42 = vcombine.high %v4121_v63, %v4121_v63 }
  0xb5   : > { %v1124_v39 = vpack.c.bf16 %v947_v56, %v946_v43  ;;  %v948_v3 = vmul.f32 %v889_v30, %v4073_v8  ;;  %v949_v58 = vmul.f32 %v889_v30, %v4075_v61  ;;  %v935_v20 = vmul.f32 %v861_v34, %v4075_v61  ;;  %v1086_v34 = vld [vmem:[#allocation2 + $0x10] sm:$0xff] }
  0xb6   : > { %v950_v25 = vmul.f32 %v893_v44, %v4073_v8  ;;  %v951_v46 = vmul.f32 %v893_v44, %v4075_v61  ;;  %v865_v15 = vrot.slane %v799_v33, %v3830_v28  ;;  %v869_v5 = vrot.slane %v4113_v36, %v3830_v28  ;;  %v1100_v44 = vld [vmem:[#allocation2 + $0x80] sm:$0xff]  ;;  %v1087_v33 = vld [vmem:[#allocation2 + $0x18] sm:$0xff] }
  0xb7   : > { %3156 = vmatprep.mubr.bf16.mxu1 %v1124_v39  ;;  %v1117_v51 = vpack.c.bf16 %v933_v32, %v932_v50  ;;  %v1125_v40 = vpack.c.bf16 %v949_v58, %v948_v3  ;;  %v897_v10 = vrot.slane %v848_v42, %v3830_v28  ;;  %v1118_v38 = vpack.c.bf16 %v935_v20, %v934_v7  ;;  %v1103_v3 = vld [vmem:[#allocation2 + $0x98] sm:$0xff]  ;;  %v1085_v20 = vld [vmem:[#allocation2 + $0x8] sm:$0xff] }
  0xb8   : > { %v1126_v48 = vpack.c.bf16 %v951_v46, %v950_v25  ;;  %v901_v31 = vrot.slane %v4134_v57, %v3830_v28  ;;  %v936_v37 = vmul.f32 %v865_v15, %v4073_v8  ;;  %v938_v54 = vmul.f32 %v869_v5, %v4073_v8 }
  0xb9   : > { %v939_v52 = vmul.f32 %v869_v5, %v4075_v61  ;;  %v798_v59 = vcombine.high %v4113_v36, %v4113_v36  ;;  %v937_v53 = vmul.f32 %v865_v15, %v4075_v61  ;;  %v952_v6 = vmul.f32 %v897_v10, %v4073_v8 }
  0xba   : > { %v953_v63 = vmul.f32 %v897_v10, %v4075_v61  ;;  %v847_v11 = vcombine.high %v4134_v57, %v4134_v57  ;;  %v873_v36 = vrot.slane %v4128_v1, %v3830_v28 }
  0xbb   : > { %v988_v0 = vpop.permute.xlu1 %987  ;;  %v877_v43 = vrot.slane %v798_v59, %v3830_v28  ;;  %v1119_v56 = vpack.c.bf16 %v937_v53, %v936_v37  ;;  %v1120_v39 = vpack.c.bf16 %v939_v52, %v938_v54  ;;  %v1090_v37 = vld [vmem:[#allocation2 + $0x30] sm:$0xff]  ;;  %v1088_v52 = vld [vmem:[#allocation2 + $0x20] sm:$0xff] }
  0xbc   : > { %v982_v49 = vpop.permute.xlu0 %981  ;;  %vm1030_vm6 = vcmp.eq.s32.totalorder %v4126_v62, %v988_v0  ;;  %v954_v0 = vmul.f32 %v901_v31, %v4073_v8  ;;  %v1127_v9 = vpack.c.bf16 %v953_v63, %v952_v6  ;;  %v940_v12 = vmul.f32 %v873_v36, %v4073_v8  ;;  %v1106_v54 = vld [vmem:[#allocation2 + $0xb0] sm:$0xff]  ;;  %v1104_v59 = vld [vmem:[#allocation2 + $0xa0] sm:$0xff]  ;;  %v1091_v63 = vld [vmem:[#allocation2 + $0x38] sm:$0xff] }
  0xbd   : > { %vm1028_vm3 = vcmp.eq.s32.totalorder %v4126_v62, %v982_v49  ;;  %v955_v49 = vmul.f32 %v901_v31, %v4075_v61  ;;  %v941_v2 = vmul.f32 %v873_v36, %v4075_v61  ;;  %v942_v57 = vmul.f32 %v877_v43, %v4073_v8 }
  0xbf   : > { %v991_v45 = vpop.permute.xlu1 %990 }
  0xc0   : > { %v985_v60 = vpop.permute.xlu0 %984  ;;  %vm1031_vm4 = vcmp.eq.s32.totalorder %v4126_v62, %v991_v45  ;;  %v1128_v45 = vpack.c.bf16 %v955_v49, %v954_v0  ;;  %v1107_v0 = vld [vmem:[#allocation2 + $0xb8] sm:$0xff] }
  0xc1   : > { %vm1029_vm5 = vcmp.eq.s32.totalorder %v4126_v62, %v985_v60  ;;  %vm3079_vm8 = vmpackc.low %vm1031_vm4, %vm1030_vm6  ;;  %v909_v60 = vrot.slane %v847_v11, %v3830_v28 }
  0xc2   : > { %vm3077_vm7 = vmpackc.low %vm1029_vm5, %vm1028_vm3 }
  0xc3   : > { %3124 = vmatprep.subr.msk.bf16.mxu0 %vm3077_vm7, %v3489_v16  ;;  %3172 = vmatprep.subr.msk.bf16.mxu1 %vm3077_vm7, %v3489_v16  ;;  %v997_v23 = vpop.permute.xlu1 %996 }
  0xc4   : > { %v994_v55 = vpop.permute.xlu0 %993  ;;  %3125 = vmatpush3.bf16.msk.msra.mxu0 %vm3077_vm7, %v3489_v16  ;;  %3180 = vmatpush3.bf16.msk.msra.mxu1 %vm3077_vm7, %v3489_v16  ;;  %vm1033_vm9 = vcmp.eq.s32.totalorder %v4126_v62, %v997_v23 }
  0xc5   : > { %vm1032_vm10 = vcmp.eq.s32.totalorder %v4126_v62, %v994_v55  ;;  %3126 = vmatprep.subr.msk.bf16.mxu0 %vm3079_vm8, %v3489_v16  ;;  %3173 = vmatprep.subr.msk.bf16.mxu1 %vm3079_vm8, %v3489_v16 }
  0xc6   : > { %vm3081_vm11 = vmpackc.low %vm1033_vm9, %vm1032_vm10 }
  0xc7   : > { %v1003_v14 = vpop.permute.xlu1 %1002 }
  0xc8   : > { %v1000_v22 = vpop.permute.xlu0 %999  ;;  %3127 = vmatpush3.bf16.msk.msra.mxu0 %vm3079_vm8, %v3489_v16  ;;  %3181 = vmatpush3.bf16.msk.msra.mxu1 %vm3079_vm8, %v3489_v16  ;;  %vm1035_vm12 = vcmp.eq.s32.totalorder %v4126_v62, %v1003_v14  ;;  %v849_v14 = vcombine.high %v4144_v13, %v4144_v13 }
  0xc9   : > { %vm1034_vm13 = vcmp.eq.s32.totalorder %v4126_v62, %v1000_v22  ;;  %3128 = vmatprep.subr.msk.bf16.mxu0 %vm3081_vm11, %v3489_v16  ;;  %3174 = vmatprep.subr.msk.bf16.mxu1 %vm3081_vm11, %v3489_v16  ;;  %v943_v22 = vmul.f32 %v877_v43, %v4075_v61 }
  0xca   : > { %vm3083_vm14 = vmpackc.low %vm1035_vm12, %vm1034_vm13 }
  0xcb   : > { %v1009_v26 = vpop.permute.xlu1 %1008 }
  0xcc   : > { %v1006_v18 = vpop.permute.xlu0 %1005  ;;  %3129 = vmatpush3.bf16.msk.msra.mxu0 %vm3081_vm11, %v3489_v16  ;;  %3182 = vmatpush3.bf16.msk.msra.mxu1 %vm3081_vm11, %v3489_v16  ;;  %vm1037_vm15 = vcmp.eq.s32.totalorder %v4126_v62, %v1009_v26  ;;  %v958_v26 = vmul.f32 %v909_v60, %v4073_v8 }
  0xcd   : > { %vm1036_vm0 = vcmp.eq.s32.totalorder %v4126_v62, %v1006_v18  ;;  %3130 = vmatprep.subr.msk.bf16.mxu0 %vm3083_vm14, %v3489_v16  ;;  %3175 = vmatprep.subr.msk.bf16.mxu1 %vm3083_vm14, %v3489_v16  ;;  %v959_v18 = vmul.f32 %v909_v60, %v4075_v61 }
  0xce   : > { %vm3085_vm1 = vmpackc.low %vm1037_vm15, %vm1036_vm0 }
  0xcf   : > { %v1015_v21 = vpop.permute.xlu1 %1014  ;;  %v1130_v17 = vpack.c.bf16 %v959_v18, %v958_v26  ;;  %v1092_v26 = vld [vmem:[#allocation2 + $0x40] sm:$0xff] }
  0xd0   : > { %v1012_v19 = vpop.permute.xlu0 %1011  ;;  %3131 = vmatpush3.bf16.msk.msra.mxu0 %vm3083_vm14, %v3489_v16  ;;  %3183 = vmatpush3.bf16.msk.msra.mxu1 %vm3083_vm14, %v3489_v16  ;;  %vm1039_vm2 = vcmp.eq.s32.totalorder %v4126_v62, %v1015_v21  ;;  %v1108_v18 = vld [vmem:[#allocation2 + $0xc0] sm:$0xff] }
  0xd1   : > { %vm1038_vm5 = vcmp.eq.s32.totalorder %v4126_v62, %v1012_v19  ;;  %3132 = vmatprep.subr.msk.bf16.mxu0 %vm3085_vm1, %v3489_v16  ;;  %3176 = vmatprep.subr.msk.bf16.mxu1 %vm3085_vm1, %v3489_v16 }
  0xd2   : > { %vm3087_vm6 = vmpackc.low %vm1039_vm2, %vm1038_vm5 }
  0xd3   : > { %v1021_v4 = vpop.permute.xlu1 %1020 }
  0xd4   : > { %v1018_v47 = vpop.permute.xlu0 %1017  ;;  %3133 = vmatpush3.bf16.msk.msra.mxu0 %vm3085_vm1, %v3489_v16  ;;  %3184 = vmatpush3.bf16.msk.msra.mxu1 %vm3085_vm1, %v3489_v16  ;;  %vm1041_vm3 = vcmp.eq.s32.totalorder %v4126_v62, %v1021_v4  ;;  %v913_v4 = vrot.slane %v849_v14, %v3830_v28  ;;  %v1094_v14 = vld [vmem:[#allocation2 + $0x50] sm:$0xff] }
  0xd5   : > { %vm1040_vm4 = vcmp.eq.s32.totalorder %v4126_v62, %v1018_v47  ;;  %3134 = vmatprep.subr.msk.bf16.mxu0 %vm3087_vm6, %v3489_v16  ;;  %3177 = vmatprep.subr.msk.bf16.mxu1 %vm3087_vm6, %v3489_v16  ;;  %v1122_v47 = vpack.c.bf16 %v943_v22, %v942_v57  ;;  %v1110_v22 = vld [vmem:[#allocation2 + $0xd0] sm:$0xff] }
  0xd6   : > { %vm4179_vm7 = vmpackc.low %vm1041_vm3, %vm1040_vm4  ;;  %v960_v27 = vmul.f32 %v913_v4, %v4073_v8 }
  0xd7   : > { %v1027_v41 = vpop.permute.xlu1 %1026 }
  0xd8   : > { %v1024_v29 = vpop.permute.xlu0 %1023  ;;  %3135 = vmatpush3.bf16.msk.msra.mxu0 %vm3087_vm6, %v3489_v16  ;;  %3185 = vmatpush3.bf16.msk.msra.mxu1 %vm3087_vm6, %v3489_v16  ;;  %vm1043_vm8 = vcmp.eq.s32.totalorder %v4126_v62, %v1027_v41  ;;  %v961_v41 = vmul.f32 %v913_v4, %v4075_v61  ;;  %v1111_v4 = vld [vmem:[#allocation2 + $0xd8] sm:$0xff] }
  0xd9   : > { %vm1042_vm9 = vcmp.eq.s32.totalorder %v4126_v62, %v1024_v29  ;;  %3136 = vmatprep.subr.msk.bf16.mxu0 %vm4179_vm7, %v3489_v16  ;;  %3178 = vmatprep.subr.msk.bf16.mxu1 %vm4179_vm7, %v3489_v16  ;;  %v905_v62 = vrot.slane %v4144_v13, %v3830_v28 }
  0xda   : > { %vm3091_vm10 = vmpackc.low %vm1043_vm8, %vm1042_vm9  ;;  %v1131_v30 = vpack.c.bf16 %v961_v41, %v960_v27  ;;  %v1093_v27 = vld [vmem:[#allocation2 + $0x48] sm:$0xff] }
  0xdb   : > { %v956_v23 = vmul.f32 %v905_v62, %v4073_v8  ;;  %v957_v55 = vmul.f32 %v905_v62, %v4075_v61  ;;  %v1109_v41 = vld [vmem:[#allocation2 + $0xc8] sm:$0xff] }
  0xdc   : > { %3137 = vmatpush3.bf16.msk.msra.mxu0 %vm4179_vm7, %v3489_v16  ;;  %3186 = vmatpush3.bf16.msk.msra.mxu1 %vm4179_vm7, %v3489_v16 }
  0xdd   : > { %3138 = vmatprep.subr.msk.bf16.mxu0 %vm3091_vm10, %v3489_v16  ;;  %3179 = vmatprep.subr.msk.bf16.mxu1 %vm3091_vm10, %v3489_v16  ;;  %v1129_v19 = vpack.c.bf16 %v957_v55, %v956_v23 }
  0xe0   : > { %3139 = vmatpush3.bf16.msk.msra.mxu0 %vm3091_vm10, %v3489_v16  ;;  %3187 = vmatpush3.bf16.msk.msra.mxu1 %vm3091_vm10, %v3489_v16  ;;  %v800_v16 = vcombine.high %v4128_v1, %v4128_v1  ;;  %v1121_v1 = vpack.c.bf16 %v941_v2, %v940_v12 }
  0xe2   : > { %v881_v21 = vrot.slane %v800_v16, %v3830_v28  ;;  %v1102_v28 = vld [vmem:[#allocation2 + $0x90] sm:$0xff] }
  0xe3   : > { %3141 = vmatmul.mubr.bf16.vlgmr.msra.gmra.mrb[0].mxu0 %v1117_v51  ;;  %3157 = vmatmul.mubr.bf16.vlgmr.msra.gmra.mrb[0].mxu1 %v1125_v40 }
  0xe4   : > { %3144 = vmatprep.mubr.bf16.mxu0 %v1118_v38  ;;  %3160 = vmatprep.mubr.bf16.mxu1 %v1126_v48  ;;  %v944_v24 = vmul.f32 %v881_v21, %v4073_v8  ;;  %v945_v13 = vmul.f32 %v881_v21, %v4075_v61  ;;  %v1101_v61 = vld [vmem:[#allocation2 + $0x88] sm:$0xff] }
  0xe6   : > { %v1123_v29 = vpack.c.bf16 %v945_v13, %v944_v24 }
  0xeb   : > { %3145 = vmatmul.mubr.bf16.gmra.mrb[4].mxu0 %v1119_v56  ;;  %3161 = vmatmul.mubr.bf16.gmra.mrb[4].mxu1 %v1127_v9  ;;  %v1089_v56 = vld [vmem:[#allocation2 + $0x28] sm:$0xff] }
  0xec   : > { %3148 = vmatprep.mubr.bf16.mxu0 %v1120_v39  ;;  %3164 = vmatprep.mubr.bf16.mxu1 %v1128_v45  ;;  %v1105_v9 = vld [vmem:[#allocation2 + $0xa8] sm:$0xff] }
  0xf3   : > { %3149 = vmatmul.mubr.bf16.gmra.mrb[8].mxu0 %v1121_v1  ;;  %3165 = vmatmul.mubr.bf16.gmra.mrb[8].mxu1 %v1129_v19  ;;  %v1095_v19 = vld [vmem:[#allocation2 + $0x58] sm:$0xff] }
  0xf4   : > { %3152 = vmatprep.mubr.bf16.mxu0 %v1122_v47  ;;  %3168 = vmatprep.mubr.bf16.mxu1 %v1130_v17 }
  0xfb   : > { %3153 = vmatmul.mubr.bf16.gmra.mrb[12].mxu0 %v1123_v29  ;;  %3169 = vmatmul.mubr.bf16.gmra.mrb[12].mxu1 %v1131_v30 }
 0x1b6   : > { %v3142_v50 = vpop.f32.mrb[0].mxu0  ;;  %v3158_v32 = vpop.f32.mrb[0].mxu1 }
 0x1b7   : > { %v1295_v58 = vadd.f32 %v3142_v50, %v1086_v34  ;;  %v1311_v7 = vadd.f32 %v3158_v32, %v1102_v28  ;;  %v1166_v42 = vpop.f32.mrb[1].mxu0  ;;  %v1230_v8 = vpop.f32.mrb[1].mxu1 }
 0x1b8   : > { %v1293_v25 = vadd.f32 %v1166_v42, %v1084_v35  ;;  %v1309_v46 = vadd.f32 %v1230_v8, %v1100_v44  ;;  %v3143_v15 = vpop.f32.mrb[2].mxu0  ;;  %v3159_v5 = vpop.f32.mrb[2].mxu1  ;;  %v1096_v42 = vld [vmem:[#allocation2 + $0x60] sm:$0xff] }
 0x1b9   : > { %1327 = vst [vmem:[#allocation2 + $0x10] sm:$0xff] %v1295_v58  ;;  %1343 = vst [vmem:[#allocation2 + $0x90] sm:$0xff] %v1311_v7  ;;  %v1296_v51 = vadd.f32 %v3143_v15, %v1087_v33  ;;  %v1312_v40 = vadd.f32 %v3159_v5, %v1103_v3  ;;  %v1169_v10 = vpop.f32.mrb[3].mxu0  ;;  %v1233_v38 = vpop.f32.mrb[3].mxu1  ;;  %v1098_v58 = vld [vmem:[#allocation2 + $0x70] sm:$0xff]  ;;  %v1112_v8 = vld [vmem:[#allocation2 + $0xe0] sm:$0xff] }
 0x1ba   : > { %1325 = vst [vmem:[#allocation2] sm:$0xff] %v1293_v25  ;;  %1341 = vst [vmem:[#allocation2 + $0x80] sm:$0xff] %v1309_v46  ;;  %v1294_v48 = vadd.f32 %v1169_v10, %v1085_v20  ;;  %v1310_v31 = vadd.f32 %v1233_v38, %v1101_v61  ;;  %v1114_v7 = vld [vmem:[#allocation2 + $0xf0] sm:$0xff]  ;;  %v1099_v25 = vld [vmem:[#allocation2 + $0x78] sm:$0xff] }
 0x1bb   : > { %1328 = vst [vmem:[#allocation2 + $0x18] sm:$0xff] %v1296_v51  ;;  %1344 = vst [vmem:[#allocation2 + $0x98] sm:$0xff] %v1312_v40  ;;  %v1115_v46 = vld [vmem:[#allocation2 + $0xf8] sm:$0xff]  ;;  %v1097_v10 = vld [vmem:[#allocation2 + $0x68] sm:$0xff] }
 0x1bc   : > { %1326 = vst [vmem:[#allocation2 + $0x8] sm:$0xff] %v1294_v48  ;;  %1342 = vst [vmem:[#allocation2 + $0x88] sm:$0xff] %v1310_v31  ;;  %v1113_v38 = vld [vmem:[#allocation2 + $0xe8] sm:$0xff] }
 0x1be   : > { %v3146_v53 = vpop.f32.mrb[4].mxu0  ;;  %v3162_v6 = vpop.f32.mrb[4].mxu1 }
 0x1bf   : > { %v1299_v49 = vadd.f32 %v3146_v53, %v1090_v37  ;;  %v1315_v11 = vadd.f32 %v3162_v6, %v1106_v54  ;;  %v1182_v36 = vpop.f32.mrb[5].mxu0  ;;  %v1246_v43 = vpop.f32.mrb[5].mxu1 }
 0x1c0   : > { %v1297_v62 = vadd.f32 %v1182_v36, %v1088_v52  ;;  %v1313_v39 = vadd.f32 %v1246_v43, %v1104_v59  ;;  %v3147_v45 = vpop.f32.mrb[6].mxu0  ;;  %v3163_v60 = vpop.f32.mrb[6].mxu1 }
 0x1c1   : > { %1331 = vst [vmem:[#allocation2 + $0x30] sm:$0xff] %v1299_v49  ;;  %1347 = vst [vmem:[#allocation2 + $0xb0] sm:$0xff] %v1315_v11  ;;  %v1300_v12 = vadd.f32 %v3147_v45, %v1091_v63  ;;  %v1316_v2 = vadd.f32 %v3163_v60, %v1107_v0  ;;  %v1185_v57 = vpop.f32.mrb[7].mxu0  ;;  %v1249_v16 = vpop.f32.mrb[7].mxu1 }
 0x1c2   : > { %1329 = vst [vmem:[#allocation2 + $0x20] sm:$0xff] %v1297_v62  ;;  %1345 = vst [vmem:[#allocation2 + $0xa0] sm:$0xff] %v1313_v39  ;;  %v1298_v23 = vadd.f32 %v1185_v57, %v1089_v56  ;;  %v1314_v55 = vadd.f32 %v1249_v16, %v1105_v9 }
 0x1c3   : > { %1332 = vst [vmem:[#allocation2 + $0x38] sm:$0xff] %v1300_v12  ;;  %1348 = vst [vmem:[#allocation2 + $0xb8] sm:$0xff] %v1316_v2 }
 0x1c4   : > { %1330 = vst [vmem:[#allocation2 + $0x28] sm:$0xff] %v1298_v23  ;;  %1346 = vst [vmem:[#allocation2 + $0xa8] sm:$0xff] %v1314_v55 }
 0x1c6   : > { %v3150_v21 = vpop.f32.mrb[8].mxu0  ;;  %v3166_v1 = vpop.f32.mrb[8].mxu1 }
 0x1c7   : > { %v1303_v47 = vadd.f32 %v3150_v21, %v1094_v14  ;;  %v1319_v17 = vadd.f32 %v3166_v1, %v1110_v22  ;;  %v1198_v24 = vpop.f32.mrb[9].mxu0  ;;  %v1262_v13 = vpop.f32.mrb[9].mxu1 }
 0x1c8   : > { %v1301_v29 = vadd.f32 %v1198_v24, %v1092_v26  ;;  %v1317_v30 = vadd.f32 %v1262_v13, %v1108_v18  ;;  %v3151_v34 = vpop.f32.mrb[10].mxu0  ;;  %v3167_v28 = vpop.f32.mrb[10].mxu1 }
 0x1c9   : > { %1335 = vst [vmem:[#allocation2 + $0x50] sm:$0xff] %v1303_v47  ;;  %1351 = vst [vmem:[#allocation2 + $0xd0] sm:$0xff] %v1319_v17  ;;  %v1304_v35 = vadd.f32 %v3151_v34, %v1095_v19  ;;  %v1320_v44 = vadd.f32 %v3167_v28, %v1111_v4  ;;  %v1201_v50 = vpop.f32.mrb[11].mxu0  ;;  %v1265_v32 = vpop.f32.mrb[11].mxu1 }
 0x1ca   : > { %1333 = vst [vmem:[#allocation2 + $0x40] sm:$0xff] %v1301_v29  ;;  %1349 = vst [vmem:[#allocation2 + $0xc0] sm:$0xff] %v1317_v30  ;;  %v1302_v33 = vadd.f32 %v1201_v50, %v1093_v27  ;;  %v1318_v3 = vadd.f32 %v1265_v32, %v1109_v41 }
 0x1cb   : > { %1336 = vst [vmem:[#allocation2 + $0x58] sm:$0xff] %v1304_v35  ;;  %1352 = vst [vmem:[#allocation2 + $0xd8] sm:$0xff] %v1320_v44 }
 0x1cc   : > { %1334 = vst [vmem:[#allocation2 + $0x48] sm:$0xff] %v1302_v33  ;;  %1350 = vst [vmem:[#allocation2 + $0xc8] sm:$0xff] %v1318_v3 }
 0x1ce   : > { %v3154_v20 = vpop.f32.mrb[12].mxu0  ;;  %v3170_v61 = vpop.f32.mrb[12].mxu1  ;;  %1360 = sbr.rel (%p3093_p13) target bundleno = 1390 (0x56e), region = 40 }
 0x1cf   : > { %v1307_v15 = vadd.f32 %v3154_v20, %v1098_v58  ;;  %v1323_v5 = vadd.f32 %v3170_v61, %v1114_v7  ;;  %v1214_v51 = vpop.f32.mrb[13].mxu0  ;;  %v1278_v40 = vpop.f32.mrb[13].mxu1 }
 0x1d0   : > { %v1305_v48 = vadd.f32 %v1214_v51, %v1096_v42  ;;  %v1321_v31 = vadd.f32 %v1278_v40, %v1112_v8  ;;  %v3155_v37 = vpop.f32.mrb[14].mxu0  ;;  %v3171_v54 = vpop.f32.mrb[14].mxu1 }
 0x1d1   : > { %1339 = vst [vmem:[#allocation2 + $0x70] sm:$0xff] %v1307_v15  ;;  %1355 = vst [vmem:[#allocation2 + $0xf0] sm:$0xff] %v1323_v5  ;;  %v1308_v52 = vadd.f32 %v3155_v37, %v1099_v25  ;;  %v1324_v59 = vadd.f32 %v3171_v54, %v1115_v46  ;;  %v1217_v53 = vpop.f32.mrb[15].mxu0  ;;  %v1281_v6 = vpop.f32.mrb[15].mxu1 }
 0x1d2   : > { %1337 = vst [vmem:[#allocation2 + $0x60] sm:$0xff] %v1305_v48  ;;  %1353 = vst [vmem:[#allocation2 + $0xe0] sm:$0xff] %v1321_v31  ;;  %v1306_v63 = vadd.f32 %v1217_v53, %v1097_v10  ;;  %v1322_v0 = vadd.f32 %v1281_v6, %v1113_v38 }
 0x1d3   : > { %1340 = vst [vmem:[#allocation2 + $0x78] sm:$0xff] %v1308_v52  ;;  %1356 = vst [vmem:[#allocation2 + $0xf8] sm:$0xff] %v1324_v59 }
 0x1d4   : > { %1338 = vst [vmem:[#allocation2 + $0x68] sm:$0xff] %v1306_v63  ;;  %1354 = vst [vmem:[#allocation2 + $0xe8] sm:$0xff] %v1322_v0 }
 0x1d5   : > { %v1363_v49 = vld [vmem:[#allocation2 + $0x10] sm:$0xff]  ;;  %v1361_v11 = vld [vmem:[#allocation2] sm:$0xff]  ;;  %v1364_v36 = vld [vmem:[#allocation2 + $0x18] sm:$0xff]  ;;  %vm1457_vm11 = vcmask 261120   ;;  %s3490_s8 = smov 96   ;;  %s3491_s11 = smov 64  }
 0x1d6   : > { %v1395_v43 = vmul.f32 0.25, %v1363_v49  ;;  %v1393_v56 = vmul.f32 0.25, %v1361_v11  ;;  %v1396_v9 = vmul.f32 0.25, %v1364_v36  ;;  %v1362_v62 = vld [vmem:[#allocation2 + $0x8] sm:$0xff]  ;;  %v1365_v45 = vld [vmem:[#allocation2 + $0x20] sm:$0xff]  ;;  %v1368_v55 = vld [vmem:[#allocation2 + $0x38] sm:$0xff] }
 0x1d7   : > { %v1366_v39 = vld [vmem:[#allocation2 + $0x28] sm:$0xff]  ;;  %v1394_v60 = vmul.f32 0.25, %v1362_v62  ;;  %v1397_v23 = vmul.f32 0.25, %v1365_v45  ;;  %v1367_v22 = vld [vmem:[#allocation2 + $0x30] sm:$0xff]  ;;  %v1400_v1 = vmul.f32 0.25, %v1368_v55  ;;  %v1369_v13 = vld [vmem:[#allocation2 + $0x40] sm:$0xff] }
 0x1d8   : > { %v1398_v12 = vmul.f32 0.25, %v1366_v39  ;;  %v4259_v2 = vceil.f32 %v1395_v43  ;;  %v4261_v57 = vceil.f32 %v1393_v56  ;;  %v4263_v16 = vceil.f32 %v1396_v9  ;;  %v1370_v24 = vld [vmem:[#allocation2 + $0x48] sm:$0xff]  ;;  %v1372_v35 = vld [vmem:[#allocation2 + $0x58] sm:$0xff]  ;;  %v1371_v44 = vld [vmem:[#allocation2 + $0x50] sm:$0xff]  ;;  %s3492_s14 = smov 32  }
 0x1d9   : > { %v4265_v14 = vceil.f32 %v1394_v60  ;;  %v4277_v47 = vceil.f32 %v1397_v23  ;;  %v1399_v17 = vmul.f32 0.25, %v1367_v22  ;;  %v4281_v41 = vceil.f32 %v1400_v1  ;;  %v1373_v8 = vld [vmem:[#allocation2 + $0x60] sm:$0xff]  ;;  %v1375_v40 = vld [vmem:[#allocation2 + $0x70] sm:$0xff]  ;;  %v1378_v52 = vld [vmem:[#allocation2 + $0x88] sm:$0xff] }
 0x1da   : > { %v1464_v26 = vsel %vm1457_vm11, %v4259_v2, 0.0  ;;  %v1458_v18 = vsel %vm1457_vm11, %v4261_v57, 0.0  ;;  %v4271_v21 = vceil.f32 %v1398_v12  ;;  %v1467_v19 = vsel %vm1457_vm11, %v4263_v16, 0.0  ;;  %v1376_v51 = vld [vmem:[#allocation2 + $0x78] sm:$0xff]  ;;  %v1377_v59 = vld [vmem:[#allocation2 + $0x80] sm:$0xff]  ;;  %v1379_v43 = vld [vmem:[#allocation2 + $0x90] sm:$0xff] }
 0x1db   : > { %1465 = vadd.xlane.f32.xlu1 %v1464_v26  ;;  %1459 = vadd.xlane.f32.xlu0 %v1458_v18  ;;  %v1461_v4 = vsel %vm1457_vm11, %v4265_v14, 0.0  ;;  %v1470_v29 = vsel %vm1457_vm11, %v4277_v47, 0.0  ;;  %v4285_v30 = vceil.f32 %v1399_v17  ;;  %v1402_v34 = vmul.f32 0.25, %v1370_v24  ;;  %v1374_v42 = vld [vmem:[#allocation2 + $0x68] sm:$0xff]  ;;  %v1380_v36 = vld [vmem:[#allocation2 + $0x98] sm:$0xff]  ;;  %v1381_v23 = vld [vmem:[#allocation2 + $0xa0] sm:$0xff] }
 0x1dc   : > { %v1473_v27 = vsel %vm1457_vm11, %v4271_v21, 0.0  ;;  %v1401_v28 = vmul.f32 0.25, %v1369_v13  ;;  %v1479_v50 = vsel %vm1457_vm11, %v4281_v41, 0.0  ;;  %v1404_v32 = vmul.f32 0.25, %v1372_v35  ;;  %v1382_v12 = vld [vmem:[#allocation2 + $0xa8] sm:$0xff]  ;;  %v1383_v17 = vld [vmem:[#allocation2 + $0xb0] sm:$0xff] }
 0x1dd   : > { %v1476_v33 = vsel %vm1457_vm11, %v4285_v30, 0.0  ;;  %v4291_v3 = vceil.f32 %v1402_v34  ;;  %v1403_v7 = vmul.f32 0.25, %v1371_v44  ;;  %v1406_v20 = vmul.f32 0.25, %v1374_v42  ;;  %v1386_v35 = vld [vmem:[#allocation2 + $0xc8] sm:$0xff]  ;;  %v1385_v44 = vld [vmem:[#allocation2 + $0xc0] sm:$0xff] }
 0x1de   : > { %v4293_v58 = vceil.f32 %v1401_v28  ;;  %v1405_v61 = vmul.f32 0.25, %v1373_v8  ;;  %v4299_v15 = vceil.f32 %v1404_v32  ;;  %v1408_v38 = vmul.f32 0.25, %v1376_v51 }
 0x1df   : > { %1468 = vadd.xlane.f32.xlu1 %v1467_v19  ;;  %1462 = vadd.xlane.f32.xlu0 %v1461_v4  ;;  %v1485_v25 = vsel %vm1457_vm11, %v4291_v3, 0.0  ;;  %v4301_v5 = vceil.f32 %v1403_v7  ;;  %v4303_v10 = vceil.f32 %v1406_v20  ;;  %v1407_v54 = vmul.f32 0.25, %v1375_v40  ;;  %v1384_v4 = vld [vmem:[#allocation2 + $0xb8] sm:$0xff] }
 0x1e0   : > { %v1482_v46 = vsel %vm1457_vm11, %v4293_v58, 0.0  ;;  %v1491_v48 = vsel %vm1457_vm11, %v4299_v15, 0.0  ;;  %v4309_v37 = vceil.f32 %v1405_v61  ;;  %v4313_v6 = vceil.f32 %v1408_v38  ;;  %v1388_v20 = vld [vmem:[#allocation2 + $0xd8] sm:$0xff]  ;;  %v1387_v61 = vld [vmem:[#allocation2 + $0xd0] sm:$0xff] }
 0x1e1   : > { %v1488_v31 = vsel %vm1457_vm11, %v4301_v5, 0.0  ;;  %v1497_v53 = vsel %vm1457_vm11, %v4303_v10, 0.0  ;;  %v4317_v0 = vceil.f32 %v1407_v54  ;;  %v1410_v49 = vmul.f32 0.25, %v1378_v52  ;;  %v4361_v54 = vld [vmem:[#allocation2 + $0xe0] sm:$0xff] }
 0x1e2   : > { %v1494_v63 = vsel %vm1457_vm11, %v4309_v37, 0.0  ;;  %v1409_v11 = vmul.f32 0.25, %v1377_v59  ;;  %v1503_v56 = vsel %vm1457_vm11, %v4313_v6, 0.0  ;;  %v1412_v9 = vmul.f32 0.25, %v1380_v36  ;;  %v4373_v36 = vld [vmem:[#allocation2 + $0xf8] sm:$0xff] }
 0x1e3   : > { %1474 = vadd.xlane.f32.xlu1 %v1473_v27  ;;  %1471 = vadd.xlane.f32.xlu0 %v1470_v29  ;;  %v1500_v62 = vsel %vm1457_vm11, %v4317_v0, 0.0  ;;  %v4323_v39 = vceil.f32 %v1410_v49  ;;  %v1411_v60 = vmul.f32 0.25, %v1379_v43  ;;  %v1414_v55 = vmul.f32 0.25, %v1382_v12  ;;  %v4375_v43 = vld [vmem:[#allocation2 + $0xf0] sm:$0xff] }
 0x1e4   : > { %v4325_v45 = vceil.f32 %v1409_v11  ;;  %v1413_v22 = vmul.f32 0.25, %v1381_v23  ;;  %v4331_v1 = vceil.f32 %v1412_v9  ;;  %v1416_v13 = vmul.f32 0.25, %v1384_v4 }
 0x1e5   : > { %v1509_v26 = vsel %vm1457_vm11, %v4323_v39, 0.0  ;;  %v4333_v19 = vceil.f32 %v1411_v60  ;;  %v4335_v24 = vceil.f32 %v1414_v55  ;;  %v1415_v28 = vmul.f32 0.25, %v1383_v17 }
 0x1e6   : > { %v1506_v18 = vsel %vm1457_vm11, %v4325_v45, 0.0  ;;  %v1515_v27 = vsel %vm1457_vm11, %v4331_v1, 0.0  ;;  %v4341_v34 = vceil.f32 %v1413_v22  ;;  %v4345_v32 = vceil.f32 %v1416_v13 }
 0x1e7   : > { %1480 = vadd.xlane.f32.xlu1 %v1479_v50  ;;  %1477 = vadd.xlane.f32.xlu0 %v1476_v33  ;;  %v1512_v29 = vsel %vm1457_vm11, %v4333_v19, 0.0  ;;  %v1521_v50 = vsel %vm1457_vm11, %v4335_v24, 0.0  ;;  %v4349_v7 = vceil.f32 %v1415_v28  ;;  %v1418_v42 = vmul.f32 0.25, %v1386_v35 }
 0x1e8   : > { %v1518_v33 = vsel %vm1457_vm11, %v4341_v34, 0.0  ;;  %v1417_v8 = vmul.f32 0.25, %v1385_v44  ;;  %v1421_v59 = vmul.f32 0.25, %v4361_v54  ;;  %v1424_v9 = vmul.f32 0.25, %v4373_v36 }
 0x1e9   : > { %v1524_v51 = vsel %vm1457_vm11, %v4349_v7, 0.0  ;;  %v4355_v40 = vceil.f32 %v1418_v42  ;;  %v1423_v23 = vmul.f32 0.25, %v4375_v43  ;;  %vm2866_vm12 = vcmask 7168  }
 0x1ea   : > { %v4357_v38 = vceil.f32 %v1417_v8  ;;  %v4384_v12 = vceil.f32 %v1421_v59 }
 0x1eb   : > { %1486 = vadd.xlane.f32.xlu1 %v1485_v25  ;;  %1483 = vadd.xlane.f32.xlu0 %v1482_v46  ;;  %v1527_v25 = vsel %vm1457_vm11, %v4345_v32, 0.0  ;;  %v1420_v46 = vmul.f32 0.25, %v1388_v20 }
 0x1ec   : > { %v1542_v22 = vsel %vm1457_vm11, %v4384_v12, 0.0 }
 0x1ed   : > { %v4369_v49 = vceil.f32 %v1420_v46 }
 0x1ef   : > { %1492 = vadd.xlane.f32.xlu1 %v1491_v48  ;;  %1489 = vadd.xlane.f32.xlu0 %v1488_v31  ;;  %v1419_v48 = vmul.f32 0.25, %v1387_v61  ;;  %v4359_v31 = vld [vmem:[#allocation2 + $0xe8] sm:$0xff] }
 0x1f0   : > { %v1422_v52 = vmul.f32 0.25, %v4359_v31 }
 0x1f1   : > { %v4371_v11 = vceil.f32 %v1419_v48 }
 0x1f3   : > { %1498 = vadd.xlane.f32.xlu1 %v1497_v53  ;;  %1495 = vadd.xlane.f32.xlu0 %v1494_v63  ;;  %v1533_v53 = vsel %vm1457_vm11, %v4355_v40, 0.0  ;;  %v1530_v63 = vsel %vm1457_vm11, %v4357_v38, 0.0  ;;  %v1536_v60 = vsel %vm1457_vm11, %v4371_v11, 0.0 }
 0x1f7   : > { %1504 = vadd.xlane.f32.xlu1 %v1503_v56  ;;  %1501 = vadd.xlane.f32.xlu0 %v1500_v62  ;;  %v4377_v56 = vceil.f32 %v1422_v52  ;;  %v1539_v62 = vsel %vm1457_vm11, %v4369_v49, 0.0 }
 0x1f9   : > { %v1545_v55 = vsel %vm1457_vm11, %v4377_v56, 0.0 }
 0x1fb   : > { %1510 = vadd.xlane.f32.xlu1 %v1509_v26  ;;  %1507 = vadd.xlane.f32.xlu0 %v1506_v18  ;;  %v4391_v26 = vceil.f32 %v1424_v9  ;;  %v4393_v18 = vceil.f32 %v1423_v23 }
 0x1fd   : > { %v1551_v4 = vsel %vm1457_vm11, %v4391_v26, 0.0  ;;  %v1548_v17 = vsel %vm1457_vm11, %v4393_v18, 0.0 }
 0x1ff   : > { %1516 = vadd.xlane.f32.xlu1 %v1515_v27  ;;  %1513 = vadd.xlane.f32.xlu0 %v1512_v29 }
 0x203   : > { %1522 = vadd.xlane.f32.xlu1 %v1521_v50  ;;  %1519 = vadd.xlane.f32.xlu0 %v1518_v33 }
 0x207   : > { %1528 = vadd.xlane.f32.xlu1 %v1527_v25  ;;  %1525 = vadd.xlane.f32.xlu0 %v1524_v51 }
 0x20b   : > { %1534 = vadd.xlane.f32.xlu1 %v1533_v53  ;;  %1531 = vadd.xlane.f32.xlu0 %v1530_v63 }
 0x20f   : > { %1540 = vadd.xlane.f32.xlu1 %v1539_v62  ;;  %1537 = vadd.xlane.f32.xlu0 %v1536_v60 }
 0x213   : > { %1546 = vadd.xlane.f32.xlu1 %v1545_v55  ;;  %1543 = vadd.xlane.f32.xlu0 %v1542_v22 }
 0x217   : > { %1552 = vadd.xlane.f32.xlu1 %v1551_v4  ;;  %1549 = vadd.xlane.f32.xlu0 %v1548_v17 }
 0x228   : > { %1684 = vrot.lane.b32.xlu1 %v4265_v14, %s3490_s8 }
 0x22c   : > { %1686 = vrot.lane.b32.xlu1 %v4259_v2, %s3490_s8 }
 0x22d   : > { %1682 = vrot.lane.b32.xlu0 %v4261_v57, %s3490_s8 }
 0x230   : > { %1688 = vrot.lane.b32.xlu1 %v4263_v16, %s3490_s8 }
 0x231   : > { %1690 = vrot.lane.b32.xlu0 %v4277_v47, %s3490_s8 }
 0x234   : > { %1692 = vrot.lane.b32.xlu1 %v4271_v21, %s3490_s8 }
 0x235   : > { %1694 = vrot.lane.b32.xlu0 %v4285_v30, %s3490_s8 }
 0x238   : > { %1696 = vrot.lane.b32.xlu1 %v4281_v41, %s3490_s8 }
 0x239   : > { %1698 = vrot.lane.b32.xlu0 %v4293_v58, %s3490_s8 }
 0x23c   : > { %1700 = vrot.lane.b32.xlu1 %v4291_v3, %s3490_s8 }
 0x23d   : > { %1702 = vrot.lane.b32.xlu0 %v4301_v5, %s3490_s8 }
 0x240   : > { %1704 = vrot.lane.b32.xlu1 %v4299_v15, %s3490_s8 }
 0x241   : > { %1706 = vrot.lane.b32.xlu0 %v4309_v37, %s3490_s8 }
 0x244   : > { %1708 = vrot.lane.b32.xlu1 %v4303_v10, %s3490_s8 }
 0x245   : > { %1710 = vrot.lane.b32.xlu0 %v4317_v0, %s3490_s8 }
 0x248   : > { %1712 = vrot.lane.b32.xlu1 %v4313_v6, %s3490_s8 }
 0x249   : > { %1714 = vrot.lane.b32.xlu0 %v4325_v45, %s3490_s8 }
 0x24c   : > { %1716 = vrot.lane.b32.xlu1 %v4323_v39, %s3490_s8 }
 0x24d   : > { %1718 = vrot.lane.b32.xlu0 %v4333_v19, %s3490_s8 }
 0x250   : > { %1720 = vrot.lane.b32.xlu1 %v4331_v1, %s3490_s8 }
 0x251   : > { %1722 = vrot.lane.b32.xlu0 %v4341_v34, %s3490_s8 }
 0x254   : > { %1724 = vrot.lane.b32.xlu1 %v4335_v24, %s3490_s8 }
 0x255   : > { %1726 = vrot.lane.b32.xlu0 %v4349_v7, %s3490_s8 }
 0x258   : > { %1728 = vrot.lane.b32.xlu1 %v4345_v32, %s3490_s8 }
 0x259   : > { %1730 = vrot.lane.b32.xlu0 %v4357_v38, %s3490_s8 }
 0x25c   : > { %1732 = vrot.lane.b32.xlu1 %v4355_v40, %s3490_s8 }
 0x25d   : > { %1734 = vrot.lane.b32.xlu0 %v4371_v11, %s3490_s8 }
 0x260   : > { %1736 = vrot.lane.b32.xlu1 %v4369_v49, %s3490_s8 }
 0x261   : > { %1738 = vrot.lane.b32.xlu0 %v4384_v12, %s3490_s8 }
 0x264   : > { %1740 = vrot.lane.b32.xlu1 %v4377_v56, %s3490_s8 }
 0x265   : > { %1742 = vrot.lane.b32.xlu0 %v4393_v18, %s3490_s8 }
 0x268   : > { %v4461_v13 = vpop.xlane.xlu1 %1465  ;;  %v4463_v27 = vpop.xlane.xlu0 %1459  ;;  %1744 = vrot.lane.b32.xlu1 %v4391_v26, %s3490_s8 }
 0x26c   : > { %v4467_v29 = vpop.xlane.xlu1 %1468  ;;  %v4469_v28 = vpop.xlane.xlu0 %1462 }
 0x270   : > { %v4471_v35 = vpop.xlane.xlu1 %1474  ;;  %v4473_v44 = vpop.xlane.xlu0 %1471 }
 0x274   : > { %v4475_v50 = vpop.xlane.xlu1 %1480  ;;  %v4477_v33 = vpop.xlane.xlu0 %1477 }
 0x278   : > { %v4479_v42 = vpop.xlane.xlu1 %1486  ;;  %v4481_v8 = vpop.xlane.xlu0 %1483 }
 0x27c   : > { %v4483_v20 = vpop.xlane.xlu1 %1492  ;;  %v4485_v61 = vpop.xlane.xlu0 %1489 }
 0x280   : > { %v4487_v25 = vpop.xlane.xlu1 %1498  ;;  %v4489_v46 = vpop.xlane.xlu0 %1495 }
 0x284   : > { %v4491_v51 = vpop.xlane.xlu1 %1504  ;;  %v4493_v48 = vpop.xlane.xlu0 %1501 }
 0x285   : > { %5771 = vst [vmem:[#allocation9_spill] sm:$0xff] %v4493_v48 }
 0x288   : > { %v4495_v52 = vpop.xlane.xlu1 %1510  ;;  %v4497_v59 = vpop.xlane.xlu0 %1507 }
 0x289   : > { %5772 = vst [vmem:[#allocation10_spill] sm:$0xff] %v4495_v52  ;;  %5773 = vst [vmem:[#allocation11_spill] sm:$0xff] %v4497_v59 }
 0x28c   : > { %v4499_v53 = vpop.xlane.xlu1 %1516  ;;  %v4501_v63 = vpop.xlane.xlu0 %1513 }
 0x28d   : > { %5774 = vst [vmem:[#allocation12_spill] sm:$0xff] %v4499_v53  ;;  %5775 = vst [vmem:[#allocation13_spill] sm:$0xff] %v4501_v63 }
 0x290   : > { %v4503_v9 = vpop.xlane.xlu1 %1522  ;;  %v4505_v62 = vpop.xlane.xlu0 %1519 }
 0x291   : > { %5776 = vst [vmem:[#allocation14_spill] sm:$0xff] %v4503_v9  ;;  %5777 = vst [vmem:[#allocation15_spill] sm:$0xff] %v4505_v62 }
 0x294   : > { %v4507_v60 = vpop.xlane.xlu1 %1528  ;;  %v4509_v23 = vpop.xlane.xlu0 %1525 }
 0x295   : > { %5778 = vst [vmem:[#allocation16_spill] sm:$0xff] %v4507_v60  ;;  %5779 = vst [vmem:[#allocation17_spill] sm:$0xff] %v4509_v23 }
 0x298   : > { %v4511_v55 = vpop.xlane.xlu1 %1534  ;;  %v4513_v22 = vpop.xlane.xlu0 %1531 }
 0x299   : > { %5780 = vst [vmem:[#allocation18_spill] sm:$0xff] %v4511_v55  ;;  %5781 = vst [vmem:[#allocation19_spill] sm:$0xff] %v4513_v22 }
 0x29c   : > { %v4515_v4 = vpop.xlane.xlu1 %1540  ;;  %v4517_v17 = vpop.xlane.xlu0 %1537 }
 0x29d   : > { %5782 = vst [vmem:[#allocation20_spill] sm:$0xff] %v4515_v4  ;;  %5783 = vst [vmem:[#allocation21_spill] sm:$0xff] %v4517_v17 }
 0x2a0   : > { %v4519_v59 = vpop.xlane.xlu1 %1546  ;;  %v4521_v53 = vpop.xlane.xlu0 %1543 }
 0x2a1   : > { %5784 = vst [vmem:[#allocation22_spill] sm:$0xff] %v4519_v59  ;;  %5785 = vst [vmem:[#allocation23_spill] sm:$0xff] %v4521_v53 }
 0x2a4   : > { %v4523_v63 = vpop.xlane.xlu1 %1552  ;;  %v4525_v9 = vpop.xlane.xlu0 %1549 }
 0x2a5   : > { %5786 = vst [vmem:[#allocation24_spill] sm:$0xff] %v4523_v63  ;;  %5787 = vst [vmem:[#allocation25_spill] sm:$0xff] %v4525_v9 }
 0x2a8   : > { %v1685_v62 = vpop.permute.xlu1 %1684  ;;  %v1683_v60 = vpop.permute.xlu0 %1682 }
 0x2a9   : > { %v1781_v23 = vsel %vm1457_vm11, %v1685_v62, 0.0  ;;  %v1778_v55 = vsel %vm1457_vm11, %v1683_v60, 0.0 }
 0x2aa   : > { %1782 = vadd.xlane.f32.xlu1 %v1781_v23  ;;  %1779 = vadd.xlane.f32.xlu0 %v1778_v55 }
 0x2ac   : > { %v1687_v22 = vpop.permute.xlu1 %1686  ;;  %v1691_v4 = vpop.permute.xlu0 %1690 }
 0x2ad   : > { %v1784_v17 = vsel %vm1457_vm11, %v1687_v22, 0.0  ;;  %v1790_v9 = vsel %vm1457_vm11, %v1691_v4, 0.0 }
 0x2ae   : > { %1785 = vadd.xlane.f32.xlu0 %v1784_v17 }
 0x2b0   : > { %v1689_v59 = vpop.permute.xlu1 %1688  ;;  %v1695_v52 = vpop.permute.xlu0 %1694 }
 0x2b1   : > { %v1787_v53 = vsel %vm1457_vm11, %v1689_v59, 0.0  ;;  %v1796_v60 = vsel %vm1457_vm11, %v1695_v52, 0.0 }
 0x2b2   : > { %1788 = vadd.xlane.f32.xlu0 %v1787_v53 }
 0x2b4   : > { %v1693_v63 = vpop.permute.xlu1 %1692  ;;  %v1699_v48 = vpop.permute.xlu0 %1698 }
 0x2b5   : > { %v1793_v62 = vsel %vm1457_vm11, %v1693_v63, 0.0  ;;  %v1802_v17 = vsel %vm1457_vm11, %v1699_v48, 0.0 }
 0x2b6   : > { %1794 = vadd.xlane.f32.xlu1 %v1793_v62  ;;  %1791 = vadd.xlane.f32.xlu0 %v1790_v9 }
 0x2b8   : > { %v1697_v23 = vpop.permute.xlu1 %1696  ;;  %v1703_v55 = vpop.permute.xlu0 %1702 }
 0x2b9   : > { %v1799_v22 = vsel %vm1457_vm11, %v1697_v23, 0.0  ;;  %v1808_v63 = vsel %vm1457_vm11, %v1703_v55, 0.0 }
 0x2ba   : > { %1800 = vadd.xlane.f32.xlu1 %v1799_v22  ;;  %1797 = vadd.xlane.f32.xlu0 %v1796_v60 }
 0x2bc   : > { %v1701_v59 = vpop.permute.xlu1 %1700  ;;  %v1707_v53 = vpop.permute.xlu0 %1706 }
 0x2bd   : > { %v1805_v4 = vsel %vm1457_vm11, %v1701_v59, 0.0  ;;  %v1814_v23 = vsel %vm1457_vm11, %v1707_v53, 0.0 }
 0x2be   : > { %1806 = vadd.xlane.f32.xlu1 %v1805_v4  ;;  %1803 = vadd.xlane.f32.xlu0 %v1802_v17 }
 0x2c0   : > { %v1705_v62 = vpop.permute.xlu1 %1704  ;;  %v1711_v9 = vpop.permute.xlu0 %1710 }
 0x2c1   : > { %v1811_v52 = vsel %vm1457_vm11, %v1705_v62, 0.0  ;;  %v1820_v59 = vsel %vm1457_vm11, %v1711_v9, 0.0 }
 0x2c2   : > { %1812 = vadd.xlane.f32.xlu1 %v1811_v52  ;;  %1809 = vadd.xlane.f32.xlu0 %v1808_v63 }
 0x2c4   : > { %v1709_v22 = vpop.permute.xlu1 %1708  ;;  %v1715_v60 = vpop.permute.xlu0 %1714 }
 0x2c5   : > { %v1817_v48 = vsel %vm1457_vm11, %v1709_v22, 0.0  ;;  %v1826_v62 = vsel %vm1457_vm11, %v1715_v60, 0.0 }
 0x2c6   : > { %1818 = vadd.xlane.f32.xlu1 %v1817_v48  ;;  %1815 = vadd.xlane.f32.xlu0 %v1814_v23 }
 0x2c8   : > { %v1713_v4 = vpop.permute.xlu1 %1712  ;;  %v1719_v17 = vpop.permute.xlu0 %1718 }
 0x2c9   : > { %v1823_v55 = vsel %vm1457_vm11, %v1713_v4, 0.0  ;;  %v1832_v22 = vsel %vm1457_vm11, %v1719_v17, 0.0 }
 0x2ca   : > { %1824 = vadd.xlane.f32.xlu1 %v1823_v55  ;;  %1821 = vadd.xlane.f32.xlu0 %v1820_v59 }
 0x2cc   : > { %v1717_v52 = vpop.permute.xlu1 %1716  ;;  %v1723_v63 = vpop.permute.xlu0 %1722 }
 0x2cd   : > { %v1829_v53 = vsel %vm1457_vm11, %v1717_v52, 0.0  ;;  %v1838_v4 = vsel %vm1457_vm11, %v1723_v63, 0.0 }
 0x2ce   : > { %1830 = vadd.xlane.f32.xlu1 %v1829_v53  ;;  %1827 = vadd.xlane.f32.xlu0 %v1826_v62 }
 0x2d0   : > { %v1721_v48 = vpop.permute.xlu1 %1720  ;;  %v1727_v23 = vpop.permute.xlu0 %1726 }
 0x2d1   : > { %v1835_v9 = vsel %vm1457_vm11, %v1721_v48, 0.0  ;;  %v1844_v52 = vsel %vm1457_vm11, %v1727_v23, 0.0 }
 0x2d2   : > { %1836 = vadd.xlane.f32.xlu1 %v1835_v9  ;;  %1833 = vadd.xlane.f32.xlu0 %v1832_v22 }
 0x2d4   : > { %v1725_v55 = vpop.permute.xlu1 %1724  ;;  %v1731_v59 = vpop.permute.xlu0 %1730 }
 0x2d5   : > { %v1841_v60 = vsel %vm1457_vm11, %v1725_v55, 0.0  ;;  %v1850_v48 = vsel %vm1457_vm11, %v1731_v59, 0.0 }
 0x2d6   : > { %1842 = vadd.xlane.f32.xlu1 %v1841_v60  ;;  %1839 = vadd.xlane.f32.xlu0 %v1838_v4 }
 0x2d8   : > { %v1729_v53 = vpop.permute.xlu1 %1728  ;;  %v1735_v62 = vpop.permute.xlu0 %1734 }
 0x2d9   : > { %v1847_v17 = vsel %vm1457_vm11, %v1729_v53, 0.0  ;;  %v1856_v55 = vsel %vm1457_vm11, %v1735_v62, 0.0 }
 0x2da   : > { %1848 = vadd.xlane.f32.xlu1 %v1847_v17  ;;  %1845 = vadd.xlane.f32.xlu0 %v1844_v52 }
 0x2dc   : > { %v1733_v9 = vpop.permute.xlu1 %1732  ;;  %v1739_v63 = vpop.permute.xlu0 %1738 }
 0x2dd   : > { %v1853_v22 = vsel %vm1457_vm11, %v1733_v9, 0.0  ;;  %v1862_v23 = vsel %vm1457_vm11, %v1739_v63, 0.0 }
 0x2de   : > { %1854 = vadd.xlane.f32.xlu1 %v1853_v22  ;;  %1851 = vadd.xlane.f32.xlu0 %v1850_v48 }
 0x2e0   : > { %v1737_v60 = vpop.permute.xlu1 %1736  ;;  %v1743_v17 = vpop.permute.xlu0 %1742 }
 0x2e1   : > { %v1859_v4 = vsel %vm1457_vm11, %v1737_v60, 0.0  ;;  %v1868_v59 = vsel %vm1457_vm11, %v1743_v17, 0.0 }
 0x2e2   : > { %1860 = vadd.xlane.f32.xlu1 %v1859_v4  ;;  %1857 = vadd.xlane.f32.xlu0 %v1856_v55 }
 0x2e4   : > { %v1741_v53 = vpop.permute.xlu1 %1740 }
 0x2e5   : > { %v1865_v52 = vsel %vm1457_vm11, %v1741_v53, 0.0 }
 0x2e6   : > { %1866 = vadd.xlane.f32.xlu1 %v1865_v52  ;;  %1863 = vadd.xlane.f32.xlu0 %v1862_v23 }
 0x2e8   : > { %v1745_v9 = vpop.permute.xlu1 %1744 }
 0x2e9   : > { %v1871_v48 = vsel %vm1457_vm11, %v1745_v9, 0.0 }
 0x2ea   : > { %1872 = vadd.xlane.f32.xlu1 %v1871_v48  ;;  %1869 = vadd.xlane.f32.xlu0 %v1868_v59 }
 0x2fb   : > { %1972 = vrot.lane.b32.xlu1 %v4265_v14, %s3491_s11 }
 0x2ff   : > { %1974 = vrot.lane.b32.xlu1 %v4259_v2, %s3491_s11 }
 0x300   : > { %1970 = vrot.lane.b32.xlu0 %v4261_v57, %s3491_s11 }
 0x303   : > { %1976 = vrot.lane.b32.xlu1 %v4263_v16, %s3491_s11 }
 0x304   : > { %1978 = vrot.lane.b32.xlu0 %v4277_v47, %s3491_s11 }
 0x307   : > { %1980 = vrot.lane.b32.xlu1 %v4271_v21, %s3491_s11 }
 0x308   : > { %1982 = vrot.lane.b32.xlu0 %v4285_v30, %s3491_s11 }
 0x30b   : > { %1984 = vrot.lane.b32.xlu1 %v4281_v41, %s3491_s11 }
 0x30c   : > { %1986 = vrot.lane.b32.xlu0 %v4293_v58, %s3491_s11 }
 0x30f   : > { %1988 = vrot.lane.b32.xlu1 %v4291_v3, %s3491_s11 }
 0x310   : > { %1990 = vrot.lane.b32.xlu0 %v4301_v5, %s3491_s11 }
 0x313   : > { %1992 = vrot.lane.b32.xlu1 %v4299_v15, %s3491_s11 }
 0x314   : > { %1994 = vrot.lane.b32.xlu0 %v4309_v37, %s3491_s11 }
 0x317   : > { %1996 = vrot.lane.b32.xlu1 %v4303_v10, %s3491_s11 }
 0x318   : > { %1998 = vrot.lane.b32.xlu0 %v4317_v0, %s3491_s11 }
 0x31b   : > { %2000 = vrot.lane.b32.xlu1 %v4313_v6, %s3491_s11 }
 0x31c   : > { %2002 = vrot.lane.b32.xlu0 %v4325_v45, %s3491_s11 }
 0x31f   : > { %2004 = vrot.lane.b32.xlu1 %v4323_v39, %s3491_s11 }
 0x320   : > { %2006 = vrot.lane.b32.xlu0 %v4333_v19, %s3491_s11 }
 0x323   : > { %2008 = vrot.lane.b32.xlu1 %v4331_v1, %s3491_s11 }
 0x324   : > { %2010 = vrot.lane.b32.xlu0 %v4341_v34, %s3491_s11 }
 0x327   : > { %2012 = vrot.lane.b32.xlu1 %v4335_v24, %s3491_s11 }
 0x328   : > { %2014 = vrot.lane.b32.xlu0 %v4349_v7, %s3491_s11 }
 0x32b   : > { %2016 = vrot.lane.b32.xlu1 %v4345_v32, %s3491_s11 }
 0x32c   : > { %2018 = vrot.lane.b32.xlu0 %v4357_v38, %s3491_s11 }
 0x32f   : > { %2020 = vrot.lane.b32.xlu1 %v4355_v40, %s3491_s11 }
 0x330   : > { %2022 = vrot.lane.b32.xlu0 %v4371_v11, %s3491_s11 }
 0x333   : > { %2024 = vrot.lane.b32.xlu1 %v4369_v49, %s3491_s11 }
 0x334   : > { %2026 = vrot.lane.b32.xlu0 %v4384_v12, %s3491_s11 }
 0x337   : > { %v4617_v62 = vpop.xlane.xlu0 %1779  ;;  %2028 = vrot.lane.b32.xlu1 %v4377_v56, %s3491_s11  ;;  %v4627_v63 = vpop.xlane.xlu1 %1782 }
 0x338   : > { %5788 = vst [vmem:[#allocation26_spill] sm:$0xff] %v4617_v62  ;;  %2030 = vrot.lane.b32.xlu0 %v4393_v18, %s3491_s11  ;;  %5790 = vst [vmem:[#allocation28_spill] sm:$0xff] %v4627_v63 }
 0x33b   : > { %v4623_v22 = vpop.xlane.xlu0 %1785  ;;  %2032 = vrot.lane.b32.xlu1 %v4391_v26, %s3491_s11 }
 0x33c   : > { %5789 = vst [vmem:[#allocation27_spill] sm:$0xff] %v4623_v22 }
 0x33f   : > { %v4629_v55 = vpop.xlane.xlu0 %1788 }
 0x340   : > { %5791 = vst [vmem:[#allocation29_spill] sm:$0xff] %v4629_v55 }
 0x343   : > { %v4631_v60 = vpop.xlane.xlu1 %1794  ;;  %v4633_v4 = vpop.xlane.xlu0 %1791 }
 0x344   : > { %5792 = vst [vmem:[#allocation30_spill] sm:$0xff] %v4631_v60  ;;  %5793 = vst [vmem:[#allocation31_spill] sm:$0xff] %v4633_v4 }
 0x347   : > { %v4635_v23 = vpop.xlane.xlu1 %1800  ;;  %v4637_v53 = vpop.xlane.xlu0 %1797 }
 0x348   : > { %5794 = vst [vmem:[#allocation32_spill] sm:$0xff] %v4635_v23  ;;  %5795 = vst [vmem:[#allocation33_spill] sm:$0xff] %v4637_v53 }
 0x34b   : > { %v4639_v17 = vpop.xlane.xlu1 %1806  ;;  %v4641_v52 = vpop.xlane.xlu0 %1803 }
 0x34c   : > { %5796 = vst [vmem:[#allocation34_spill] sm:$0xff] %v4639_v17  ;;  %5797 = vst [vmem:[#allocation35_spill] sm:$0xff] %v4641_v52 }
 0x34f   : > { %v4643_v59 = vpop.xlane.xlu1 %1812  ;;  %v4645_v9 = vpop.xlane.xlu0 %1809 }
 0x350   : > { %5798 = vst [vmem:[#allocation36_spill] sm:$0xff] %v4643_v59  ;;  %5799 = vst [vmem:[#allocation37_spill] sm:$0xff] %v4645_v9 }
 0x353   : > { %v4647_v48 = vpop.xlane.xlu1 %1818  ;;  %v4649_v22 = vpop.xlane.xlu0 %1815 }
 0x354   : > { %5800 = vst [vmem:[#allocation38_spill] sm:$0xff] %v4647_v48  ;;  %5801 = vst [vmem:[#allocation39_spill] sm:$0xff] %v4649_v22 }
 0x357   : > { %v4651_v55 = vpop.xlane.xlu1 %1824  ;;  %v4653_v60 = vpop.xlane.xlu0 %1821 }
 0x358   : > { %5802 = vst [vmem:[#allocation40_spill] sm:$0xff] %v4651_v55  ;;  %5803 = vst [vmem:[#allocation41_spill] sm:$0xff] %v4653_v60 }
 0x35b   : > { %v4655_v4 = vpop.xlane.xlu1 %1830  ;;  %v4657_v23 = vpop.xlane.xlu0 %1827 }
 0x35c   : > { %5804 = vst [vmem:[#allocation42_spill] sm:$0xff] %v4655_v4  ;;  %5805 = vst [vmem:[#allocation43_spill] sm:$0xff] %v4657_v23 }
 0x35f   : > { %v4659_v53 = vpop.xlane.xlu1 %1836  ;;  %v4661_v17 = vpop.xlane.xlu0 %1833 }
 0x360   : > { %5806 = vst [vmem:[#allocation44_spill] sm:$0xff] %v4659_v53  ;;  %5807 = vst [vmem:[#allocation45_spill] sm:$0xff] %v4661_v17 }
 0x363   : > { %v4663_v52 = vpop.xlane.xlu1 %1842  ;;  %v4665_v59 = vpop.xlane.xlu0 %1839 }
 0x364   : > { %5808 = vst [vmem:[#allocation46_spill] sm:$0xff] %v4663_v52  ;;  %5809 = vst [vmem:[#allocation47_spill] sm:$0xff] %v4665_v59 }
 0x367   : > { %v4667_v9 = vpop.xlane.xlu1 %1848  ;;  %v4669_v48 = vpop.xlane.xlu0 %1845 }
 0x368   : > { %5810 = vst [vmem:[#allocation48_spill] sm:$0xff] %v4667_v9  ;;  %5811 = vst [vmem:[#allocation49_spill] sm:$0xff] %v4669_v48 }
 0x36b   : > { %v4671_v22 = vpop.xlane.xlu1 %1854  ;;  %v4673_v55 = vpop.xlane.xlu0 %1851 }
 0x36c   : > { %5812 = vst [vmem:[#allocation50_spill] sm:$0xff] %v4671_v22  ;;  %5813 = vst [vmem:[#allocation51_spill] sm:$0xff] %v4673_v55 }
 0x36f   : > { %v4675_v60 = vpop.xlane.xlu1 %1860  ;;  %v4677_v4 = vpop.xlane.xlu0 %1857 }
 0x370   : > { %5814 = vst [vmem:[#allocation52_spill] sm:$0xff] %v4675_v60  ;;  %5815 = vst [vmem:[#allocation53_spill] sm:$0xff] %v4677_v4 }
 0x373   : > { %v4679_v23 = vpop.xlane.xlu1 %1866  ;;  %v4681_v53 = vpop.xlane.xlu0 %1863 }
 0x374   : > { %5816 = vst [vmem:[#allocation54_spill] sm:$0xff] %v4679_v23  ;;  %5817 = vst [vmem:[#allocation55_spill] sm:$0xff] %v4681_v53 }
 0x377   : > { %v4683_v17 = vpop.xlane.xlu1 %1872  ;;  %v4685_v52 = vpop.xlane.xlu0 %1869 }
 0x378   : > { %5818 = vst [vmem:[#allocation56_spill] sm:$0xff] %v4683_v17  ;;  %5819 = vst [vmem:[#allocation57_spill] sm:$0xff] %v4685_v52 }
 0x37b   : > { %v1973_v59 = vpop.permute.xlu1 %1972  ;;  %v1971_v9 = vpop.permute.xlu0 %1970 }
 0x37c   : > { %v2069_v48 = vsel %vm1457_vm11, %v1973_v59, 0.0  ;;  %v2066_v22 = vsel %vm1457_vm11, %v1971_v9, 0.0 }
 0x37d   : > { %2070 = vadd.xlane.f32.xlu1 %v2069_v48  ;;  %2067 = vadd.xlane.f32.xlu0 %v2066_v22 }
 0x37f   : > { %v1975_v55 = vpop.permute.xlu1 %1974  ;;  %v1979_v60 = vpop.permute.xlu0 %1978 }
 0x380   : > { %v2072_v4 = vsel %vm1457_vm11, %v1975_v55, 0.0  ;;  %v2078_v52 = vsel %vm1457_vm11, %v1979_v60, 0.0 }
 0x381   : > { %2073 = vadd.xlane.f32.xlu0 %v2072_v4 }
 0x383   : > { %v1977_v23 = vpop.permute.xlu1 %1976  ;;  %v1983_v62 = vpop.permute.xlu0 %1982 }
 0x384   : > { %v2075_v53 = vsel %vm1457_vm11, %v1977_v23, 0.0  ;;  %v2084_v22 = vsel %vm1457_vm11, %v1983_v62, 0.0 }
 0x385   : > { %2076 = vadd.xlane.f32.xlu0 %v2075_v53 }
 0x387   : > { %v1981_v17 = vpop.permute.xlu1 %1980  ;;  %v1987_v63 = vpop.permute.xlu0 %1986 }
 0x388   : > { %v2081_v59 = vsel %vm1457_vm11, %v1981_v17, 0.0  ;;  %v2090_v4 = vsel %vm1457_vm11, %v1987_v63, 0.0 }
 0x389   : > { %2082 = vadd.xlane.f32.xlu1 %v2081_v59  ;;  %2079 = vadd.xlane.f32.xlu0 %v2078_v52 }
 0x38b   : > { %v1985_v9 = vpop.permute.xlu1 %1984  ;;  %v1991_v48 = vpop.permute.xlu0 %1990 }
 0x38c   : > { %v2087_v55 = vsel %vm1457_vm11, %v1985_v9, 0.0  ;;  %v2096_v17 = vsel %vm1457_vm11, %v1991_v48, 0.0 }
 0x38d   : > { %2088 = vadd.xlane.f32.xlu1 %v2087_v55  ;;  %2085 = vadd.xlane.f32.xlu0 %v2084_v22 }
 0x38f   : > { %v1989_v23 = vpop.permute.xlu1 %1988  ;;  %v1995_v53 = vpop.permute.xlu0 %1994 }
 0x390   : > { %v2093_v60 = vsel %vm1457_vm11, %v1989_v23, 0.0  ;;  %v2102_v9 = vsel %vm1457_vm11, %v1995_v53, 0.0 }
 0x391   : > { %2094 = vadd.xlane.f32.xlu1 %v2093_v60  ;;  %2091 = vadd.xlane.f32.xlu0 %v2090_v4 }
 0x393   : > { %v1993_v59 = vpop.permute.xlu1 %1992  ;;  %v1999_v52 = vpop.permute.xlu0 %1998 }
 0x394   : > { %v2099_v62 = vsel %vm1457_vm11, %v1993_v59, 0.0  ;;  %v2108_v23 = vsel %vm1457_vm11, %v1999_v52, 0.0 }
 0x395   : > { %2100 = vadd.xlane.f32.xlu1 %v2099_v62  ;;  %2097 = vadd.xlane.f32.xlu0 %v2096_v17 }
 0x397   : > { %v1997_v55 = vpop.permute.xlu1 %1996  ;;  %v2003_v22 = vpop.permute.xlu0 %2002 }
 0x398   : > { %v2105_v63 = vsel %vm1457_vm11, %v1997_v55, 0.0  ;;  %v2114_v59 = vsel %vm1457_vm11, %v2003_v22, 0.0 }
 0x399   : > { %2106 = vadd.xlane.f32.xlu1 %v2105_v63  ;;  %2103 = vadd.xlane.f32.xlu0 %v2102_v9 }
 0x39b   : > { %v2001_v60 = vpop.permute.xlu1 %2000  ;;  %v2007_v4 = vpop.permute.xlu0 %2006 }
 0x39c   : > { %v2111_v48 = vsel %vm1457_vm11, %v2001_v60, 0.0  ;;  %v2120_v55 = vsel %vm1457_vm11, %v2007_v4, 0.0 }
 0x39d   : > { %2112 = vadd.xlane.f32.xlu1 %v2111_v48  ;;  %2109 = vadd.xlane.f32.xlu0 %v2108_v23 }
 0x39f   : > { %v2005_v62 = vpop.permute.xlu1 %2004  ;;  %v2011_v17 = vpop.permute.xlu0 %2010 }
 0x3a0   : > { %v2117_v53 = vsel %vm1457_vm11, %v2005_v62, 0.0  ;;  %v2126_v60 = vsel %vm1457_vm11, %v2011_v17, 0.0 }
 0x3a1   : > { %2118 = vadd.xlane.f32.xlu1 %v2117_v53  ;;  %2115 = vadd.xlane.f32.xlu0 %v2114_v59 }
 0x3a3   : > { %v2009_v63 = vpop.permute.xlu1 %2008  ;;  %v2015_v9 = vpop.permute.xlu0 %2014 }
 0x3a4   : > { %v2123_v52 = vsel %vm1457_vm11, %v2009_v63, 0.0  ;;  %v2132_v62 = vsel %vm1457_vm11, %v2015_v9, 0.0 }
 0x3a5   : > { %2124 = vadd.xlane.f32.xlu1 %v2123_v52  ;;  %2121 = vadd.xlane.f32.xlu0 %v2120_v55 }
 0x3a7   : > { %v2013_v48 = vpop.permute.xlu1 %2012  ;;  %v2019_v23 = vpop.permute.xlu0 %2018 }
 0x3a8   : > { %v2129_v22 = vsel %vm1457_vm11, %v2013_v48, 0.0  ;;  %v2138_v63 = vsel %vm1457_vm11, %v2019_v23, 0.0 }
 0x3a9   : > { %2130 = vadd.xlane.f32.xlu1 %v2129_v22  ;;  %2127 = vadd.xlane.f32.xlu0 %v2126_v60 }
 0x3ab   : > { %v2017_v53 = vpop.permute.xlu1 %2016  ;;  %v2023_v59 = vpop.permute.xlu0 %2022 }
 0x3ac   : > { %v2135_v4 = vsel %vm1457_vm11, %v2017_v53, 0.0  ;;  %v2144_v48 = vsel %vm1457_vm11, %v2023_v59, 0.0 }
 0x3ad   : > { %2136 = vadd.xlane.f32.xlu1 %v2135_v4  ;;  %2133 = vadd.xlane.f32.xlu0 %v2132_v62 }
 0x3af   : > { %v2021_v52 = vpop.permute.xlu1 %2020  ;;  %v2027_v17 = vpop.permute.xlu0 %2026 }
 0x3b0   : > { %v2141_v55 = vsel %vm1457_vm11, %v2021_v52, 0.0  ;;  %v2150_v9 = vsel %vm1457_vm11, %v2027_v17, 0.0 }
 0x3b1   : > { %2142 = vadd.xlane.f32.xlu1 %v2141_v55  ;;  %2139 = vadd.xlane.f32.xlu0 %v2138_v63 }
 0x3b3   : > { %v2025_v22 = vpop.permute.xlu1 %2024  ;;  %v2031_v4 = vpop.permute.xlu0 %2030 }
 0x3b4   : > { %v2147_v60 = vsel %vm1457_vm11, %v2025_v22, 0.0  ;;  %v2156_v23 = vsel %vm1457_vm11, %v2031_v4, 0.0 }
 0x3b5   : > { %2148 = vadd.xlane.f32.xlu1 %v2147_v60  ;;  %2145 = vadd.xlane.f32.xlu0 %v2144_v48 }
 0x3b7   : > { %v2029_v53 = vpop.permute.xlu1 %2028 }
 0x3b8   : > { %v2153_v62 = vsel %vm1457_vm11, %v2029_v53, 0.0 }
 0x3b9   : > { %2154 = vadd.xlane.f32.xlu1 %v2153_v62  ;;  %2151 = vadd.xlane.f32.xlu0 %v2150_v9 }
 0x3bb   : > { %v2033_v52 = vpop.permute.xlu1 %2032 }
 0x3bc   : > { %v2159_v63 = vsel %vm1457_vm11, %v2033_v52, 0.0 }
 0x3bd   : > { %2160 = vadd.xlane.f32.xlu1 %v2159_v63  ;;  %2157 = vadd.xlane.f32.xlu0 %v2156_v23 }
 0x3ce   : > { %2260 = vrot.lane.b32.xlu1 %v4265_v14, %s3492_s14 }
 0x3d2   : > { %2262 = vrot.lane.b32.xlu1 %v4259_v2, %s3492_s14 }
 0x3d3   : > { %2258 = vrot.lane.b32.xlu0 %v4261_v57, %s3492_s14 }
 0x3d6   : > { %2264 = vrot.lane.b32.xlu1 %v4263_v16, %s3492_s14 }
 0x3d7   : > { %2266 = vrot.lane.b32.xlu0 %v4277_v47, %s3492_s14 }
 0x3da   : > { %2268 = vrot.lane.b32.xlu1 %v4271_v21, %s3492_s14 }
 0x3db   : > { %2270 = vrot.lane.b32.xlu0 %v4285_v30, %s3492_s14 }
 0x3de   : > { %2272 = vrot.lane.b32.xlu1 %v4281_v41, %s3492_s14 }
 0x3df   : > { %2274 = vrot.lane.b32.xlu0 %v4293_v58, %s3492_s14 }
 0x3e2   : > { %2276 = vrot.lane.b32.xlu1 %v4291_v3, %s3492_s14 }
 0x3e3   : > { %2278 = vrot.lane.b32.xlu0 %v4301_v5, %s3492_s14 }
 0x3e6   : > { %2280 = vrot.lane.b32.xlu1 %v4299_v15, %s3492_s14 }
 0x3e7   : > { %2282 = vrot.lane.b32.xlu0 %v4309_v37, %s3492_s14 }
 0x3ea   : > { %2284 = vrot.lane.b32.xlu1 %v4303_v10, %s3492_s14 }
 0x3eb   : > { %2286 = vrot.lane.b32.xlu0 %v4317_v0, %s3492_s14 }
 0x3ee   : > { %2288 = vrot.lane.b32.xlu1 %v4313_v6, %s3492_s14 }
 0x3ef   : > { %2290 = vrot.lane.b32.xlu0 %v4325_v45, %s3492_s14 }
 0x3f2   : > { %2292 = vrot.lane.b32.xlu1 %v4323_v39, %s3492_s14 }
 0x3f3   : > { %2294 = vrot.lane.b32.xlu0 %v4333_v19, %s3492_s14 }
 0x3f6   : > { %2296 = vrot.lane.b32.xlu1 %v4331_v1, %s3492_s14 }
 0x3f7   : > { %2298 = vrot.lane.b32.xlu0 %v4341_v34, %s3492_s14 }
 0x3fa   : > { %2300 = vrot.lane.b32.xlu1 %v4335_v24, %s3492_s14 }
 0x3fb   : > { %2302 = vrot.lane.b32.xlu0 %v4349_v7, %s3492_s14 }
 0x3fe   : > { %2304 = vrot.lane.b32.xlu1 %v4345_v32, %s3492_s14 }
 0x3ff   : > { %2306 = vrot.lane.b32.xlu0 %v4357_v38, %s3492_s14 }
 0x402   : > { %2308 = vrot.lane.b32.xlu1 %v4355_v40, %s3492_s14 }
 0x403   : > { %2310 = vrot.lane.b32.xlu0 %v4371_v11, %s3492_s14 }
 0x406   : > { %2312 = vrot.lane.b32.xlu1 %v4369_v49, %s3492_s14 }
 0x407   : > { %2314 = vrot.lane.b32.xlu0 %v4384_v12, %s3492_s14 }
 0x40a   : > { %v4777_v2 = vpop.xlane.xlu0 %2067  ;;  %2316 = vrot.lane.b32.xlu1 %v4377_v56, %s3492_s14  ;;  %v4787_v16 = vpop.xlane.xlu1 %2070 }
 0x40b   : > { %2318 = vrot.lane.b32.xlu0 %v4393_v18, %s3492_s14 }
 0x40e   : > { %v4783_v57 = vpop.xlane.xlu0 %2073  ;;  %2320 = vrot.lane.b32.xlu1 %v4391_v26, %s3492_s14 }
 0x412   : > { %v4789_v14 = vpop.xlane.xlu0 %2076 }
 0x416   : > { %v4791_v21 = vpop.xlane.xlu1 %2082  ;;  %v4793_v47 = vpop.xlane.xlu0 %2079 }
 0x41a   : > { %v4795_v41 = vpop.xlane.xlu1 %2088  ;;  %v4797_v30 = vpop.xlane.xlu0 %2085 }
 0x41e   : > { %v4799_v3 = vpop.xlane.xlu1 %2094  ;;  %v4801_v58 = vpop.xlane.xlu0 %2091 }
 0x422   : > { %v4803_v15 = vpop.xlane.xlu1 %2100  ;;  %v4805_v5 = vpop.xlane.xlu0 %2097 }
 0x426   : > { %v4807_v10 = vpop.xlane.xlu1 %2106  ;;  %v4809_v37 = vpop.xlane.xlu0 %2103 }
 0x42a   : > { %v4811_v6 = vpop.xlane.xlu1 %2112  ;;  %v4813_v0 = vpop.xlane.xlu0 %2109 }
 0x42b   : > { %5820 = vst [vmem:[#allocation58_spill] sm:$0xff] %v4811_v6  ;;  %5821 = vst [vmem:[#allocation59_spill] sm:$0xff] %v4813_v0  ;;  %v5873_v6 = vld [vmem:[#allocation32_spill] sm:$0xff] }
 0x42e   : > { %v4815_v39 = vpop.xlane.xlu1 %2118  ;;  %v4817_v45 = vpop.xlane.xlu0 %2115 }
 0x42f   : > { %5822 = vst [vmem:[#allocation60_spill] sm:$0xff] %v4815_v39  ;;  %5823 = vst [vmem:[#allocation61_spill] sm:$0xff] %v4817_v45 }
 0x432   : > { %v4819_v1 = vpop.xlane.xlu1 %2124  ;;  %v4821_v19 = vpop.xlane.xlu0 %2121 }
 0x433   : > { %5824 = vst [vmem:[#allocation62_spill] sm:$0xff] %v4819_v1  ;;  %5825 = vst [vmem:[#allocation63_spill] sm:$0xff] %v4821_v19  ;;  %v5871_v1 = vld [vmem:[#allocation31_spill] sm:$0xff] }
 0x434   : > { %v1878_v45 = vmul.f32 0.5, %v5871_v1 }
 0x436   : > { %v4823_v24 = vpop.xlane.xlu1 %2130  ;;  %v4825_v34 = vpop.xlane.xlu0 %2127 }
 0x437   : > { %5826 = vst [vmem:[#allocation64_spill] sm:$0xff] %v4823_v24  ;;  %5827 = vst [vmem:[#allocation65_spill] sm:$0xff] %v4825_v34  ;;  %v5863_v34 = vld [vmem:[#allocation22_spill] sm:$0xff] }
 0x438   : > { %v4999_v24 = vmul.f32 0.5, %v5863_v34 }
 0x43a   : > { %v4827_v32 = vpop.xlane.xlu1 %2136  ;;  %v4829_v7 = vpop.xlane.xlu0 %2133 }
 0x43b   : > { %5828 = vst [vmem:[#allocation66_spill] sm:$0xff] %v4827_v32  ;;  %5829 = vst [vmem:[#allocation67_spill] sm:$0xff] %v4829_v7 }
 0x43e   : > { %v4831_v40 = vpop.xlane.xlu1 %2142  ;;  %v4833_v38 = vpop.xlane.xlu0 %2139 }
 0x43f   : > { %5830 = vst [vmem:[#allocation68_spill] sm:$0xff] %v4831_v40  ;;  %5831 = vst [vmem:[#allocation69_spill] sm:$0xff] %v4833_v38  ;;  %v5856_v38 = vld [vmem:[#allocation30_spill] sm:$0xff]  ;;  %v5869_v40 = vld [vmem:[#allocation25_spill] sm:$0xff] }
 0x442   : > { %v4835_v49 = vpop.xlane.xlu1 %2148  ;;  %v4837_v11 = vpop.xlane.xlu0 %2145 }
 0x443   : > { %5832 = vst [vmem:[#allocation70_spill] sm:$0xff] %v4835_v49  ;;  %5833 = vst [vmem:[#allocation71_spill] sm:$0xff] %v4837_v11  ;;  %v5855_v49 = vld [vmem:[#allocation29_spill] sm:$0xff] }
 0x446   : > { %v4839_v56 = vpop.xlane.xlu1 %2154  ;;  %v4841_v12 = vpop.xlane.xlu0 %2151 }
 0x447   : > { %5834 = vst [vmem:[#allocation72_spill] sm:$0xff] %v4839_v56  ;;  %5835 = vst [vmem:[#allocation73_spill] sm:$0xff] %v4841_v12  ;;  %v5850_v12 = vld [vmem:[#allocation26_spill] sm:$0xff] }
 0x44a   : > { %v4843_v26 = vpop.xlane.xlu1 %2160  ;;  %v4845_v18 = vpop.xlane.xlu0 %2157 }
 0x44b   : > { %5836 = vst [vmem:[#allocation74_spill] sm:$0xff] %v4843_v26  ;;  %5837 = vst [vmem:[#allocation75_spill] sm:$0xff] %v4845_v18 }
 0x44e   : > { %v2261_v59 = vpop.permute.xlu1 %2260  ;;  %v2259_v55 = vpop.permute.xlu0 %2258 }
 0x44f   : > { %v2357_v17 = vsel %vm1457_vm11, %v2261_v59, 0.0  ;;  %v2354_v48 = vsel %vm1457_vm11, %v2259_v55, 0.0 }
 0x450   : > { %2358 = vadd.xlane.f32.xlu1 %v2357_v17  ;;  %2355 = vadd.xlane.f32.xlu0 %v2354_v48 }
 0x452   : > { %v2263_v22 = vpop.permute.xlu1 %2262  ;;  %v2267_v60 = vpop.permute.xlu0 %2266 }
 0x453   : > { %v2360_v9 = vsel %vm1457_vm11, %v2263_v22, 0.0  ;;  %v2366_v23 = vsel %vm1457_vm11, %v2267_v60, 0.0 }
 0x454   : > { %2361 = vadd.xlane.f32.xlu0 %v2360_v9 }
 0x456   : > { %v2265_v53 = vpop.permute.xlu1 %2264  ;;  %v2271_v4 = vpop.permute.xlu0 %2270 }
 0x457   : > { %v2363_v62 = vsel %vm1457_vm11, %v2265_v53, 0.0  ;;  %v2372_v55 = vsel %vm1457_vm11, %v2271_v4, 0.0 }
 0x458   : > { %2364 = vadd.xlane.f32.xlu0 %v2363_v62 }
 0x45a   : > { %v2269_v52 = vpop.permute.xlu1 %2268  ;;  %v2275_v63 = vpop.permute.xlu0 %2274 }
 0x45b   : > { %v2369_v59 = vsel %vm1457_vm11, %v2269_v52, 0.0  ;;  %v2378_v9 = vsel %vm1457_vm11, %v2275_v63, 0.0 }
 0x45c   : > { %2370 = vadd.xlane.f32.xlu1 %v2369_v59  ;;  %2367 = vadd.xlane.f32.xlu0 %v2366_v23 }
 0x45e   : > { %v2273_v17 = vpop.permute.xlu1 %2272  ;;  %v2279_v48 = vpop.permute.xlu0 %2278 }
 0x45f   : > { %v2375_v22 = vsel %vm1457_vm11, %v2273_v17, 0.0  ;;  %v2384_v52 = vsel %vm1457_vm11, %v2279_v48, 0.0 }
 0x460   : > { %2376 = vadd.xlane.f32.xlu1 %v2375_v22  ;;  %2373 = vadd.xlane.f32.xlu0 %v2372_v55 }
 0x462   : > { %v2277_v53 = vpop.permute.xlu1 %2276  ;;  %v2283_v62 = vpop.permute.xlu0 %2282 }
 0x463   : > { %v2381_v60 = vsel %vm1457_vm11, %v2277_v53, 0.0  ;;  %v2390_v17 = vsel %vm1457_vm11, %v2283_v62, 0.0 }
 0x464   : > { %2382 = vadd.xlane.f32.xlu1 %v2381_v60  ;;  %2379 = vadd.xlane.f32.xlu0 %v2378_v9 }
 0x466   : > { %v2281_v59 = vpop.permute.xlu1 %2280  ;;  %v2287_v23 = vpop.permute.xlu0 %2286 }
 0x467   : > { %v2387_v4 = vsel %vm1457_vm11, %v2281_v59, 0.0  ;;  %v2396_v53 = vsel %vm1457_vm11, %v2287_v23, 0.0  ;;  %v3361_v23 = vld [vmem:[#allocation2 + $0x8] sm:$0xff] }
 0x468   : > { %2388 = vadd.xlane.f32.xlu1 %v2387_v4  ;;  %2385 = vadd.xlane.f32.xlu0 %v2384_v52 }
 0x46a   : > { %v2285_v22 = vpop.permute.xlu1 %2284  ;;  %v2291_v63 = vpop.permute.xlu0 %2290 }
 0x46b   : > { %v2393_v55 = vsel %vm1457_vm11, %v2285_v22, 0.0  ;;  %v2402_v48 = vsel %vm1457_vm11, %v2291_v63, 0.0  ;;  %v3364_v63 = vld [vmem:[#allocation2 + $0x10] sm:$0xff] }
 0x46c   : > { %2394 = vadd.xlane.f32.xlu1 %v2393_v55  ;;  %2391 = vadd.xlane.f32.xlu0 %v2390_v17  ;;  %v3362_v55 = vld [vmem:[#allocation2] sm:$0xff] }
 0x46e   : > { %v2289_v60 = vpop.permute.xlu1 %2288  ;;  %v2295_v4 = vpop.permute.xlu0 %2294 }
 0x46f   : > { %v2399_v9 = vsel %vm1457_vm11, %v2289_v60, 0.0  ;;  %v2408_v62 = vsel %vm1457_vm11, %v2295_v4, 0.0  ;;  %v3365_v60 = vld [vmem:[#allocation2 + $0x28] sm:$0xff] }
 0x470   : > { %2400 = vadd.xlane.f32.xlu1 %v2399_v9  ;;  %2397 = vadd.xlane.f32.xlu0 %v2396_v53  ;;  %v3363_v53 = vld [vmem:[#allocation2 + $0x18] sm:$0xff]  ;;  %v3366_v9 = vld [vmem:[#allocation2 + $0x20] sm:$0xff]  ;;  %v3369_v4 = vld [vmem:[#allocation2 + $0x48] sm:$0xff] }
 0x472   : > { %v2293_v59 = vpop.permute.xlu1 %2292 }
 0x473   : > { %v2405_v52 = vsel %vm1457_vm11, %v2293_v59, 0.0  ;;  %v3368_v59 = vld [vmem:[#allocation2 + $0x30] sm:$0xff] }
 0x474   : > { %2406 = vadd.xlane.f32.xlu1 %v2405_v52  ;;  %2403 = vadd.xlane.f32.xlu0 %v2402_v48  ;;  %v3367_v48 = vld [vmem:[#allocation2 + $0x38] sm:$0xff]  ;;  %v3370_v52 = vld [vmem:[#allocation2 + $0x40] sm:$0xff] }
 0x476   : > { %v2297_v22 = vpop.permute.xlu1 %2296 }
 0x477   : > { %v2411_v17 = vsel %vm1457_vm11, %v2297_v22, 0.0  ;;  %v3372_v22 = vld [vmem:[#allocation2 + $0x50] sm:$0xff] }
 0x478   : > { %2412 = vadd.xlane.f32.xlu1 %v2411_v17  ;;  %2409 = vadd.xlane.f32.xlu0 %v2408_v62  ;;  %v3371_v62 = vld [vmem:[#allocation2 + $0x58] sm:$0xff]  ;;  %v3373_v17 = vld [vmem:[#allocation2 + $0x68] sm:$0xff] }
 0x47c   : > { %2612 = vadd.xlane.f32.xlu1 %v3361_v23  ;;  %2610 = vadd.xlane.f32.xlu0 %v3362_v55  ;;  %v3374_v23 = vld [vmem:[#allocation2 + $0x60] sm:$0xff]  ;;  %v3375_v55 = vld [vmem:[#allocation2 + $0x78] sm:$0xff] }
 0x480   : > { %2616 = vadd.xlane.f32.xlu1 %v3363_v53  ;;  %2614 = vadd.xlane.f32.xlu0 %v3364_v63  ;;  %v3376_v53 = vld [vmem:[#allocation2 + $0x70] sm:$0xff]  ;;  %v3377_v63 = vld [vmem:[#allocation2 + $0x88] sm:$0xff] }
 0x484   : > { %2620 = vadd.xlane.f32.xlu1 %v3365_v60  ;;  %2618 = vadd.xlane.f32.xlu0 %v3366_v9  ;;  %v3378_v60 = vld [vmem:[#allocation2 + $0x80] sm:$0xff]  ;;  %v3379_v9 = vld [vmem:[#allocation2 + $0x98] sm:$0xff] }
 0x488   : > { %2624 = vadd.xlane.f32.xlu1 %v3367_v48  ;;  %2622 = vadd.xlane.f32.xlu0 %v3368_v59  ;;  %v3380_v48 = vld [vmem:[#allocation2 + $0x90] sm:$0xff]  ;;  %v3381_v59 = vld [vmem:[#allocation2 + $0xa8] sm:$0xff] }
 0x48c   : > { %2628 = vadd.xlane.f32.xlu1 %v3369_v4  ;;  %2626 = vadd.xlane.f32.xlu0 %v3370_v52  ;;  %v3382_v4 = vld [vmem:[#allocation2 + $0xa0] sm:$0xff]  ;;  %v3383_v52 = vld [vmem:[#allocation2 + $0xb8] sm:$0xff] }
 0x490   : > { %2632 = vadd.xlane.f32.xlu1 %v3371_v62  ;;  %2630 = vadd.xlane.f32.xlu0 %v3372_v22  ;;  %v3384_v62 = vld [vmem:[#allocation2 + $0xb0] sm:$0xff]  ;;  %v3385_v22 = vld [vmem:[#allocation2 + $0xc8] sm:$0xff] }
 0x494   : > { %2636 = vadd.xlane.f32.xlu1 %v3373_v17  ;;  %2634 = vadd.xlane.f32.xlu0 %v3374_v23  ;;  %v3386_v17 = vld [vmem:[#allocation2 + $0xc0] sm:$0xff]  ;;  %v2299_v23 = vpop.permute.xlu0 %2298 }
 0x498   : > { %2640 = vadd.xlane.f32.xlu1 %v3375_v55  ;;  %2638 = vadd.xlane.f32.xlu0 %v3376_v53  ;;  %v2301_v55 = vpop.permute.xlu1 %2300  ;;  %v3387_v53 = vld [vmem:[#allocation2 + $0xd8] sm:$0xff] }
 0x49c   : > { %2644 = vadd.xlane.f32.xlu1 %v3377_v63  ;;  %2642 = vadd.xlane.f32.xlu0 %v3378_v60  ;;  %v3388_v63 = vld [vmem:[#allocation2 + $0xd0] sm:$0xff]  ;;  %v2303_v60 = vpop.permute.xlu0 %2302 }
 0x4a0   : > { %2648 = vadd.xlane.f32.xlu1 %v3379_v9  ;;  %2646 = vadd.xlane.f32.xlu0 %v3380_v48  ;;  %v2305_v9 = vpop.permute.xlu1 %2304  ;;  %v2307_v48 = vpop.permute.xlu0 %2306 }
 0x4a4   : > { %2652 = vadd.xlane.f32.xlu1 %v3381_v59  ;;  %2650 = vadd.xlane.f32.xlu0 %v3382_v4  ;;  %v2309_v59 = vpop.permute.xlu1 %2308  ;;  %v2414_v4 = vsel %vm1457_vm11, %v2299_v23, 0.0 }
 0x4a8   : > { %2656 = vadd.xlane.f32.xlu1 %v3383_v52  ;;  %2654 = vadd.xlane.f32.xlu0 %v3384_v62  ;;  %v2417_v52 = vsel %vm1457_vm11, %v2301_v55, 0.0  ;;  %v2420_v62 = vsel %vm1457_vm11, %v2303_v60, 0.0 }
 0x4ac   : > { %2660 = vadd.xlane.f32.xlu1 %v3385_v22  ;;  %2658 = vadd.xlane.f32.xlu0 %v3386_v17  ;;  %v2423_v22 = vsel %vm1457_vm11, %v2305_v9, 0.0  ;;  %v2311_v17 = vpop.permute.xlu0 %2310 }
 0x4ad   : > { %v2432_v55 = vsel %vm1457_vm11, %v2311_v17, 0.0  ;;  %v4893_v17 = vmul.f32 0.5, %v4469_v28  ;;  %v5845_v28 = vld [vmem:[#allocation16_spill] sm:$0xff] }
 0x4ae   : > { %5864 = vst [vmem:[#allocation16_spill] sm:$0xff] %v4999_v24  ;;  %v5889_v24 = vld [vmem:[#allocation39_spill] sm:$0xff] }
 0x4b0   : > { %2664 = vadd.xlane.f32.xlu1 %v3387_v53  ;;  %2662 = vadd.xlane.f32.xlu0 %v3388_v63 }
 0x4b4   : > { %2668 = vadd.xlane.f32.xlu1 %v4359_v31  ;;  %2666 = vadd.xlane.f32.xlu0 %v4361_v54  ;;  %v2313_v31 = vpop.permute.xlu1 %2312  ;;  %v2426_v54 = vsel %vm1457_vm11, %v2307_v48, 0.0  ;;  %v4882_v48 = vmul.f32 0.5, %v4461_v13  ;;  %v4899_v13 = vmul.f32 0.5, %v4473_v44  ;;  %v4914_v44 = vmul.f32 0.5, %v4479_v42 }
 0x4b5   : > { %v2435_v53 = vsel %vm1457_vm11, %v2313_v31, 0.0  ;;  %v4896_v31 = vmul.f32 0.5, %v4471_v35  ;;  %v4933_v42 = vmul.f32 0.5, %v4491_v51 }
 0x4b8   : > { %2672 = vadd.xlane.f32.xlu1 %v4373_v36  ;;  %2670 = vadd.xlane.f32.xlu0 %v4375_v43  ;;  %v2429_v36 = vsel %vm1457_vm11, %v2309_v59, 0.0  ;;  %v2315_v43 = vpop.permute.xlu0 %2314  ;;  %v2317_v23 = vpop.permute.xlu1 %2316 }
 0x4b9   : > { %v2438_v63 = vsel %vm1457_vm11, %v2315_v43, 0.0  ;;  %v2441_v60 = vsel %vm1457_vm11, %v2317_v23, 0.0  ;;  %v4909_v43 = vmul.f32 0.5, %v4477_v33  ;;  %v4929_v33 = vmul.f32 0.5, %v4489_v46  ;;  %v5842_v46 = vld [vmem:[#allocation13_spill] sm:$0xff] }
 0x4ba   : > { %v4949_v35 = vmul.f32 0.5, %v5842_v46  ;;  %v5859_v46 = vld [vmem:[#allocation20_spill] sm:$0xff] }
 0x4bc   : > { %2418 = vadd.xlane.f32.xlu1 %v2417_v52  ;;  %2415 = vadd.xlane.f32.xlu0 %v2414_v4  ;;  %v2319_v9 = vpop.permute.xlu0 %2318  ;;  %v2321_v4 = vpop.permute.xlu1 %2320 }
 0x4bd   : > { %v2444_v59 = vsel %vm1457_vm11, %v2319_v9, 0.0  ;;  %v2447_v52 = vsel %vm1457_vm11, %v2321_v4, 0.0  ;;  %v5838_v9 = vld [vmem:[#allocation9_spill] sm:$0xff]  ;;  %v5839_v4 = vld [vmem:[#allocation10_spill] sm:$0xff] }
 0x4c0   : > { %2424 = vadd.xlane.f32.xlu1 %v2423_v22  ;;  %2421 = vadd.xlane.f32.xlu0 %v2420_v62  ;;  %v4887_v62 = vmul.f32 0.5, %v4463_v27  ;;  %v4890_v22 = vmul.f32 0.5, %v4467_v29  ;;  %v5857_v27 = vld [vmem:[#allocation19_spill] sm:$0xff] }
 0x4c1   : > { %v4989_v7 = vmul.f32 0.5, %v5857_v27  ;;  %v5008_v27 = vmul.f32 0.5, %v5869_v40  ;;  %v1881_v40 = vmul.f32 0.5, %v5873_v6 }
 0x4c2   : > { %v5876_v0 = vceil.f32 %v4887_v62  ;;  %v5884_v62 = vld [vmem:[#allocation34_spill] sm:$0xff] }
 0x4c3   : > { %5858 = vst [vmem:[#allocation13_spill] sm:$0xff] %v4989_v7  ;;  %5870 = vst [vmem:[#allocation26_spill] sm:$0xff] %v5008_v27 }
 0x4c4   : > { %2430 = vadd.xlane.f32.xlu1 %v2429_v36  ;;  %2427 = vadd.xlane.f32.xlu0 %v2426_v54  ;;  %v4903_v36 = vmul.f32 0.5, %v4475_v50  ;;  %v4920_v50 = vmul.f32 0.5, %v4483_v20  ;;  %v4939_v20 = vmul.f32 0.5, %v5839_v4  ;;  %v5844_v4 = vld [vmem:[#allocation15_spill] sm:$0xff] }
 0x4c5   : > { %v4957_v54 = vmul.f32 0.5, %v5844_v4  ;;  %v5854_v4 = vld [vmem:[#allocation27_spill] sm:$0xff] }
 0x4c6   : > { %v1876_v18 = vmul.f32 0.5, %v5854_v4  ;;  %v5865_v4 = vld [vmem:[#allocation23_spill] sm:$0xff] }
 0x4c8   : > { %2436 = vadd.xlane.f32.xlu1 %v2435_v53  ;;  %2433 = vadd.xlane.f32.xlu0 %v2432_v55  ;;  %v4917_v55 = vmul.f32 0.5, %v4481_v8  ;;  %v4923_v53 = vmul.f32 0.5, %v4485_v61  ;;  %v4936_v8 = vmul.f32 0.5, %v5838_v9  ;;  %v5843_v9 = vld [vmem:[#allocation14_spill] sm:$0xff]  ;;  %v1877_v61 = vmul.f32 0.5, %v5855_v49 }
 0x4c9   : > { %v4954_v29 = vmul.f32 0.5, %v5843_v9  ;;  %v4967_v9 = vmul.f32 0.5, %v5845_v28  ;;  %v5852_v28 = vld [vmem:[#allocation18_spill] sm:$0xff]  ;;  %v5002_v49 = vmul.f32 0.5, %v5865_v4 }
 0x4ca   : > { %v4982_v11 = vmul.f32 0.5, %v5852_v28  ;;  %v1909_v34 = vceil.f32 %v1877_v61  ;;  %v5875_v61 = vceil.f32 %v4893_v17  ;;  %v5882_v17 = vceil.f32 %v4896_v31  ;;  %v5886_v28 = vld [vmem:[#allocation36_spill] sm:$0xff] }
 0x4cb   : > { %5846 = vst [vmem:[#allocation9_spill] sm:$0xff] %v4967_v9  ;;  %v1885_v27 = vmul.f32 0.5, %v5886_v28  ;;  %v5891_v31 = vceil.f32 %v4899_v13  ;;  %v5901_v13 = vceil.f32 %v4903_v36 }
 0x4cc   : > { %2442 = vadd.xlane.f32.xlu1 %v2441_v60  ;;  %2439 = vadd.xlane.f32.xlu0 %v2438_v63  ;;  %v4926_v63 = vmul.f32 0.5, %v4487_v25  ;;  %v5841_v25 = vld [vmem:[#allocation12_spill] sm:$0xff]  ;;  %v1874_v60 = vmul.f32 0.5, %v5850_v12  ;;  %v5861_v12 = vld [vmem:[#allocation21_spill] sm:$0xff] }
 0x4cd   : > { %v4946_v23 = vmul.f32 0.5, %v5841_v25  ;;  %v5849_v25 = vld [vmem:[#allocation28_spill] sm:$0xff]  ;;  %5853 = vst [vmem:[#allocation12_spill] sm:$0xff] %v4982_v11  ;;  %v4995_v32 = vmul.f32 0.5, %v5861_v12 }
 0x4ce   : > { %v1875_v51 = vmul.f32 0.5, %v5849_v25  ;;  %v4992_v25 = vmul.f32 0.5, %v5859_v46  ;;  %v1906_v46 = vceil.f32 %v1874_v60  ;;  %v5878_v60 = vceil.f32 %v4882_v48 }
 0x4cf   : > { %5862 = vst [vmem:[#allocation15_spill] sm:$0xff] %v4995_v32 }
 0x4d0   : > { %2448 = vadd.xlane.f32.xlu1 %v2447_v52  ;;  %2445 = vadd.xlane.f32.xlu0 %v2444_v59  ;;  %v5840_v59 = vld [vmem:[#allocation11_spill] sm:$0xff]  ;;  %5860 = vst [vmem:[#allocation14_spill] sm:$0xff] %v4992_v25  ;;  %v1907_v9 = vceil.f32 %v1875_v51  ;;  %v5029_v4 = vadd.f32 %v1906_v46, %v5876_v0  ;;  %v1883_v0 = vmul.f32 0.5, %v5884_v62  ;;  %v1913_v46 = vceil.f32 %v1881_v40  ;;  %v5894_v40 = vld [vmem:[#allocation42_spill] sm:$0xff] }
 0x4d1   : > { %v4943_v52 = vmul.f32 0.5, %v5840_v59  ;;  %v5847_v59 = vld [vmem:[#allocation17_spill] sm:$0xff]  ;;  %v1891_v32 = vmul.f32 0.5, %v5894_v40 }
 0x4d2   : > { %v4973_v26 = vmul.f32 0.5, %v5847_v59  ;;  %v1879_v59 = vmul.f32 0.5, %v5856_v38  ;;  %5866 = vst [vmem:[#allocation17_spill] sm:$0xff] %v5002_v49  ;;  %v5867_v38 = vld [vmem:[#allocation24_spill] sm:$0xff] }
 0x4d3   : > { %v5005_v19 = vmul.f32 0.5, %v5867_v38  ;;  %v1910_v38 = vceil.f32 %v1878_v45  ;;  %v5885_v45 = vld [vmem:[#allocation35_spill] sm:$0xff] }
 0x4d4   : > { %5848 = vst [vmem:[#allocation10_spill] sm:$0xff] %v4973_v26  ;;  %v1908_v26 = vceil.f32 %v1876_v18  ;;  %v1911_v39 = vceil.f32 %v1879_v59  ;;  %v5025_v59 = vadd.f32 %v1907_v9, %v5875_v61  ;;  %v1882_v61 = vmul.f32 0.5, %v5885_v45  ;;  %v5895_v45 = vld [vmem:[#allocation43_spill] sm:$0xff] }
 0x4d5   : > { %5868 = vst [vmem:[#allocation28_spill] sm:$0xff] %v5005_v19  ;;  %v5887_v19 = vld [vmem:[#allocation37_spill] sm:$0xff]  ;;  %v1890_v25 = vmul.f32 0.5, %v5895_v45  ;;  %v5902_v45 = vceil.f32 %v4909_v43 }
 0x4d6   : > { %v5037_v1 = vadd.f32 %v1908_v26, %v5878_v60  ;;  %v5045_v9 = vadd.f32 %v1911_v39, %v5882_v17  ;;  %v1884_v49 = vmul.f32 0.5, %v5887_v19  ;;  %v5888_v26 = vld [vmem:[#allocation38_spill] sm:$0xff]  ;;  %v5056_v39 = vadd.f32 %v1910_v38, %v5891_v31  ;;  %v5893_v17 = vld [vmem:[#allocation41_spill] sm:$0xff] }
 0x4d7   : > { %v1887_v60 = vmul.f32 0.5, %v5888_v26  ;;  %v1888_v62 = vmul.f32 0.5, %v5893_v17  ;;  %v5898_v26 = vld [vmem:[#allocation44_spill] sm:$0xff]  ;;  %v5070_v38 = vadd.f32 %v1913_v46, %v5901_v13  ;;  %v1914_v31 = vceil.f32 %v1882_v61 }
 0x4d8   : > { %5879 = vst [vmem:[#allocation29_spill] sm:$0xff] %v5037_v1  ;;  %5883 = vst [vmem:[#allocation19_spill] sm:$0xff] %v5045_v9  ;;  %v1893_v7 = vmul.f32 0.5, %v5898_v26  ;;  %v1917_v17 = vceil.f32 %v1885_v27  ;;  %v1916_v40 = vceil.f32 %v1884_v49  ;;  %v1923_v26 = vceil.f32 %v1891_v32 }
 0x4d9   : > { %5892 = vst [vmem:[#allocation20_spill] sm:$0xff] %v5056_v39  ;;  %v1920_v9 = vceil.f32 %v1888_v62  ;;  %v5904_v46 = vceil.f32 %v4914_v44  ;;  %v2163_v62 = vmul.f32 0.5, %v4787_v16  ;;  %v5908_v13 = vceil.f32 %v4926_v63 }
 0x4da   : > { %v1925_v49 = vceil.f32 %v1893_v7  ;;  %v5909_v44 = vceil.f32 %v4929_v33  ;;  %v5912_v16 = vceil.f32 %v4939_v20  ;;  %v5913_v63 = vceil.f32 %v4943_v52 }
 0x4db   : > { %v5916_v20 = vceil.f32 %v4954_v29  ;;  %v2164_v52 = vmul.f32 0.5, %v4783_v57  ;;  %v5917_v29 = vceil.f32 %v4957_v54  ;;  %v2170_v57 = vmul.f32 0.5, %v4801_v58 }
 0x4dd   : > { %v4979_v56 = vpop.xlane.xlu0 %2355  ;;  %v5031_v6 = vpop.xlane.xlu1 %2358 }
 0x4de   : > { %5851 = vst [vmem:[#allocation11_spill] sm:$0xff] %v4979_v56 }
 0x4e1   : > { %v5011_v12 = vpop.xlane.xlu0 %2361 }
 0x4e2   : > { %5872 = vst [vmem:[#allocation18_spill] sm:$0xff] %v5011_v12  ;;  %v5874_v12 = vld [vmem:[#allocation33_spill] sm:$0xff] }
 0x4e3   : > { %v1880_v56 = vmul.f32 0.5, %v5874_v12  ;;  %v5880_v12 = vceil.f32 %v4890_v22  ;;  %v1886_v22 = vmul.f32 0.5, %v5889_v24  ;;  %v5899_v24 = vld [vmem:[#allocation45_spill] sm:$0xff] }
 0x4e4   : > { %v1892_v11 = vmul.f32 0.5, %v5899_v24  ;;  %v5903_v24 = vld [vmem:[#allocation47_spill] sm:$0xff] }
 0x4e5   : > { %v5033_v51 = vpop.xlane.xlu0 %2364  ;;  %v5041_v18 = vadd.f32 %v1909_v34, %v5880_v12  ;;  %v1912_v48 = vceil.f32 %v1880_v56  ;;  %v5890_v34 = vld [vmem:[#allocation40_spill] sm:$0xff]  ;;  %v1915_v56 = vceil.f32 %v1883_v0  ;;  %v1894_v1 = vmul.f32 0.5, %v5903_v24 }
 0x4e6   : > { %5877 = vst [vmem:[#allocation27_spill] sm:$0xff] %v5033_v51  ;;  %v1889_v12 = vmul.f32 0.5, %v5890_v34  ;;  %v5900_v34 = vld [vmem:[#allocation46_spill] sm:$0xff]  ;;  %v1924_v43 = vceil.f32 %v1892_v11  ;;  %v5910_v11 = vceil.f32 %v4933_v42  ;;  %v2171_v24 = vmul.f32 0.5, %v4799_v3 }
 0x4e7   : > { %5881 = vst [vmem:[#allocation30_spill] sm:$0xff] %v5041_v18  ;;  %v1895_v51 = vmul.f32 0.5, %v5900_v34  ;;  %v5074_v39 = vadd.f32 %v1912_v48, %v5902_v45  ;;  %v1922_v18 = vceil.f32 %v1890_v25  ;;  %v5083_v27 = vadd.f32 %v1915_v56, %v5904_v46 }
 0x4e8   : > { %v1921_v0 = vceil.f32 %v1889_v12  ;;  %v5905_v48 = vceil.f32 %v4917_v55  ;;  %v5907_v25 = vceil.f32 %v4923_v53  ;;  %v5111_v56 = vadd.f32 %v1923_v26, %v5912_v16 }
 0x4e9   : > { %v5061_v28 = vpop.xlane.xlu1 %2370  ;;  %v5063_v19 = vpop.xlane.xlu0 %2367  ;;  %v1927_v61 = vceil.f32 %v1895_v51  ;;  %v5911_v51 = vceil.f32 %v4936_v8  ;;  %v1926_v33 = vceil.f32 %v1894_v1  ;;  %v5915_v8 = vceil.f32 %v4949_v35 }
 0x4ea   : > { %5896 = vst [vmem:[#allocation21_spill] sm:$0xff] %v5061_v28  ;;  %5897 = vst [vmem:[#allocation22_spill] sm:$0xff] %v5063_v19  ;;  %v1919_v28 = vceil.f32 %v1887_v60  ;;  %v1918_v19 = vceil.f32 %v1886_v22  ;;  %v1946_v60 = vadd.f32 %v1914_v31, %v5905_v48  ;;  %v5906_v22 = vceil.f32 %v4920_v50 }
 0x4eb   : > { %v1948_v12 = vadd.f32 %v1916_v40, %v5907_v25  ;;  %v5102_v55 = vadd.f32 %v1921_v0, %v5910_v11  ;;  %v2162_v50 = vmul.f32 0.5, %v4777_v2  ;;  %v5107_v53 = vadd.f32 %v1920_v9, %v5911_v51  ;;  %v5918_v11 = vld [vmem:[#allocation11_spill] sm:$0xff] }
 0x4ec   : > { %v1949_v32 = vadd.f32 %v1917_v17, %v5906_v22  ;;  %v5094_v45 = vadd.f32 %v1919_v28, %v5908_v13  ;;  %v5098_v7 = vadd.f32 %v1918_v19, %v5909_v44  ;;  %v5115_v28 = vadd.f32 %v1922_v18, %v5913_v63 }
 0x4ed   : > { %v5077_v34 = vpop.xlane.xlu1 %2376  ;;  %v5079_v36 = vpop.xlane.xlu0 %2373  ;;  %v5914_v31 = vceil.f32 %v4946_v23  ;;  %v5127_v9 = vadd.f32 %v1924_v43, %v5915_v8  ;;  %v5131_v17 = vadd.f32 %v1927_v61, %v5916_v20  ;;  %v2195_v18 = vceil.f32 %v2163_v62  ;;  %v5922_v20 = vld [vmem:[#allocation20_spill] sm:$0xff] }
 0x4ee   : > { %v2165_v1 = vmul.f32 0.5, %v4789_v14  ;;  %v2167_v40 = vmul.f32 0.5, %v4791_v21  ;;  %v2166_v0 = vmul.f32 0.5, %v4793_v47  ;;  %v2194_v23 = vceil.f32 %v2162_v50 }
 0x4ef   : > { %v5123_v2 = vadd.f32 %v1925_v49, %v5914_v31  ;;  %v2169_v26 = vmul.f32 0.5, %v4795_v41  ;;  %v2168_v35 = vmul.f32 0.5, %v4797_v30  ;;  %v5142_v46 = vadd.f32 %v1926_v33, %v5917_v29  ;;  %v5920_v33 = vld [vmem:[#allocation30_spill] sm:$0xff] }
 0x4f0   : > { %v2173_v49 = vmul.f32 0.5, %v4803_v15  ;;  %v2172_v14 = vmul.f32 0.5, %v4805_v5  ;;  %v2196_v43 = vceil.f32 %v2164_v52  ;;  %v2175_v41 = vmul.f32 0.5, %v4807_v10 }
 0x4f1   : > { %v5117_v19 = vpop.xlane.xlu1 %2382  ;;  %v5119_v42 = vpop.xlane.xlu0 %2379  ;;  %v2174_v30 = vmul.f32 0.5, %v4809_v37  ;;  %v2451_v3 = vmul.f32 0.5, %v5031_v6  ;;  %v2227_v54 = vadd.f32 %v2195_v18, %v5025_v59  ;;  %v2197_v61 = vceil.f32 %v2165_v1  ;;  %v5919_v6 = vld [vmem:[#allocation29_spill] sm:$0xff]  ;;  %v5923_v18 = vld [vmem:[#allocation58_spill] sm:$0xff] }
 0x4f2   : > { %v2199_v48 = vceil.f32 %v2167_v40  ;;  %v2198_v58 = vceil.f32 %v2166_v0  ;;  %v2226_v15 = vadd.f32 %v2194_v23, %v5029_v4  ;;  %v2201_v22 = vceil.f32 %v2169_v26  ;;  %v5921_v4 = vld [vmem:[#allocation19_spill] sm:$0xff] }
 0x4f3   : > { %v2200_v5 = vceil.f32 %v2168_v35  ;;  %v2203_v25 = vceil.f32 %v2171_v24  ;;  %v2202_v62 = vceil.f32 %v2170_v57  ;;  %v2205_v13 = vceil.f32 %v2173_v49  ;;  %v5924_v26 = vld [vmem:[#allocation59_spill] sm:$0xff] }
 0x4f4   : > { %v2204_v44 = vceil.f32 %v2172_v14  ;;  %v2450_v50 = vmul.f32 0.5, %v5918_v11  ;;  %v2228_v51 = vadd.f32 %v2196_v43, %v5919_v6  ;;  %v2207_v59 = vceil.f32 %v2175_v41  ;;  %v5932_v11 = vld [vmem:[#allocation63_spill] sm:$0xff] }
 0x4f5   : > { %v5147_v21 = vpop.xlane.xlu1 %2388  ;;  %v5149_v47 = vpop.xlane.xlu0 %2385  ;;  %v2206_v16 = vceil.f32 %v2174_v30  ;;  %v2483_v63 = vceil.f32 %v2451_v3  ;;  %v2229_v31 = vadd.f32 %v2197_v61, %v5920_v33  ;;  %v2231_v8 = vadd.f32 %v2199_v48, %v5921_v4  ;;  %v5927_v61 = vld [vmem:[#allocation18_spill] sm:$0xff]  ;;  %v5928_v48 = vld [vmem:[#allocation27_spill] sm:$0xff] }
 0x4f6   : > { %v2230_v52 = vadd.f32 %v2198_v58, %v5922_v20  ;;  %v2177_v1 = vmul.f32 0.5, %v5923_v18  ;;  %v2233_v40 = vadd.f32 %v2201_v22, %v5070_v38  ;;  %v2232_v0 = vadd.f32 %v2200_v5, %v5074_v39  ;;  %v5925_v38 = vld [vmem:[#allocation60_spill] sm:$0xff]  ;;  %v5929_v5 = vld [vmem:[#allocation62_spill] sm:$0xff] }
 0x4f7   : > { %v5169_v23 = vadd.f32 %v2203_v25, %v5083_v27  ;;  %v2176_v35 = vmul.f32 0.5, %v5924_v26  ;;  %v2234_v24 = vadd.f32 %v2202_v62, %v1946_v60  ;;  %v5172_v29 = vadd.f32 %v2205_v13, %v1949_v32  ;;  %v5926_v60 = vld [vmem:[#allocation61_spill] sm:$0xff] }
 0x4f8   : > { %v5174_v57 = vadd.f32 %v2204_v44, %v1948_v12  ;;  %v2482_v49 = vceil.f32 %v2450_v50  ;;  %v5181_v41 = vadd.f32 %v2207_v59, %v5094_v45  ;;  %v5184_v39 = vadd.f32 %v2206_v16, %v5098_v7  ;;  %v5930_v62 = vld [vmem:[#allocation21_spill] sm:$0xff]  ;;  %v5931_v45 = vld [vmem:[#allocation22_spill] sm:$0xff] }
 0x4f9   : > { %v5157_v10 = vpop.xlane.xlu1 %2394  ;;  %v5159_v37 = vpop.xlane.xlu0 %2391  ;;  %v2179_v27 = vmul.f32 0.5, %v5925_v38  ;;  %v2515_v30 = vadd.f32 %v2483_v63, %v2227_v54  ;;  %v2209_v3 = vceil.f32 %v2177_v1  ;;  %v2178_v32 = vmul.f32 0.5, %v5926_v60 }
 0x4fa   : > { %v2452_v12 = vmul.f32 0.5, %v5927_v61  ;;  %v2453_v58 = vmul.f32 0.5, %v5928_v48  ;;  %v2208_v22 = vceil.f32 %v2176_v35  ;;  %v2181_v25 = vmul.f32 0.5, %v5929_v5 }
 0x4fb   : > { %v2455_v13 = vmul.f32 0.5, %v5930_v62  ;;  %v2454_v44 = vmul.f32 0.5, %v5931_v45  ;;  %v2180_v7 = vmul.f32 0.5, %v5932_v11  ;;  %v2514_v50 = vadd.f32 %v2482_v49, %v2226_v15 }
 0x4fc   : > { %v2457_v6 = vmul.f32 0.5, %v5077_v34  ;;  %v2456_v54 = vmul.f32 0.5, %v5079_v36  ;;  %v2211_v63 = vceil.f32 %v2179_v27  ;;  %v2547_v33 = vmul.f32 0.5, %v2515_v30 }
 0x4fd   : > { %v5176_v14 = vpop.xlane.xlu1 %2400  ;;  %v5178_v43 = vpop.xlane.xlu0 %2397  ;;  %v2459_v4 = vmul.f32 0.5, %v5117_v19  ;;  %v2458_v20 = vmul.f32 0.5, %v5119_v42  ;;  %v5203_v18 = vadd.f32 %v2209_v3, %v5102_v55  ;;  %v2210_v1 = vceil.f32 %v2178_v32 }
 0x4fe   : > { %v2484_v26 = vceil.f32 %v2452_v12  ;;  %v2485_v15 = vceil.f32 %v2453_v58  ;;  %v5206_v34 = vadd.f32 %v2208_v22, %v5107_v53  ;;  %v2213_v36 = vceil.f32 %v2181_v25 }
 0x4ff   : > { %v2487_v35 = vceil.f32 %v2455_v13  ;;  %v2486_v49 = vceil.f32 %v2454_v44  ;;  %v2212_v38 = vceil.f32 %v2180_v7  ;;  %v2546_v60 = vmul.f32 0.5, %v2514_v50 }
 0x500   : > { %v2489_v27 = vceil.f32 %v2457_v6  ;;  %v2488_v30 = vceil.f32 %v2456_v54  ;;  %v5213_v55 = vadd.f32 %v2211_v63, %v5111_v56  ;;  %v2579_v42 = vceil.f32 %v2547_v33 }
 0x501   : > { %v5196_v59 = vpop.xlane.xlu1 %2406  ;;  %v5198_v16 = vpop.xlane.xlu0 %2403  ;;  %v2491_v3 = vceil.f32 %v2459_v4  ;;  %v2490_v32 = vceil.f32 %v2458_v20  ;;  %v5216_v53 = vadd.f32 %v2210_v1, %v5115_v28  ;;  %v2516_v12 = vadd.f32 %v2484_v26, %v2228_v51 }
 0x502   : > { %v2517_v48 = vadd.f32 %v2485_v15, %v2229_v31  ;;  %v2461_v58 = vmul.f32 0.5, %v5147_v21  ;;  %v5220_v22 = vadd.f32 %v2213_v36, %v5123_v2  ;;  %v2519_v5 = vadd.f32 %v2487_v35, %v2231_v8 }
 0x503   : > { %v2518_v25 = vadd.f32 %v2486_v49, %v2230_v52  ;;  %v2460_v62 = vmul.f32 0.5, %v5149_v47  ;;  %v5224_v56 = vadd.f32 %v2212_v38, %v5127_v9  ;;  %v2578_v13 = vceil.f32 %v2546_v60 }
 0x504   : > { %v2521_v45 = vadd.f32 %v2489_v27, %v2233_v40  ;;  %v2520_v44 = vadd.f32 %v2488_v30, %v2232_v0  ;;  %v5230_v51 = vmul.f32 16.0, %v2579_v42  ;;  %v2523_v21 = vadd.f32 %v2491_v3, %v5169_v23 }
 0x505   : > { %v5208_v61 = vpop.xlane.xlu1 %2412  ;;  %v5210_v19 = vpop.xlane.xlu0 %2409  ;;  %v2522_v2 = vadd.f32 %v2490_v32, %v2234_v24  ;;  %v2548_v8 = vmul.f32 0.5, %v2516_v12  ;;  %v2549_v52 = vmul.f32 0.5, %v2517_v48  ;;  %v2493_v47 = vceil.f32 %v2461_v58 }
 0x506   : > { %v2551_v7 = vmul.f32 0.5, %v2519_v5  ;;  %v2550_v50 = vmul.f32 0.5, %v2518_v25  ;;  %v2492_v40 = vceil.f32 %v2460_v62  ;;  %v2770_v0 = vmul.f32 16.0, %v2578_v13 }
 0x507   : > { %v2553_v6 = vmul.f32 0.5, %v2521_v45  ;;  %v2552_v54 = vmul.f32 0.5, %v2520_v44  ;;  %v2555_v23 = vmul.f32 0.5, %v2523_v21  ;;  %v2554_v24 = vmul.f32 0.5, %v2522_v2 }
 0x508   : > { %v2580_v1 = vceil.f32 %v2548_v8  ;;  %v2581_v26 = vceil.f32 %v2549_v52  ;;  %v2525_v15 = vadd.f32 %v2493_v47, %v5172_v29  ;;  %v2463_v36 = vmul.f32 0.5, %v5157_v10 }
 0x509   : > { %v5226_v11 = vpop.xlane.xlu1 %2612  ;;  %v5228_v28 = vpop.xlane.xlu0 %2610  ;;  %v2583_v35 = vceil.f32 %v2551_v7  ;;  %v2582_v49 = vceil.f32 %v2550_v50  ;;  %v2524_v38 = vadd.f32 %v2492_v40, %v5174_v57  ;;  %v2585_v60 = vceil.f32 %v2553_v6 }
 0x50a   : > { %v2675_v31 = vmax.f32 %v5226_v11, 1e-20  ;;  %v2674_v9 = vmax.f32 %v5228_v28, 1e-20  ;;  %v2584_v27 = vceil.f32 %v2552_v54  ;;  %v2462_v30 = vmul.f32 0.5, %v5159_v37 }
 0x50b   : > { %v2587_v32 = vceil.f32 %v2555_v23  ;;  %v2586_v12 = vceil.f32 %v2554_v24  ;;  %v2772_v48 = vmul.f32 16.0, %v2580_v1  ;;  %v2773_v58 = vmul.f32 16.0, %v2581_v26 }
 0x50c   : > { %3297 = vrcp.f32 %v2675_v31  ;;  %v2557_v5 = vmul.f32 0.5, %v2525_v15  ;;  %v2495_v57 = vceil.f32 %v2463_v36  ;;  %v5251_v25 = vmul.f32 16.0, %v2583_v35 }
 0x50d   : > { %3299 = vrcp.f32 %v2674_v9  ;;  %v5235_v63 = vpop.xlane.xlu1 %2616  ;;  %v5237_v33 = vpop.xlane.xlu0 %2614  ;;  %v5253_v62 = vmul.f32 16.0, %v2582_v49  ;;  %v2556_v37 = vmul.f32 0.5, %v2524_v38  ;;  %v5255_v13 = vmul.f32 16.0, %v2585_v60 }
 0x50e   : > { %v2677_v4 = vmax.f32 %v5235_v63, 1e-20  ;;  %v2676_v20 = vmax.f32 %v5237_v33, 1e-20  ;;  %v5257_v45 = vmul.f32 16.0, %v2584_v27  ;;  %v2494_v44 = vceil.f32 %v2462_v30 }
 0x50f   : > { %v5263_v8 = vmul.f32 16.0, %v2587_v32  ;;  %v5265_v52 = vmul.f32 16.0, %v2586_v12  ;;  %v2589_v50 = vceil.f32 %v2557_v5  ;;  %v2527_v40 = vadd.f32 %v2495_v57, %v5181_v41 }
 0x510   : > { %3301 = vrcp.f32 %v2677_v4  ;;  %v2465_v6 = vmul.f32 0.5, %v5176_v14  ;;  %v2588_v23 = vceil.f32 %v2556_v37  ;;  %vm2739_vm13 = vcmp.gt.f32.partialorder %v5226_v11, 0.0 }
 0x511   : > { %3303 = vrcp.f32 %v2676_v20  ;;  %v5245_v42 = vpop.xlane.xlu1 %2620  ;;  %v5247_v3 = vpop.xlane.xlu0 %2618  ;;  %v2526_v4 = vadd.f32 %v2494_v44, %v5184_v39  ;;  %vm2738_vm14 = vcmp.gt.f32.partialorder %v5228_v28, 0.0  ;;  %v2464_v14 = vmul.f32 0.5, %v5178_v43 }
 0x512   : > { %v2679_v29 = vmax.f32 %v5245_v42, 1e-20  ;;  %v2678_v10 = vmax.f32 %v5247_v3, 1e-20  ;;  %v5286_v28 = vmul.f32 16.0, %v2589_v50  ;;  %v2559_v15 = vmul.f32 0.5, %v2527_v40 }
 0x513   : > { %v2497_v36 = vceil.f32 %v2465_v6  ;;  %v5292_v35 = vmul.f32 16.0, %v2588_v23  ;;  %vm2741_vm15 = vcmp.gt.f32.partialorder %v5235_v63, 0.0  ;;  %v2558_v38 = vmul.f32 0.5, %v2526_v4 }
 0x514   : > { %3305 = vrcp.f32 %v2679_v29  ;;  %vm2740_vm0 = vcmp.gt.f32.partialorder %v5237_v33, 0.0  ;;  %v2496_v12 = vceil.f32 %v2464_v14  ;;  %v2467_v5 = vmul.f32 0.5, %v5196_v59 }
 0x515   : > { %3307 = vrcp.f32 %v2678_v10  ;;  %v5259_v21 = vpop.xlane.xlu1 %2624  ;;  %v5261_v2 = vpop.xlane.xlu0 %2622  ;;  %v2529_v33 = vadd.f32 %v2497_v36, %v5203_v18  ;;  %v2466_v37 = vmul.f32 0.5, %v5198_v16  ;;  %vm2743_vm1 = vcmp.gt.f32.partialorder %v5245_v42, 0.0 }
 0x516   : > { %v3298_v31 = vpop.eup %3297  ;;  %v2681_v47 = vmax.f32 %v5259_v21, 1e-20  ;;  %v2680_v9 = vmax.f32 %v5261_v2, 1e-20  ;;  %vm2742_vm2 = vcmp.gt.f32.partialorder %v5247_v3, 0.0  ;;  %v2499_v40 = vceil.f32 %v2467_v5 }
 0x517   : > { %v3300_v7 = vpop.eup %3299  ;;  %v2803_v54 = vmul.f32 %v3298_v31, %v5230_v51  ;;  %v2590_v31 = vceil.f32 %v2558_v38  ;;  %v5330_v50 = vmul.f32 0.5, %v2529_v33  ;;  %v2498_v6 = vceil.f32 %v2466_v37 }
 0x518   : > { %v2802_v24 = vmul.f32 %v3300_v7, %v2770_v0  ;;  %3309 = vrcp.f32 %v2681_v47  ;;  %v2528_v7 = vadd.f32 %v2496_v12, %v5206_v34  ;;  %vm2745_vm5 = vcmp.gt.f32.partialorder %v5259_v21, 0.0 }
 0x519   : > { %v2835_v20 = vsel %vm2739_vm13, %v2803_v54, 0.0  ;;  %3311 = vrcp.f32 %v2680_v9  ;;  %v5275_v1 = vpop.xlane.xlu1 %2628  ;;  %v5277_v26 = vpop.xlane.xlu0 %2626  ;;  %v2469_v23 = vmul.f32 0.5, %v5208_v61  ;;  %vm2744_vm6 = vcmp.gt.f32.partialorder %v5261_v2, 0.0 }
 0x51a   : > { %v3302_v41 = vpop.eup %3301  ;;  %2868 = vst.msk [vmem:[%s5742_s3 + $0x8] sm:$0xff] %vm2866_vm12, %v2835_v20  ;;  %v2834_v11 = vsel %vm2738_vm14, %v2802_v24, 0.0  ;;  %v2683_v51 = vmax.f32 %v5275_v1, 1e-20  ;;  %v2682_v39 = vmax.f32 %v5277_v26, 1e-20 }
 0x51b   : > { %v3304_v0 = vpop.eup %3303  ;;  %2867 = vst.msk [vmem:[%s5742_s3] sm:$0xff] %vm2866_vm12, %v2834_v11  ;;  %v2805_v43 = vmul.f32 %v3302_v41, %v2773_v58  ;;  %v2591_v58 = vceil.f32 %v2559_v15  ;;  %v2468_v14 = vmul.f32 0.5, %v5210_v19  ;;  %v2782_v2 = vmul.f32 16.0, %v2590_v31 }
 0x51c   : > { %v2804_v49 = vmul.f32 %v3304_v0, %v2772_v48  ;;  %3313 = vrcp.f32 %v2683_v51  ;;  %v2560_v11 = vmul.f32 0.5, %v2528_v7  ;;  %v2531_v51 = vadd.f32 %v2499_v40, %v5213_v55 }
 0x51d   : > { %v2837_v60 = vsel %vm2741_vm15, %v2805_v43, 0.0  ;;  %3315 = vrcp.f32 %v2682_v39  ;;  %v5296_v27 = vpop.xlane.xlu1 %2632  ;;  %v5298_v30 = vpop.xlane.xlu0 %2630  ;;  %v5328_v3 = vmul.f32 16.0, %v2591_v58  ;;  %v2530_v39 = vadd.f32 %v2498_v6, %v5216_v53 }
 0x51e   : > { %v3306_v32 = vpop.eup %3305  ;;  %2870 = vst.msk [vmem:[%s5742_s3 + $0x18] sm:$0xff] %vm2866_vm12, %v2837_v60  ;;  %v2836_v29 = vsel %vm2740_vm0, %v2804_v49, 0.0  ;;  %v2685_v63 = vmax.f32 %v5296_v27, 1e-20  ;;  %v2684_v10 = vmax.f32 %v5298_v30, 1e-20  ;;  %v2501_v15 = vceil.f32 %v2469_v23 }
 0x51f   : > { %v3308_v48 = vpop.eup %3307  ;;  %2869 = vst.msk [vmem:[%s5742_s3 + $0x10] sm:$0xff] %vm2866_vm12, %v2836_v29  ;;  %v2807_v57 = vmul.f32 %v3306_v32, %v5251_v25  ;;  %vm2747_vm3 = vcmp.gt.f32.partialorder %v5275_v1, 0.0  ;;  %vm2746_vm4 = vcmp.gt.f32.partialorder %v5277_v26, 0.0  ;;  %v2500_v38 = vceil.f32 %v2468_v14  ;;  %v5935_v23 = vld [vmem:[#allocation50_spill] sm:$0xff] }
 0x520   : > { %v2806_v44 = vmul.f32 %v3308_v48, %v5253_v62  ;;  %3317 = vrcp.f32 %v2685_v63  ;;  %v2593_v26 = vceil.f32 %v5330_v50  ;;  %v2592_v60 = vceil.f32 %v2560_v11 }
 0x521   : > { %v2839_v47 = vsel %vm2743_vm1, %v2807_v57, 0.0  ;;  %3319 = vrcp.f32 %v2684_v10  ;;  %v5317_v59 = vpop.xlane.xlu1 %2636  ;;  %v5319_v18 = vpop.xlane.xlu0 %2634  ;;  %v2563_v32 = vmul.f32 0.5, %v2531_v51  ;;  %v2562_v29 = vmul.f32 0.5, %v2530_v39 }
 0x522   : > { %v3310_v9 = vpop.eup %3309  ;;  %2872 = vst.msk [vmem:[%s5742_s3 + $0x28] sm:$0xff] %vm2866_vm12, %v2839_v47  ;;  %v2838_v16 = vsel %vm2742_vm2, %v2806_v44, 0.0  ;;  %v2687_v42 = vmax.f32 %v5317_v59, 1e-20  ;;  %v2686_v25 = vmax.f32 %v5319_v18, 1e-20  ;;  %v2533_v10 = vadd.f32 %v2501_v15, %v5220_v22 }
 0x523   : > { %v3312_v62 = vpop.eup %3311  ;;  %2871 = vst.msk [vmem:[%s5742_s3 + $0x20] sm:$0xff] %vm2866_vm12, %v2838_v16  ;;  %v2809_v34 = vmul.f32 %v3310_v9, %v5255_v13  ;;  %vm2749_vm7 = vcmp.gt.f32.partialorder %v5296_v27, 0.0  ;;  %vm2748_vm8 = vcmp.gt.f32.partialorder %v5298_v30, 0.0  ;;  %v2532_v57 = vadd.f32 %v2500_v38, %v5224_v56  ;;  %v5933_v30 = vld [vmem:[#allocation48_spill] sm:$0xff]  ;;  %v5934_v44 = vld [vmem:[#allocation49_spill] sm:$0xff] }
 0x524   : > { %v2808_v54 = vmul.f32 %v3312_v62, %v5257_v45  ;;  %3321 = vrcp.f32 %v2687_v42  ;;  %v1897_v37 = vmul.f32 0.5, %v5933_v30  ;;  %v5395_v31 = vmul.f32 0.5, %v5934_v44  ;;  %v5938_v15 = vld [vmem:[#allocation53_spill] sm:$0xff]  ;;  %v5943_v30 = vld [vmem:[#allocation56_spill] sm:$0xff] }
 0x525   : > { %v2841_v24 = vsel %vm2745_vm5, %v2809_v34, 0.0  ;;  %3323 = vrcp.f32 %v2686_v25  ;;  %v5341_v4 = vpop.xlane.xlu1 %2640  ;;  %v5343_v20 = vpop.xlane.xlu0 %2638  ;;  %v2785_v47 = vmul.f32 16.0, %v2593_v26  ;;  %v2595_v9 = vceil.f32 %v2563_v32 }
 0x526   : > { %v3314_v41 = vpop.eup %3313  ;;  %2874 = vst.msk [vmem:[%s5742_s3 + $0x38] sm:$0xff] %vm2866_vm12, %v2841_v24  ;;  %v2840_v13 = vsel %vm2744_vm6, %v2808_v54, 0.0  ;;  %v2689_v45 = vmax.f32 %v5341_v4, 1e-20  ;;  %v2688_v61 = vmax.f32 %v5343_v20, 1e-20  ;;  %v2594_v34 = vceil.f32 %v2562_v29 }
 0x527   : > { %v3316_v21 = vpop.eup %3315  ;;  %2873 = vst.msk [vmem:[%s5742_s3 + $0x30] sm:$0xff] %vm2866_vm12, %v2840_v13  ;;  %v2811_v19 = vmul.f32 %v3314_v41, %v5263_v8  ;;  %vm2751_vm9 = vcmp.gt.f32.partialorder %v5317_v59, 0.0  ;;  %v2565_v16 = vmul.f32 0.5, %v2533_v10  ;;  %vm2750_vm10 = vcmp.gt.f32.partialorder %v5319_v18, 0.0  ;;  %v5936_v18 = vld [vmem:[#allocation51_spill] sm:$0xff] }
 0x528   : > { %v2810_v0 = vmul.f32 %v3316_v21, %v5265_v52  ;;  %3325 = vrcp.f32 %v2689_v45  ;;  %v2784_v40 = vmul.f32 16.0, %v2592_v60  ;;  %v2564_v6 = vmul.f32 0.5, %v2532_v57  ;;  %v5937_v45 = vld [vmem:[#allocation52_spill] sm:$0xff]  ;;  %v5942_v10 = vld [vmem:[#allocation55_spill] sm:$0xff] }
 0x529   : > { %v2843_v36 = vsel %vm2747_vm3, %v2811_v19, 0.0  ;;  %3327 = vrcp.f32 %v2688_v61  ;;  %v5362_v55 = vpop.xlane.xlu1 %2644  ;;  %v5364_v43 = vpop.xlane.xlu0 %2642  ;;  %v1929_v54 = vceil.f32 %v1897_v37  ;;  %v5413_v24 = vmul.f32 0.5, %v5935_v23 }
 0x52a   : > { %v3318_v49 = vpop.eup %3317  ;;  %2876 = vst.msk [vmem:[%s5742_s3 + $0x48] sm:$0xff] %vm2866_vm12, %v2843_v36  ;;  %v2842_v53 = vsel %vm2746_vm4, %v2810_v0, 0.0  ;;  %v2691_v8 = vmax.f32 %v5362_v55, 1e-20  ;;  %v2690_v52 = vmax.f32 %v5364_v43, 1e-20  ;;  %v1928_v13 = vceil.f32 %v5395_v31 }
 0x52b   : > { %v3320_v1 = vpop.eup %3319  ;;  %2875 = vst.msk [vmem:[%s5742_s3 + $0x40] sm:$0xff] %vm2866_vm12, %v2842_v53  ;;  %v2813_v12 = vmul.f32 %v3318_v49, %v5286_v28  ;;  %v5416_v41 = vmul.f32 0.5, %v5936_v18  ;;  %v5424_v61 = vmul.f32 0.5, %v5937_v45  ;;  %vm2753_vm11 = vcmp.gt.f32.partialorder %v5341_v4, 0.0 }
 0x52c   : > { %v2812_v63 = vmul.f32 %v3320_v1, %v5292_v35  ;;  %3329 = vrcp.f32 %v2691_v8  ;;  %v2597_v11 = vceil.f32 %v2565_v16  ;;  %vm2752_vm13 = vcmp.gt.f32.partialorder %v5343_v20, 0.0  ;;  %v5939_v8 = vld [vmem:[#allocation9_spill] sm:$0xff] }
 0x52d   : > { %v2845_v48 = vsel %vm2749_vm7, %v2813_v12, 0.0  ;;  %3331 = vrcp.f32 %v2690_v52  ;;  %v5382_v58 = vpop.xlane.xlu1 %2648  ;;  %v5384_v33 = vpop.xlane.xlu0 %2646  ;;  %v1900_v36 = vmul.f32 0.5, %v5938_v15  ;;  %v2786_v49 = vmul.f32 16.0, %v2594_v34  ;;  %v5941_v12 = vld [vmem:[#allocation54_spill] sm:$0xff] }
 0x52e   : > { %v3322_v5 = vpop.eup %3321  ;;  %2878 = vst.msk [vmem:[%s5742_s3 + $0x58] sm:$0xff] %vm2866_vm12, %v2845_v48  ;;  %v2844_v28 = vsel %vm2748_vm8, %v2812_v63, 0.0  ;;  %v2693_v35 = vmax.f32 %v5382_v58, 1e-20  ;;  %v2692_v22 = vmax.f32 %v5384_v33, 1e-20  ;;  %v2596_v38 = vceil.f32 %v2564_v6 }
 0x52f   : > { %v3324_v27 = vpop.eup %3323  ;;  %2877 = vst.msk [vmem:[%s5742_s3 + $0x50] sm:$0xff] %vm2866_vm12, %v2844_v28  ;;  %v2815_v56 = vmul.f32 %v3322_v5, %v5328_v3  ;;  %v5940_v52 = vceil.f32 %v5939_v8  ;;  %v1931_v20 = vceil.f32 %v5413_v24  ;;  %v1930_v26 = vceil.f32 %v5416_v41  ;;  %v5949_v41 = vld [vmem:[#allocation10_spill] sm:$0xff] }
 0x530   : > { %v2814_v7 = vmul.f32 %v3324_v27, %v2782_v2  ;;  %3333 = vrcp.f32 %v2693_v35  ;;  %v2787_v2 = vmul.f32 16.0, %v2595_v9  ;;  %v1933_v32 = vceil.f32 %v5424_v61  ;;  %v5945_v9 = vld [vmem:[#allocation64_spill] sm:$0xff] }
 0x531   : > { %v2847_v42 = vsel %vm2751_vm9, %v2815_v56, 0.0  ;;  %3335 = vrcp.f32 %v2692_v22  ;;  %v5404_v25 = vpop.xlane.xlu1 %2652  ;;  %v5406_v62 = vpop.xlane.xlu0 %2650  ;;  %v5439_v1 = vadd.f32 %v1929_v54, %v5940_v52  ;;  %v1903_v29 = vmul.f32 0.5, %v5941_v12 }
 0x532   : > { %v3326_v50 = vpop.eup %3325  ;;  %2880 = vst.msk [vmem:[%s5742_s3 + $0x68] sm:$0xff] %vm2866_vm12, %v2847_v42  ;;  %v2846_v59 = vsel %vm2750_vm10, %v2814_v7, 0.0  ;;  %vm2755_vm14 = vcmp.gt.f32.partialorder %v5362_v55, 0.0  ;;  %v1902_v48 = vmul.f32 0.5, %v5942_v10  ;;  %v2789_v5 = vmul.f32 16.0, %v2597_v11  ;;  %v5946_v7 = vld [vmem:[#allocation65_spill] sm:$0xff] }
 0x533   : > { %v3328_v3 = vpop.eup %3327  ;;  %2879 = vst.msk [vmem:[%s5742_s3 + $0x60] sm:$0xff] %vm2866_vm12, %v2846_v59  ;;  %v2817_v14 = vmul.f32 %v3326_v50, %v2785_v47  ;;  %vm2754_vm15 = vcmp.gt.f32.partialorder %v5364_v43, 0.0  ;;  %v1932_v27 = vceil.f32 %v1900_v36  ;;  %v1905_v37 = vmul.f32 0.5, %v5943_v30  ;;  %v5944_v47 = vld [vmem:[#allocation57_spill] sm:$0xff]  ;;  %v5952_v11 = vld [vmem:[#allocation12_spill] sm:$0xff] }
 0x534   : > { %v2816_v21 = vmul.f32 %v3328_v3, %v2784_v40  ;;  %v2788_v44 = vmul.f32 16.0, %v2596_v38  ;;  %v1904_v56 = vmul.f32 0.5, %v5944_v47  ;;  %v2183_v43 = vmul.f32 0.5, %v5945_v9  ;;  %v5947_v40 = vld [vmem:[#allocation66_spill] sm:$0xff]  ;;  %v5948_v3 = vld [vmem:[#allocation67_spill] sm:$0xff]  ;;  %v5961_v10 = vld [vmem:[#allocation16_spill] sm:$0xff] }
 0x535   : > { %v2849_v51 = vsel %vm2753_vm11, %v2817_v14, 0.0  ;;  %v5428_v19 = vpop.xlane.xlu1 %2656  ;;  %v5430_v39 = vpop.xlane.xlu0 %2654  ;;  %v2182_v16 = vmul.f32 0.5, %v5946_v7  ;;  %v1935_v50 = vceil.f32 %v1903_v29  ;;  %v2185_v34 = vmul.f32 0.5, %v5947_v40  ;;  %v5959_v29 = vld [vmem:[#allocation15_spill] sm:$0xff] }
 0x536   : > { %v3330_v0 = vpop.eup %3329  ;;  %2882 = vst.msk [vmem:[%s5742_s3 + $0x78] sm:$0xff] %vm2866_vm12, %v2849_v51  ;;  %v2848_v4 = vsel %vm2752_vm13, %v2816_v21, 0.0  ;;  %vm2757_vm0 = vcmp.gt.f32.partialorder %v5382_v58, 0.0  ;;  %v1934_v59 = vceil.f32 %v1902_v48  ;;  %v2184_v54 = vmul.f32 0.5, %v5948_v3  ;;  %v5951_v21 = vld [vmem:[#allocation68_spill] sm:$0xff] }
 0x537   : > { %v3332_v53 = vpop.eup %3331  ;;  %2881 = vst.msk [vmem:[%s5742_s3 + $0x70] sm:$0xff] %vm2866_vm12, %v2848_v4  ;;  %v2819_v60 = vmul.f32 %v3330_v0, %v2787_v2  ;;  %vm2756_vm1 = vcmp.gt.f32.partialorder %v5384_v33, 0.0  ;;  %v5950_v14 = vceil.f32 %v5949_v41  ;;  %v1937_v61 = vceil.f32 %v1905_v37  ;;  %v5956_v4 = vld [vmem:[#allocation14_spill] sm:$0xff]  ;;  %v5971_v41 = vld [vmem:[#allocation72_spill] sm:$0xff] }
 0x538   : > { %v2818_v63 = vmul.f32 %v3332_v53, %v2786_v49  ;;  %v2187_v2 = vmul.f32 0.5, %v5951_v21  ;;  %v5953_v51 = vceil.f32 %v5952_v11  ;;  %v1936_v33 = vceil.f32 %v1904_v56  ;;  %v5967_v56 = vld [vmem:[#allocation70_spill] sm:$0xff] }
 0x539   : > { %v2851_v57 = vsel %vm2755_vm14, %v2819_v60, 0.0  ;;  %v5452_v28 = vpop.xlane.xlu1 %2660  ;;  %v5454_v35 = vpop.xlane.xlu0 %2658  ;;  %v1960_v45 = vadd.f32 %v1928_v13, %v5950_v14  ;;  %v2215_v15 = vceil.f32 %v2183_v43  ;;  %v2214_v36 = vceil.f32 %v2182_v16  ;;  %v5954_v13 = vld [vmem:[#allocation13_spill] sm:$0xff] }
 0x53a   : > { %v3334_v22 = vpop.eup %3333  ;;  %2884 = vst.msk [vmem:[%s5742_s3 + $0x88] sm:$0xff] %vm2866_vm12, %v2851_v57  ;;  %v2850_v55 = vsel %vm2754_vm15, %v2818_v63, 0.0  ;;  %v1963_v0 = vadd.f32 %v1931_v20, %v5953_v51  ;;  %v5955_v49 = vceil.f32 %v5954_v13  ;;  %v5957_v53 = vceil.f32 %v5956_v4  ;;  %v5958_v60 = vld [vmem:[#allocation69_spill] sm:$0xff]  ;;  %v5973_v51 = vld [vmem:[#allocation74_spill] sm:$0xff] }
 0x53b   : > { %v3336_v31 = vpop.eup %3335  ;;  %2883 = vst.msk [vmem:[%s5742_s3 + $0x80] sm:$0xff] %vm2866_vm12, %v2850_v55  ;;  %v2821_v42 = vmul.f32 %v3334_v22, %v2789_v5  ;;  %v2217_v52 = vceil.f32 %v2185_v34  ;;  %v2186_v12 = vmul.f32 0.5, %v5958_v60  ;;  %v5960_v63 = vceil.f32 %v5959_v29  ;;  %v5963_v57 = vld [vmem:[#allocation17_spill] sm:$0xff] }
 0x53c   : > { %v2820_v6 = vmul.f32 %v3336_v31, %v2788_v44  ;;  %v1962_v38 = vadd.f32 %v1930_v26, %v5955_v49  ;;  %v1965_v8 = vadd.f32 %v1933_v32, %v5957_v53  ;;  %v5962_v48 = vceil.f32 %v5961_v10  ;;  %v5965_v26 = vld [vmem:[#allocation28_spill] sm:$0xff] }
 0x53d   : > { %v2853_v23 = vsel %vm2757_vm0, %v2821_v42, 0.0  ;;  %v5472_v24 = vpop.xlane.xlu1 %2664  ;;  %v5474_v18 = vpop.xlane.xlu0 %2662  ;;  %v1964_v20 = vadd.f32 %v1932_v27, %v5960_v63  ;;  %v5964_v22 = vceil.f32 %v5963_v57  ;;  %v2216_v37 = vceil.f32 %v2184_v54  ;;  %v5968_v27 = vld [vmem:[#allocation26_spill] sm:$0xff] }
 0x53e   : > { %2886 = vst.msk [vmem:[%s5742_s3 + $0x98] sm:$0xff] %vm2866_vm12, %v2853_v23  ;;  %v2852_v58 = vsel %vm2756_vm1, %v2820_v6, 0.0  ;;  %v1967_v5 = vadd.f32 %v1935_v50, %v5962_v48  ;;  %v5966_v31 = vceil.f32 %v5965_v26  ;;  %v2219_v47 = vceil.f32 %v2187_v2 }
 0x53f   : > { %2885 = vst.msk [vmem:[%s5742_s3 + $0x90] sm:$0xff] %vm2866_vm12, %v2852_v58  ;;  %v1966_v30 = vadd.f32 %v1934_v59, %v5964_v22  ;;  %v2189_v9 = vmul.f32 0.5, %v5967_v56  ;;  %v2695_v43 = vmax.f32 %v5404_v25, 1e-20  ;;  %v5969_v7 = vceil.f32 %v5968_v27  ;;  %v5970_v59 = vld [vmem:[#allocation71_spill] sm:$0xff] }
 0x540   : > { %v1969_v32 = vadd.f32 %v1937_v61, %v5966_v31  ;;  %v2247_v42 = vadd.f32 %v2215_v15, %v5131_v17  ;;  %v2246_v50 = vadd.f32 %v2214_v36, %v5142_v46  ;;  %v2694_v40 = vmax.f32 %v5406_v62, 1e-20  ;;  %v5972_v61 = vld [vmem:[#allocation73_spill] sm:$0xff] }
 0x541   : > { %v5500_v44 = vpop.xlane.xlu1 %2668  ;;  %v5502_v55 = vpop.xlane.xlu0 %2666  ;;  %v1968_v16 = vadd.f32 %v1936_v33, %v5969_v7  ;;  %v5514_v34 = vadd.f32 %v2217_v52, %v5439_v1  ;;  %v2218_v6 = vceil.f32 %v2186_v12  ;;  %v2188_v3 = vmul.f32 0.5, %v5970_v59 }
 0x542   : > { %v2697_v54 = vmax.f32 %v5428_v19, 1e-20  ;;  %v5518_v23 = vadd.f32 %v2216_v37, %v1960_v45  ;;  %v2191_v14 = vmul.f32 0.5, %v5971_v41  ;;  %v2190_v21 = vmul.f32 0.5, %v5972_v61  ;;  %v5974_v45 = vld [vmem:[#allocation75_spill] sm:$0xff] }
 0x543   : > { %v2696_v17 = vmax.f32 %v5430_v39, 1e-20  ;;  %v5527_v58 = vadd.f32 %v2219_v47, %v1963_v0  ;;  %v2221_v1 = vceil.f32 %v2189_v9  ;;  %3337 = vrcp.f32 %v2695_v43 }
 0x544   : > { %v2699_v11 = vmax.f32 %v5452_v28, 1e-20  ;;  %v2193_v33 = vmul.f32 0.5, %v5973_v51  ;;  %v2192_v15 = vmul.f32 0.5, %v5974_v45  ;;  %3339 = vrcp.f32 %v2694_v40 }
 0x545   : > { %v5523_v2 = vpop.xlane.xlu1 %2672  ;;  %v5525_v46 = vpop.xlane.xlu0 %2670  ;;  %v2698_v36 = vmax.f32 %v5454_v35, 1e-20  ;;  %v5533_v13 = vadd.f32 %v2218_v6, %v1962_v38  ;;  %v2220_v49 = vceil.f32 %v2188_v3  ;;  %3341 = vrcp.f32 %v2697_v54 }
 0x546   : > { %v2701_v4 = vmax.f32 %v5472_v24, 1e-20  ;;  %v2223_v53 = vceil.f32 %v2191_v14  ;;  %v2222_v0 = vceil.f32 %v2190_v21  ;;  %3343 = vrcp.f32 %v2696_v17 }
 0x547   : > { %v2700_v52 = vmax.f32 %v5474_v18, 1e-20  ;;  %v5537_v29 = vadd.f32 %v2221_v1, %v1965_v8  ;;  %3345 = vrcp.f32 %v2699_v11  ;;  %v2225_v48 = vceil.f32 %v2193_v33 }
 0x548   : > { %v2224_v57 = vceil.f32 %v2192_v15  ;;  %3347 = vrcp.f32 %v2698_v36  ;;  %v2703_v38 = vmax.f32 %v5500_v44, 1e-20  ;;  %v5540_v22 = vadd.f32 %v2220_v49, %v1964_v20 }
 0x549   : > { %v2419_v60 = vpop.xlane.xlu1 %2418  ;;  %v2416_v12 = vpop.xlane.xlu0 %2415  ;;  %3349 = vrcp.f32 %v2701_v4  ;;  %v5542_v31 = vadd.f32 %v2223_v53, %v1967_v5  ;;  %v5544_v47 = vadd.f32 %v2222_v0, %v1966_v30  ;;  %v2702_v8 = vmax.f32 %v5502_v55, 1e-20 }
 0x54a   : > { %v2471_v63 = vmul.f32 0.5, %v2419_v60  ;;  %v2470_v10 = vmul.f32 0.5, %v2416_v12  ;;  %3351 = vrcp.f32 %v2700_v52  ;;  %v5547_v6 = vadd.f32 %v2225_v48, %v1969_v32 }
 0x54b   : > { %v5549_v20 = vadd.f32 %v2224_v57, %v1968_v16  ;;  %3353 = vrcp.f32 %v2703_v38  ;;  %v2705_v59 = vmax.f32 %v5523_v2, 1e-20  ;;  %vm2759_vm2 = vcmp.gt.f32.partialorder %v5404_v25, 0.0 }
 0x54c   : > { %v2503_v37 = vceil.f32 %v2471_v63  ;;  %v2502_v26 = vceil.f32 %v2470_v10  ;;  %vm2758_vm5 = vcmp.gt.f32.partialorder %v5406_v62, 0.0  ;;  %3355 = vrcp.f32 %v2702_v8 }
 0x54d   : > { %v2425_v56 = vpop.xlane.xlu1 %2424  ;;  %v2422_v9 = vpop.xlane.xlu0 %2421  ;;  %vm2761_vm6 = vcmp.gt.f32.partialorder %v5428_v19, 0.0  ;;  %3357 = vrcp.f32 %v2705_v59  ;;  %vm2760_vm3 = vcmp.gt.f32.partialorder %v5430_v39, 0.0  ;;  %vm2763_vm4 = vcmp.gt.f32.partialorder %v5452_v28, 0.0 }
 0x54e   : > { %v2535_v43 = vadd.f32 %v2503_v37, %v2247_v42  ;;  %v2534_v27 = vadd.f32 %v2502_v26, %v2246_v50  ;;  %v2473_v7 = vmul.f32 0.5, %v2425_v56  ;;  %v2472_v40 = vmul.f32 0.5, %v2422_v9  ;;  %v3338_v5 = vpop.eup %3337 }
 0x54f   : > { %v3340_v14 = vpop.eup %3339  ;;  %v2704_v42 = vmax.f32 %v5525_v46, 1e-20  ;;  %vm2762_vm7 = vcmp.gt.f32.partialorder %v5454_v35, 0.0  ;;  %vm2765_vm8 = vcmp.gt.f32.partialorder %v5472_v24, 0.0  ;;  %vm2764_vm9 = vcmp.gt.f32.partialorder %v5474_v18, 0.0 }
 0x550   : > { %v2567_v3 = vmul.f32 0.5, %v2535_v43  ;;  %v2566_v30 = vmul.f32 0.5, %v2534_v27  ;;  %v2505_v54 = vceil.f32 %v2473_v7  ;;  %v2504_v41 = vceil.f32 %v2472_v40  ;;  %v3342_v16 = vpop.eup %3341 }
 0x551   : > { %v2431_v32 = vpop.xlane.xlu1 %2430  ;;  %v2428_v50 = vpop.xlane.xlu0 %2427  ;;  %3359 = vrcp.f32 %v2704_v42  ;;  %vm2767_vm10 = vcmp.gt.f32.partialorder %v5500_v44, 0.0  ;;  %vm2766_vm11 = vcmp.gt.f32.partialorder %v5502_v55, 0.0  ;;  %vm2769_vm13 = vcmp.gt.f32.partialorder %v5523_v2, 0.0 }
 0x552   : > { %v2599_v61 = vceil.f32 %v2567_v3  ;;  %v2598_v21 = vceil.f32 %v2566_v30  ;;  %v2537_v17 = vadd.f32 %v2505_v54, %v5514_v34  ;;  %v2536_v1 = vadd.f32 %v2504_v41, %v5518_v23  ;;  %v3344_v11 = vpop.eup %3343 }
 0x553   : > { %v2475_v51 = vmul.f32 0.5, %v2431_v32  ;;  %v2474_v33 = vmul.f32 0.5, %v2428_v50  ;;  %v5558_v45 = vpop.eup %3345  ;;  %vm2768_vm14 = vcmp.gt.f32.partialorder %v5525_v46, 0.0 }
 0x554   : > { %v2791_v15 = vmul.f32 16.0, %v2599_v61  ;;  %v2790_v36 = vmul.f32 16.0, %v2598_v21  ;;  %v2569_v49 = vmul.f32 0.5, %v2537_v17  ;;  %v2568_v4 = vmul.f32 0.5, %v2536_v1  ;;  %v3348_v53 = vpop.eup %3347 }
 0x555   : > { %v2507_v0 = vceil.f32 %v2475_v51  ;;  %v2506_v34 = vceil.f32 %v2474_v33  ;;  %v2437_v52 = vpop.xlane.xlu1 %2436  ;;  %v2434_v23 = vpop.xlane.xlu0 %2433 }
 0x556   : > { %v5561_v60 = vpop.eup %3349  ;;  %v2823_v12 = vmul.f32 %v3338_v5, %v2791_v15  ;;  %v2822_v63 = vmul.f32 %v3340_v14, %v2790_v36  ;;  %v2601_v10 = vceil.f32 %v2569_v49  ;;  %v2600_v48 = vceil.f32 %v2568_v4 }
 0x557   : > { %v5563_v57 = vpop.eup %3351  ;;  %v2539_v38 = vadd.f32 %v2507_v0, %v5527_v58  ;;  %v2538_v37 = vadd.f32 %v2506_v34, %v5533_v13  ;;  %v2477_v26 = vmul.f32 0.5, %v2437_v52  ;;  %v2476_v8 = vmul.f32 0.5, %v2434_v23 }
 0x558   : > { %v2855_v56 = vsel %vm2759_vm2, %v2823_v12, 0.0  ;;  %v2854_v9 = vsel %vm2758_vm5, %v2822_v63, 0.0  ;;  %v2793_v43 = vmul.f32 16.0, %v2601_v10  ;;  %v2792_v27 = vmul.f32 16.0, %v2600_v48  ;;  %v5573_v7 = vpop.eup %3353 }
 0x559   : > { %2888 = vst.msk [vmem:[%s5742_s3 + $0xa8] sm:$0xff] %vm2866_vm12, %v2855_v56  ;;  %2887 = vst.msk [vmem:[%s5742_s3 + $0xa0] sm:$0xff] %vm2866_vm12, %v2854_v9  ;;  %v2571_v58 = vmul.f32 0.5, %v2539_v38  ;;  %v2570_v25 = vmul.f32 0.5, %v2538_v37  ;;  %v2509_v13 = vceil.f32 %v2477_v26  ;;  %v2508_v40 = vceil.f32 %v2476_v8  ;;  %v2443_v62 = vpop.xlane.xlu1 %2442  ;;  %v2440_v59 = vpop.xlane.xlu0 %2439 }
 0x55a   : > { %v2825_v5 = vmul.f32 %v3342_v16, %v2793_v43  ;;  %v2824_v3 = vmul.f32 %v3344_v11, %v2792_v27  ;;  %v2479_v30 = vmul.f32 0.5, %v2443_v62  ;;  %v2478_v54 = vmul.f32 0.5, %v2440_v59  ;;  %v3356_v41 = vpop.eup %3355 }
 0x55b   : > { %v2603_v14 = vceil.f32 %v2571_v58  ;;  %v2602_v42 = vceil.f32 %v2570_v25  ;;  %v2541_v32 = vadd.f32 %v2509_v13, %v5537_v29  ;;  %v2540_v50 = vadd.f32 %v2508_v40, %v5540_v22  ;;  %v3358_v51 = vpop.eup %3357 }
 0x55c   : > { %v2857_v61 = vsel %vm2761_vm6, %v2825_v5, 0.0  ;;  %v2856_v21 = vsel %vm2760_vm3, %v2824_v3, 0.0  ;;  %v2511_v17 = vceil.f32 %v2479_v30  ;;  %v2510_v1 = vceil.f32 %v2478_v54  ;;  %v3360_v4 = vpop.eup %3359 }
 0x55d   : > { %2890 = vst.msk [vmem:[%s5742_s3 + $0xb8] sm:$0xff] %vm2866_vm12, %v2857_v61  ;;  %2889 = vst.msk [vmem:[%s5742_s3 + $0xb0] sm:$0xff] %vm2866_vm12, %v2856_v21  ;;  %v2795_v29 = vmul.f32 16.0, %v2603_v14  ;;  %v2794_v22 = vmul.f32 16.0, %v2602_v42  ;;  %v2573_v19 = vmul.f32 0.5, %v2541_v32  ;;  %v2572_v16 = vmul.f32 0.5, %v2540_v50  ;;  %v2449_v11 = vpop.xlane.xlu1 %2448  ;;  %v2446_v39 = vpop.xlane.xlu0 %2445 }
 0x55e   : > { %v2543_v33 = vadd.f32 %v2511_v17, %v5542_v31  ;;  %v2542_v15 = vadd.f32 %v2510_v1, %v5544_v47  ;;  %v2481_v36 = vmul.f32 0.5, %v2449_v11  ;;  %v2480_v49 = vmul.f32 0.5, %v2446_v39 }
 0x55f   : > { %v2827_v0 = vmul.f32 %v5558_v45, %v2795_v29  ;;  %v2826_v34 = vmul.f32 %v3348_v53, %v2794_v22  ;;  %v2605_v52 = vceil.f32 %v2573_v19  ;;  %v2604_v23 = vceil.f32 %v2572_v16 }
 0x560   : > { %v2575_v12 = vmul.f32 0.5, %v2543_v33  ;;  %v2574_v63 = vmul.f32 0.5, %v2542_v15  ;;  %v2513_v10 = vceil.f32 %v2481_v36  ;;  %v2512_v48 = vceil.f32 %v2480_v49 }
 0x561   : > { %v2859_v38 = vsel %vm2763_vm4, %v2827_v0, 0.0  ;;  %v2858_v31 = vsel %vm2762_vm7, %v2826_v34, 0.0  ;;  %v2797_v37 = vmul.f32 16.0, %v2605_v52  ;;  %v2796_v47 = vmul.f32 16.0, %v2604_v23 }
 0x562   : > { %2892 = vst.msk [vmem:[%s5742_s3 + $0xc8] sm:$0xff] %vm2866_vm12, %v2859_v38  ;;  %2891 = vst.msk [vmem:[%s5742_s3 + $0xc0] sm:$0xff] %vm2866_vm12, %v2858_v31  ;;  %v2607_v45 = vceil.f32 %v2575_v12  ;;  %v2606_v53 = vceil.f32 %v2574_v63  ;;  %v2545_v28 = vadd.f32 %v2513_v10, %v5547_v6  ;;  %v2544_v26 = vadd.f32 %v2512_v48, %v5549_v20 }
 0x563   : > { %v2829_v35 = vmul.f32 %v5561_v60, %v2797_v37  ;;  %v2828_v8 = vmul.f32 %v5563_v57, %v2796_v47 }
 0x564   : > { %v2799_v56 = vmul.f32 16.0, %v2607_v45  ;;  %v2798_v9 = vmul.f32 16.0, %v2606_v53  ;;  %v2577_v43 = vmul.f32 0.5, %v2545_v28  ;;  %v2576_v27 = vmul.f32 0.5, %v2544_v26 }
 0x565   : > { %v2861_v58 = vsel %vm2765_vm8, %v2829_v35, 0.0  ;;  %v2860_v25 = vsel %vm2764_vm9, %v2828_v8, 0.0 }
 0x566   : > { %2894 = vst.msk [vmem:[%s5742_s3 + $0xd8] sm:$0xff] %vm2866_vm12, %v2861_v58  ;;  %2893 = vst.msk [vmem:[%s5742_s3 + $0xd0] sm:$0xff] %vm2866_vm12, %v2860_v25  ;;  %v2831_v24 = vmul.f32 %v5573_v7, %v2799_v56  ;;  %v2830_v18 = vmul.f32 %v3356_v41, %v2798_v9  ;;  %v2609_v6 = vceil.f32 %v2577_v43  ;;  %v2608_v20 = vceil.f32 %v2576_v27 }
 0x568   : > { %v2863_v60 = vsel %vm2767_vm10, %v2831_v24, 0.0  ;;  %v2862_v57 = vsel %vm2766_vm11, %v2830_v18, 0.0  ;;  %v2801_v13 = vmul.f32 16.0, %v2609_v6  ;;  %v2800_v40 = vmul.f32 16.0, %v2608_v20 }
 0x569   : > { %2896 = vst.msk [vmem:[%s5742_s3 + $0xe8] sm:$0xff] %vm2866_vm12, %v2863_v60  ;;  %2895 = vst.msk [vmem:[%s5742_s3 + $0xe0] sm:$0xff] %vm2866_vm12, %v2862_v57 }
 0x56a   : > { %v2833_v7 = vmul.f32 %v3358_v51, %v2801_v13  ;;  %v2832_v62 = vmul.f32 %v3360_v4, %v2800_v40 }
 0x56c   : > { %v2865_v44 = vsel %vm2769_vm13, %v2833_v7, 0.0  ;;  %v2864_v55 = vsel %vm2768_vm14, %v2832_v62, 0.0 }
 0x56d   : > { %2898 = vst.msk [vmem:[%s5742_s3 + $0xf8] sm:$0xff] %vm2866_vm12, %v2865_v44  ;;  %2897 = vst.msk [vmem:[%s5742_s3 + $0xf0] sm:$0xff] %vm2866_vm12, %v2864_v55 }
 0x56e PF: > { %s3096_s14 = sshll.u32 %s3549_s22, 7  ;;  %s2920_s16 = sshll.u32 %s3598_s25, 4  ;;  %s5656_s16 = int_to_ptr.vmem [resolvable:$true] %s2920_s16 }
 0x56f   : > { %s5653_s15 = scalar_lea.hbm %s5743_s4, %s3096_s14  ;;  %s2900_s17 = scalar_lea.sflag [#allocation4], %s3577_s30 }
 0x570   : > { %s3389_s6 = scalar_lea.vmem %s5656_s16, 256  ;;  %s3493_s7 = smov [#allocation3]  }
 0x571   : > { %p3390_p0 = scmp.ne.s32.totalorder %s5656_s16, %s3389_s6  ;;  %s3393_s9 = sshll.u32 %s3493_s7, 4  ;;  %s3394_s9 = int_to_ptr.vmem [resolvable:$false] %s3393_s9 }
 0x572   : > { %s3395_s10 = scalar_lea.vmem %s3394_s9, 512  ;;  %p3396_p3 = scmp.lt.s32.totalorder %s5656_s16, %s3394_s9 }
 0x573   : > { %p3391_p1 = pnand %p3390_p0, %p3566_p5  ;;  %p3397_p4 = scmp.lt.s32.totalorder %s3395_s10, %s3389_s6 }
 0x575   : > { %p3392_p2 = pneg %p3391_p1  ;;  %p3398_p7 = por %p3397_p4, %p3396_p3 }
 0x577   : > { %p3399_p8 = pnand %p3398_p7, %p3392_p2 }
 0x579   : > { %3402 = shalt.err (!%p3399_p8)
}
 0x57a   : > { %s3403_s25 = scalar_lea.hbm %s5653_s15, 256  ;;  %s3407_s11 = scalar_lea.hbm %s5743_s4, 512 }
 0x57b   : > { %p3404_p9 = scmp.ne.s32.totalorder %s5653_s15, %s3403_s25  ;;  %p3408_p12 = scmp.lt.u32.totalorder %s5653_s15, %s5743_s4 }
 0x57c   : > { %p3409_p13 = scmp.lt.u32.totalorder %s3407_s11, %s3403_s25  ;;  %p3411_p1 = scmp.lt.u32.totalorder %s3403_s25, %s5653_s15 }
 0x57d   : > { %p3405_p10 = pnand %p3404_p9, %p3566_p5 }
 0x57e   : > { %p3410_p0 = por %p3409_p13, %p3408_p12 }
 0x57f   : > { %p3406_p11 = pneg %p3405_p10 }
 0x580   : > { %p3412_p2 = por %p3411_p1, %p3410_p0 }
 0x582   : > { %p3413_p3 = pnand %p3412_p2, %p3406_p11 }
 0x584   : > { %3416 = shalt.err (!%p3413_p3)
}
 0x585   : > { %s3494_s6 = smov 128   ;;  %s3495_s7 = smov 256  }
 0x586   : > { %s3496_s9 = smov 8   ;;  %s5690_s12 = scalar_lea.hbm %s5744_s5, %s3096_s14 }
 0x587   : > { %3188 = dma.vmem_to_hbm [thread:$0]  (%p3566_p5), %s5656_s16, 256, %s5653_s15, %s2900_s17, %s3494_s6, %s3495_s7, %s3496_s9  }
 0x588   : > { %s2935_s8 = sshll.u32 %s3600_s26, 4  ;;  %s2905_s11 = scalar_lea.sflag [#allocation6], %s3577_s30  ;;  %s5693_s8 = int_to_ptr.vmem [resolvable:$true] %s2935_s8 }
 0x589   : > { %s3417_s23 = scalar_lea.vmem %s5693_s8, 256  ;;  %s3497_s13 = smov [#allocation5]  }
 0x58a   : > { %p3418_p4 = scmp.ne.s32.totalorder %s5693_s8, %s3417_s23  ;;  %s3421_s15 = sshll.u32 %s3497_s13, 4  ;;  %s3422_s15 = int_to_ptr.vmem [resolvable:$false] %s3421_s15 }
 0x58b   : > { %s3423_s22 = scalar_lea.vmem %s3422_s15, 512  ;;  %p3424_p9 = scmp.lt.s32.totalorder %s5693_s8, %s3422_s15 }
 0x58c   : > { %p3419_p7 = pnand %p3418_p4, %p3566_p5  ;;  %p3425_p10 = scmp.lt.s32.totalorder %s3423_s22, %s3417_s23 }
 0x58e   : > { %p3420_p8 = pneg %p3419_p7  ;;  %p3426_p11 = por %p3425_p10, %p3424_p9 }
 0x590   : > { %p3427_p12 = pnand %p3426_p11, %p3420_p8 }
 0x592   : > { %3430 = shalt.err (!%p3427_p12)
}
 0x593   : > { %s3431_s26 = scalar_lea.hbm %s5690_s12, 256  ;;  %s3435_s17 = scalar_lea.hbm %s5744_s5, 512 }
 0x594   : > { %p3432_p13 = scmp.ne.s32.totalorder %s5690_s12, %s3431_s26  ;;  %p3436_p2 = scmp.lt.u32.totalorder %s5690_s12, %s5744_s5 }
 0x595   : > { %p3437_p3 = scmp.lt.u32.totalorder %s3435_s17, %s3431_s26  ;;  %p3439_p7 = scmp.lt.u32.totalorder %s3431_s26, %s5690_s12 }
 0x596   : > { %p3433_p0 = pnand %p3432_p13, %p3566_p5 }
 0x597   : > { %p3438_p4 = por %p3437_p3, %p3436_p2 }
 0x598   : > { %p3434_p1 = pneg %p3433_p0 }
 0x599   : > { %p3440_p8 = por %p3439_p7, %p3438_p4 }
 0x59b   : > { %p3441_p9 = pnand %p3440_p8, %p3434_p1 }
 0x59d   : > { %3444 = shalt.err (!%p3441_p9)
}
 0x59e   : > { %3189 = dma.vmem_to_hbm [thread:$0]  (%p3566_p5), %s5693_s8, 256, %s5690_s12, %s2905_s11, %s3494_s6, %s3495_s7, %s3496_s9  }
 0x59f PF: > { %p3199_p10 = scmp.ge.s32.totalorder %s3483_s21, 2  ;;  %s2953_s23 = sand.u32 1, %s3471_s18  }
 0x5a0   : > { %s2954_s13 = scalar_lea.sflag [#allocation4], %s2953_s23 }
 0x5a1   : > { %p3193_p11 = pnand %p3199_p10, %p3570_p6 }
 0x5a3   : > { %3462 = dma.done.wait (!%p3193_p11), %s2954_s13, 256  }
 0x5a4   : > { %3464 = vsyncadd (!%p3193_p11), %s2954_s13, 4294967040  ;;  %s2963_s28 = scalar_lea.sflag [#allocation6], %s2953_s23 }
 0x5a5   : > { %3466 = dma.done.wait (!%p3193_p11), %s2963_s28, 256  }
 0x5a6   : > { %3468 = vsyncadd (!%p3193_p11), %s2963_s28, 4294967040  ;;  %p19_p5 = scmp.ge.s32.totalorder %s3553_s24, 4   ;;  %s5975_s18 = smov %s3475_s19 }
 0x5a7   : > { %s5976_s19 = smov %s3479_s20  ;;  %s5977_s20 = smov %s3564_s27 }
 0x5a8   : > { %s5978_s21 = smov %s3553_s24  ;;  %21 = sbr.rel (!%p19_p5) target bundleno = 5 (0x5), region = 106 }
 0x5af   :  { %2968 = vsyncpa [#allocation4], 1 }
 0x5b0   :  { %2970 = vsyncpa [#allocation4 + $0x1], 1 }
 0x5b1   :  { %2971 = vsyncpa [#allocation6], 1 }
 0x5b2   :  { %2973 = vsyncpa [#allocation6 + $0x1], 1 }

</bundles_post_ra>
